<compile_context>
chip_gen: v6e
topology: v6e:2x2x1
jax: 0.10.0
libtpu: 0.0.40
codegen_flags: <defaults>
</compile_context>

<pallas_src>
import functools

import numpy as np
import jax
import jax.numpy as jnp
from jax.experimental import pallas as pl
from jax.experimental.pallas import tpu as pltpu


# ---------------------------------------------------------------------------
# Fused Pallas kernel: whole ConvUpsample forward for one batch element.
# ---------------------------------------------------------------------------
def _conv_upsample_kernel(x_ref, w1_ref, b1_ref, w2_ref, b2_ref, w3_ref, b3_ref,
                          wm2_ref, bm2_ref, imask_ref, out_ref, pad_ref, *,
                          H, W, in_dim, hidden, out_dim, up_ratio, mask_scale):
    Hp, Wp = H + 2, W + 2
    PP = Hp * Wp                       # flattened padded grid = lane dim (>=128)
    MARGIN = Wp + 1                    # max |tap offset| in the flattened grid
    K2 = 9
    up2 = up_ratio * up_ratio
    offs = [(ki - 1) * Wp + (kj - 1) for ki in range(3) for kj in range(3)]

    interior = imask_ref[...]          # (1, PP): 1 on real pixels, 0 on halo border

    # Halo scratch layout: [zero margin | padded grid | zero margin].
    # Margins and grid borders stay zero for the whole kernel.
    pad_ref[...] = jnp.zeros_like(pad_ref)

    def put(act, c):                   # stage an activation into the halo scratch
        pad_ref[0:c, MARGIN:MARGIN + PP] = act

    def tap(c, t):                     # activation shifted by tap t, (c, PP)
        d = MARGIN + offs[t]
        return pad_ref[0:c, d:d + PP]

    def conv3x3(cin, w_ref, b_ref, relu):
        acc = jnp.dot(w_ref[0], tap(cin, 0), preferred_element_type=jnp.float32)
        for t in range(1, K2):
            acc = acc + jnp.dot(w_ref[t], tap(cin, t),
                                preferred_element_type=jnp.float32)
        acc = acc + b_ref[...]
        if relu:
            acc = jnp.maximum(acc, 0.0)
        return acc * interior          # re-zero halo border == conv zero padding

    # --- conv1 of BOTH branches, fused along Cout (they share input x) -------
    put(x_ref[0], in_dim)
    y1 = conv3x3(in_dim, w1_ref, b1_ref, relu=True)        # (2*hidden, PP)
    h1 = y1[0:hidden]
    m1 = y1[hidden:2 * hidden]

    # --- out branch: conv2 + ReLU, conv3 --------------------------------------
    put(h1, hidden)
    h2 = conv3x3(hidden, w2_ref, b2_ref, relu=True)        # (hidden, PP)
    put(h2, hidden)
    out_low = conv3x3(hidden, w3_ref, b3_ref, relu=False)  # (out_dim, PP)

    # --- mask branch: 1x1 conv (rows pre-permuted to (r, k2) order) ----------
    mlog = jnp.dot(wm2_ref[...], m1, preferred_element_type=jnp.float32)
    mlog = mask_scale * (mlog + bm2_ref[...])               # (up2*K2, PP)

    # --- convex upsample: unfold taps come from the same halo scratch --------
    put(out_low, out_dim)
    unf = [tap(out_dim, t) for t in range(K2)]              # K2 x (out_dim, PP)

    for r in range(up2):
        rows = [mlog[r * K2 + k:r * K2 + k + 1, :] for k in range(K2)]  # (1, PP)
        mx = rows[0]
        for k in range(1, K2):
            mx = jnp.maximum(mx, rows[k])
        es = [jnp.exp(rw - mx) for rw in rows]
        den = es[0]
        for k in range(1, K2):
            den = den + es[k]
        inv = pl.reciprocal(den, approx=True)               # softmax denom on EUP
        acc = (es[0] * inv) * unf[0]
        for k in range(1, K2):
            acc = acc + (es[k] * inv) * unf[k]               # (out_dim, PP)
        out_ref[0, r * out_dim:(r + 1) * out_dim, :] = acc.astype(out_ref.dtype)


# ---------------------------------------------------------------------------
# Wrapper: weight prep (glue), one fused pallas_call, output pixel shuffle.
# ---------------------------------------------------------------------------
def conv_upsample_forward(x, params, *, in_dim, out_dim, up_ratio,
                          up_kernel=3, mask_scale=0.1):
    """x: (B, in_dim, H, W) NCHW -> (B, out_dim, H*up, W*up) NCHW (matches torch)."""
    # TODO(synk): general odd up_kernel != 3 needs a wider halo; module default is 3.
    assert up_kernel == 3, "fused Pallas path assumes 3x3 convs / 3x3 convex upsample"
    B, C, H, W = x.shape
    assert C == in_dim, C
    hidden = params["w_o1"].shape[0]
    K2 = up_kernel * up_kernel
    up2 = up_ratio * up_ratio
    mask_dim = up2 * K2
    Hp, Wp = H + 2, W + 2
    PP = Hp * Wp
    MARGIN = Wp + 1
    maxc = max(in_dim, hidden, out_dim)

    # ---- weight prep (pure glue, done once) ----
    def taps(w):   # torch conv weight (Cout, Cin, 3, 3) -> (9, Cout, Cin), t = ki*3+kj
        co, ci = w.shape[0], w.shape[1]
        return jnp.transpose(w, (2, 3, 0, 1)).reshape(9, co, ci)

    w1 = jnp.concatenate([taps(params["w_o1"]), taps(params["w_m1"])], axis=1)
    b1 = jnp.concatenate([params["b_o1"], params["b_m1"]]).reshape(2 * hidden, 1)
    w2 = taps(params["w_o2"])
    b2 = params["b_o2"].reshape(hidden, 1)
    w3 = taps(params["w_o3"])
    b3 = params["b_o3"].reshape(out_dim, 1)
    # 1x1 mask conv: reorder out-channels from torch's (k2, r1, r2) to (r1, r2, k2)
    # so each softmax group is a contiguous row block inside the kernel.
    perm = np.asarray([(n % K2) * up2 + n // K2 for n in range(mask_dim)])
    wm2 = params["w_m2"][:, :, 0, 0][perm]                  # (mask_dim, hidden)
    bm2 = params["b_m2"][perm].reshape(mask_dim, 1)

    # interior mask of the flattened padded grid (host-side constant, stays resident)
    im = np.zeros((Hp, Wp), np.float32)
    im[1:H + 1, 1:W + 1] = 1.0
    imask = jnp.asarray(im.reshape(1, PP))

    # zero-padded, channel-major, lane-dense input: (B, Cin, Hp*Wp)
    xp = jnp.pad(x.astype(jnp.float32),
                 ((0, 0), (0, 0), (1, 1), (1, 1))).reshape(B, in_dim, PP)

    kernel = functools.partial(
        _conv_upsample_kernel, H=H, W=W, in_dim=in_dim, hidden=hidden,
        out_dim=out_dim, up_ratio=up_ratio, mask_scale=mask_scale)

    c3 = lambda b: (0, 0, 0)
    c2 = lambda b: (0, 0)
    out = pl.pallas_call(
        kernel,
        out_shape=jax.ShapeDtypeStruct((B, up2 * out_dim, PP), jnp.float32),
        grid=(B,),
        in_specs=[
            pl.BlockSpec((1, in_dim, PP), lambda b: (b, 0, 0)),
            pl.BlockSpec(w1.shape, c3), pl.BlockSpec(b1.shape, c2),
            pl.BlockSpec(w2.shape, c3), pl.BlockSpec(b2.shape, c2),
            pl.BlockSpec(w3.shape, c3), pl.BlockSpec(b3.shape, c2),
            pl.BlockSpec(wm2.shape, c2), pl.BlockSpec(bm2.shape, c2),
            pl.BlockSpec(imask.shape, c2),
        ],
        out_specs=pl.BlockSpec((1, up2 * out_dim, PP), lambda b: (b, 0, 0)),
        scratch_shapes=[pltpu.VMEM((maxc, PP + 2 * MARGIN), jnp.float32)],
        compiler_params=pltpu.CompilerParams(dimension_semantics=("parallel",)),
    )(xp, w1, b1, w2, b2, w3, b3, wm2, bm2, imask)

    # TODO(synk): for large H*W add a halo-overlapped spatial grid axis and re-derive
    # the tile for v7x's 64 MiB VMEM; at 16x16 everything (<100 KB) fits in VMEM so a
    # per-batch parallel grid is already optimal.

    # pixel shuffle + drop the halo border (pure data movement in glue)
    o = out.reshape(B, up_ratio, up_ratio, out_dim, Hp, Wp)[:, :, :, :, 1:H + 1, 1:W + 1]
    o = jnp.transpose(o, (0, 3, 4, 1, 5, 2))
    return o.reshape(B, out_dim, H * up_ratio, W * up_ratio)


# ---------------------------------------------------------------------------
# Pure-JAX reference (for correctness check) and deterministic params
# ---------------------------------------------------------------------------
def reference_forward(x, params, *, in_dim, out_dim, up_ratio,
                      up_kernel=3, mask_scale=0.1):
    def conv(t, w, b, pad):
        y = jax.lax.conv_general_dilated(
            t, w, window_strides=(1, 1), padding=((pad, pad), (pad, pad)),
            dimension_numbers=("NCHW", "OIHW", "NCHW"),
            precision=jax.lax.Precision.HIGHEST)
        return y + b[None, :, None, None]

    relu = lambda t: jnp.maximum(t, 0.0)
    B, _, H, W = x.shape
    K2 = up_kernel * up_kernel
    out_low = conv(relu(conv(relu(conv(x, params["w_o1"], params["b_o1"], 1)),
                             params["w_o2"], params["b_o2"], 1)),
                   params["w_o3"], params["b_o3"], 1)
    mask = mask_scale * conv(relu(conv(x, params["w_m1"], params["b_m1"], 1)),
                             params["w_m2"], params["b_m2"], 0)
    mask = mask.reshape(B, 1, K2, up_ratio, up_ratio, H, W)
    mask = jax.nn.softmax(mask, axis=2)
    p = up_kernel // 2
    olp = jnp.pad(out_low, ((0, 0), (0, 0), (p, p), (p, p)))
    unf = jnp.stack(
        [olp[:, :, ki:ki + H, kj:kj + W]
         for ki in range(up_kernel) for kj in range(up_kernel)], axis=2)  # (B,C,K2,H,W)
    out = jnp.sum(unf[:, :, :, None, None] * mask, axis=2)                # (B,C,up,up,H,W)
    return jnp.transpose(out, (0, 1, 4, 2, 5, 3)).reshape(
        B, out_dim, H * up_ratio, W * up_ratio)


def init_params(key, in_dim, out_dim, up_ratio, up_kernel=3, hidden_dim_mult=2):
    hidden = int(hidden_dim_mult * in_dim)
    mask_dim = up_ratio ** 2 * up_kernel ** 2
    ks = jax.random.split(key, 10)
    w = lambda k, shape, s=0.2: s * jax.random.normal(k, shape, jnp.float32)
    return {
        "w_o1": w(ks[0], (hidden, in_dim, 3, 3)),  "b_o1": w(ks[1], (hidden,), 0.1),
        "w_o2": w(ks[2], (hidden, hidden, 3, 3)),  "b_o2": w(ks[3], (hidden,), 0.1),
        "w_o3": w(ks[4], (out_dim, hidden, 3, 3)), "b_o3": w(ks[5], (out_dim,), 0.1),
        "w_m1": w(ks[6], (hidden, in_dim, 3, 3)),  "b_m1": w(ks[7], (hidden,), 0.1),
        "w_m2": w(ks[8], (mask_dim, hidden, 1, 1)), "b_m2": w(ks[9], (mask_dim,), 0.1),
    }


if __name__ == "__main__":
    key = jax.random.PRNGKey(0)
    in_dim, out_dim, up_ratio = 4, 3, 2
    B, H, W = 2, 16, 16
    kx, kp = jax.random.split(key)
    x = jax.random.normal(kx, (B, in_dim, H, W), jnp.float32)
    params = init_params(kp, in_dim, out_dim, up_ratio)

    out = conv_upsample_forward(x, params, in_dim=in_dim, out_dim=out_dim,
                                up_ratio=up_ratio)
    out = jax.block_until_ready(out)
    assert out.shape == (B, out_dim, H * up_ratio, W * up_ratio), out.shape

    ref = reference_forward(x, params, in_dim=in_dim, out_dim=out_dim,
                            up_ratio=up_ratio)
    ref = jax.block_until_ready(ref)
    err = float(jnp.max(jnp.abs(out - ref)))
    assert jnp.allclose(out, ref, atol=5e-3, rtol=5e-3), err
    print("KERNEL_OK")
</pallas_src>

<mosaic_0001>
module attributes {stable_mosaic.version = 11 : i64} {
  func.func @_conv_upsample_kernel(%arg0: i32, %arg1: memref<1x4x324xf32, #tpu.memory_space<vmem>>, %arg2: memref<9x16x4xf32, #tpu.memory_space<vmem>>, %arg3: memref<16x1xf32, #tpu.memory_space<vmem>>, %arg4: memref<9x8x8xf32, #tpu.memory_space<vmem>>, %arg5: memref<8x1xf32, #tpu.memory_space<vmem>>, %arg6: memref<9x3x8xf32, #tpu.memory_space<vmem>>, %arg7: memref<3x1xf32, #tpu.memory_space<vmem>>, %arg8: memref<36x8xf32, #tpu.memory_space<vmem>>, %arg9: memref<36x1xf32, #tpu.memory_space<vmem>>, %arg10: memref<1x324xf32, #tpu.memory_space<vmem>>, %arg11: memref<1x12x324xf32, #tpu.memory_space<vmem>>, %arg12: memref<8x362xf32, #tpu.memory_space<vmem>>) attributes {dimension_semantics = [#tpu.dimension_semantics<parallel>], iteration_bounds = array<i64: 2>, scalar_prefetch = 0 : i64, scratch_operands = 1 : i64, tpu.core_type = #tpu.core_type<tc>, window_params = [{transform_indices = @transform_0, window_bounds = array<i64: 1, 4, 324>}, {pipeline_mode = #tpu.pipeline_mode<synchronous>, transform_indices = @transform_1, window_bounds = array<i64: 9, 16, 4>}, {pipeline_mode = #tpu.pipeline_mode<synchronous>, transform_indices = @transform_2, window_bounds = array<i64: 16, 1>}, {pipeline_mode = #tpu.pipeline_mode<synchronous>, transform_indices = @transform_3, window_bounds = array<i64: 9, 8, 8>}, {pipeline_mode = #tpu.pipeline_mode<synchronous>, transform_indices = @transform_4, window_bounds = array<i64: 8, 1>}, {pipeline_mode = #tpu.pipeline_mode<synchronous>, transform_indices = @transform_5, window_bounds = array<i64: 9, 3, 8>}, {pipeline_mode = #tpu.pipeline_mode<synchronous>, transform_indices = @transform_6, window_bounds = array<i64: 3, 1>}, {pipeline_mode = #tpu.pipeline_mode<synchronous>, transform_indices = @transform_7, window_bounds = array<i64: 36, 8>}, {pipeline_mode = #tpu.pipeline_mode<synchronous>, transform_indices = @transform_8, window_bounds = array<i64: 36, 1>}, {pipeline_mode = #tpu.pipeline_mode<synchronous>, transform_indices = @transform_9, window_bounds = array<i64: 1, 324>}, {transform_indices = @transform_10, window_bounds = array<i64: 1, 12, 324>}]} {
    %c0 = arith.constant 0 : index
    %c0_0 = arith.constant 0 : index
    %0 = vector.load %arg10[%c0, %c0_0] : memref<1x324xf32, #tpu.memory_space<vmem>>, vector<1x324xf32>
    %cst = arith.constant 0.000000e+00 : f32
    %1 = vector.broadcast %cst : f32 to vector<8x362xf32>
    %c0_1 = arith.constant 0 : index
    %c0_2 = arith.constant 0 : index
    %2 = vector.load %arg12[%c0_1, %c0_2] : memref<8x362xf32, #tpu.memory_space<vmem>>, vector<8x362xf32>
    tpu.vector_store %arg12[%c0_1, %c0_2], %1 {strides = array<i32>} : memref<8x362xf32, #tpu.memory_space<vmem>>, vector<8x362xf32>,
    %c0_3 = arith.constant 0 : index
    %c0_4 = arith.constant 0 : index
    %c0_5 = arith.constant 0 : index
    %3 = vector.load %arg1[%c0_3, %c0_4, %c0_5] : memref<1x4x324xf32, #tpu.memory_space<vmem>>, vector<1x4x324xf32>
    %4 = vector.shape_cast %3 : vector<1x4x324xf32> to vector<4x324xf32>
    %c0_6 = arith.constant 0 : index
    %c19 = arith.constant 19 : index
    %5 = vector.load %arg12[%c0_6, %c19] : memref<8x362xf32, #tpu.memory_space<vmem>>, vector<4x324xf32>
    tpu.vector_store %arg12[%c0_6, %c19], %4 {strides = array<i32>} : memref<8x362xf32, #tpu.memory_space<vmem>>, vector<4x324xf32>,
    %c0_7 = arith.constant 0 : index
    %c0_8 = arith.constant 0 : index
    %c0_9 = arith.constant 0 : index
    %6 = vector.load %arg2[%c0_7, %c0_8, %c0_9] : memref<9x16x4xf32, #tpu.memory_space<vmem>>, vector<1x16x4xf32>
    %7 = vector.shape_cast %6 : vector<1x16x4xf32> to vector<16x4xf32>
    %c0_10 = arith.constant 0 : index
    %c0_11 = arith.constant 0 : index
    %8 = vector.load %arg12[%c0_10, %c0_11] : memref<8x362xf32, #tpu.memory_space<vmem>>, vector<4x324xf32>
    %cst_12 = arith.constant dense<0.000000e+00> : vector<16x324xf32>
    %9 = tpu.matmul %7, %8, %cst_12 {dimension_numbers = #tpu.dot_dimension_numbers<[1], [0], [0], [1], [0, 0, 1, 1], [], []>} : vector<16x4xf32>, vector<4x324xf32>, vector<16x324xf32> -> vector<16x324xf32>
    %c1 = arith.constant 1 : index
    %c0_13 = arith.constant 0 : index
    %c0_14 = arith.constant 0 : index
    %10 = vector.load %arg2[%c1, %c0_13, %c0_14] : memref<9x16x4xf32, #tpu.memory_space<vmem>>, vector<1x16x4xf32>
    %11 = vector.shape_cast %10 : vector<1x16x4xf32> to vector<16x4xf32>
    %c0_15 = arith.constant 0 : index
    %c1_16 = arith.constant 1 : index
    %12 = vector.load %arg12[%c0_15, %c1_16] : memref<8x362xf32, #tpu.memory_space<vmem>>, vector<4x324xf32>
    %cst_17 = arith.constant dense<0.000000e+00> : vector<16x324xf32>
    %13 = tpu.matmul %11, %12, %cst_17 {dimension_numbers = #tpu.dot_dimension_numbers<[1], [0], [0], [1], [0, 0, 1, 1], [], []>} : vector<16x4xf32>, vector<4x324xf32>, vector<16x324xf32> -> vector<16x324xf32>
    %14 = arith.addf %9, %13 : vector<16x324xf32>
    %c2 = arith.constant 2 : index
    %c0_18 = arith.constant 0 : index
    %c0_19 = arith.constant 0 : index
    %15 = vector.load %arg2[%c2, %c0_18, %c0_19] : memref<9x16x4xf32, #tpu.memory_space<vmem>>, vector<1x16x4xf32>
    %16 = vector.shape_cast %15 : vector<1x16x4xf32> to vector<16x4xf32>
    %c0_20 = arith.constant 0 : index
    %c2_21 = arith.constant 2 : index
    %17 = vector.load %arg12[%c0_20, %c2_21] : memref<8x362xf32, #tpu.memory_space<vmem>>, vector<4x324xf32>
    %cst_22 = arith.constant dense<0.000000e+00> : vector<16x324xf32>
    %18 = tpu.matmul %16, %17, %cst_22 {dimension_numbers = #tpu.dot_dimension_numbers<[1], [0], [0], [1], [0, 0, 1, 1], [], []>} : vector<16x4xf32>, vector<4x324xf32>, vector<16x324xf32> -> vector<16x324xf32>
    %19 = arith.addf %14, %18 : vector<16x324xf32>
    %c3 = arith.constant 3 : index
    %c0_23 = arith.constant 0 : index
    %c0_24 = arith.constant 0 : index
    %20 = vector.load %arg2[%c3, %c0_23, %c0_24] : memref<9x16x4xf32, #tpu.memory_space<vmem>>, vector<1x16x4xf32>
    %21 = vector.shape_cast %20 : vector<1x16x4xf32> to vector<16x4xf32>
    %c0_25 = arith.constant 0 : index
    %c18 = arith.constant 18 : index
    %22 = vector.load %arg12[%c0_25, %c18] : memref<8x362xf32, #tpu.memory_space<vmem>>, vector<4x324xf32>
    %cst_26 = arith.constant dense<0.000000e+00> : vector<16x324xf32>
    %23 = tpu.matmul %21, %22, %cst_26 {dimension_numbers = #tpu.dot_dimension_numbers<[1], [0], [0], [1], [0, 0, 1, 1], [], []>} : vector<16x4xf32>, vector<4x324xf32>, vector<16x324xf32> -> vector<16x324xf32>
    %24 = arith.addf %19, %23 : vector<16x324xf32>
    %c4 = arith.constant 4 : index
    %c0_27 = arith.constant 0 : index
    %c0_28 = arith.constant 0 : index
    %25 = vector.load %arg2[%c4, %c0_27, %c0_28] : memref<9x16x4xf32, #tpu.memory_space<vmem>>, vector<1x16x4xf32>
    %26 = vector.shape_cast %25 : vector<1x16x4xf32> to vector<16x4xf32>
    %c0_29 = arith.constant 0 : index
    %c19_30 = arith.constant 19 : index
    %27 = vector.load %arg12[%c0_29, %c19_30] : memref<8x362xf32, #tpu.memory_space<vmem>>, vector<4x324xf32>
    %cst_31 = arith.constant dense<0.000000e+00> : vector<16x324xf32>
    %28 = tpu.matmul %26, %27, %cst_31 {dimension_numbers = #tpu.dot_dimension_numbers<[1], [0], [0], [1], [0, 0, 1, 1], [], []>} : vector<16x4xf32>, vector<4x324xf32>, vector<16x324xf32> -> vector<16x324xf32>
    %29 = arith.addf %24, %28 : vector<16x324xf32>
    %c5 = arith.constant 5 : index
    %c0_32 = arith.constant 0 : index
    %c0_33 = arith.constant 0 : index
    %30 = vector.load %arg2[%c5, %c0_32, %c0_33] : memref<9x16x4xf32, #tpu.memory_space<vmem>>, vector<1x16x4xf32>
    %31 = vector.shape_cast %30 : vector<1x16x4xf32> to vector<16x4xf32>
    %c0_34 = arith.constant 0 : index
    %c20 = arith.constant 20 : index
    %32 = vector.load %arg12[%c0_34, %c20] : memref<8x362xf32, #tpu.memory_space<vmem>>, vector<4x324xf32>
    %cst_35 = arith.constant dense<0.000000e+00> : vector<16x324xf32>
    %33 = tpu.matmul %31, %32, %cst_35 {dimension_numbers = #tpu.dot_dimension_numbers<[1], [0], [0], [1], [0, 0, 1, 1], [], []>} : vector<16x4xf32>, vector<4x324xf32>, vector<16x324xf32> -> vector<16x324xf32>
    %34 = arith.addf %29, %33 : vector<16x324xf32>
    %c6 = arith.constant 6 : index
    %c0_36 = arith.constant 0 : index
    %c0_37 = arith.constant 0 : index
    %35 = vector.load %arg2[%c6, %c0_36, %c0_37] : memref<9x16x4xf32, #tpu.memory_space<vmem>>, vector<1x16x4xf32>
    %36 = vector.shape_cast %35 : vector<1x16x4xf32> to vector<16x4xf32>
    %c0_38 = arith.constant 0 : index
    %c36 = arith.constant 36 : index
    %37 = vector.load %arg12[%c0_38, %c36] : memref<8x362xf32, #tpu.memory_space<vmem>>, vector<4x324xf32>
    %cst_39 = arith.constant dense<0.000000e+00> : vector<16x324xf32>
    %38 = tpu.matmul %36, %37, %cst_39 {dimension_numbers = #tpu.dot_dimension_numbers<[1], [0], [0], [1], [0, 0, 1, 1], [], []>} : vector<16x4xf32>, vector<4x324xf32>, vector<16x324xf32> -> vector<16x324xf32>
    %39 = arith.addf %34, %38 : vector<16x324xf32>
    %c7 = arith.constant 7 : index
    %c0_40 = arith.constant 0 : index
    %c0_41 = arith.constant 0 : index
    %40 = vector.load %arg2[%c7, %c0_40, %c0_41] : memref<9x16x4xf32, #tpu.memory_space<vmem>>, vector<1x16x4xf32>
    %41 = vector.shape_cast %40 : vector<1x16x4xf32> to vector<16x4xf32>
    %c0_42 = arith.constant 0 : index
    %c37 = arith.constant 37 : index
    %42 = vector.load %arg12[%c0_42, %c37] : memref<8x362xf32, #tpu.memory_space<vmem>>, vector<4x324xf32>
    %cst_43 = arith.constant dense<0.000000e+00> : vector<16x324xf32>
    %43 = tpu.matmul %41, %42, %cst_43 {dimension_numbers = #tpu.dot_dimension_numbers<[1], [0], [0], [1], [0, 0, 1, 1], [], []>} : vector<16x4xf32>, vector<4x324xf32>, vector<16x324xf32> -> vector<16x324xf32>
    %44 = arith.addf %39, %43 : vector<16x324xf32>
    %c8 = arith.constant 8 : index
    %c0_44 = arith.constant 0 : index
    %c0_45 = arith.constant 0 : index
    %45 = vector.load %arg2[%c8, %c0_44, %c0_45] : memref<9x16x4xf32, #tpu.memory_space<vmem>>, vector<1x16x4xf32>
    %46 = vector.shape_cast %45 : vector<1x16x4xf32> to vector<16x4xf32>
    %c0_46 = arith.constant 0 : index
    %c38 = arith.constant 38 : index
    %47 = vector.load %arg12[%c0_46, %c38] : memref<8x362xf32, #tpu.memory_space<vmem>>, vector<4x324xf32>
    %cst_47 = arith.constant dense<0.000000e+00> : vector<16x324xf32>
    %48 = tpu.matmul %46, %47, %cst_47 {dimension_numbers = #tpu.dot_dimension_numbers<[1], [0], [0], [1], [0, 0, 1, 1], [], []>} : vector<16x4xf32>, vector<4x324xf32>, vector<16x324xf32> -> vector<16x324xf32>
    %49 = arith.addf %44, %48 : vector<16x324xf32>
    %c0_48 = arith.constant 0 : index
    %c0_49 = arith.constant 0 : index
    %50 = vector.load %arg3[%c0_48, %c0_49] : memref<16x1xf32, #tpu.memory_space<vmem>>, vector<16x1xf32>
    %51 = vector.broadcast %50 : vector<16x1xf32> to vector<16x324xf32>
    %52 = arith.addf %49, %51 : vector<16x324xf32>
    %cst_50 = arith.constant 0.000000e+00 : f32
    %53 = vector.broadcast %cst_50 : f32 to vector<16x324xf32>
    %54 = arith.maximumf %52, %53 : vector<16x324xf32>
    %55 = vector.broadcast %0 : vector<1x324xf32> to vector<16x324xf32>
    %56 = arith.mulf %54, %55 : vector<16x324xf32>
    %57 = vector.extract_strided_slice %56 {offsets = [0, 0], sizes = [8, 324], strides = [1, 1]} : vector<16x324xf32> to vector<8x324xf32>
    %58 = vector.extract_strided_slice %56 {offsets = [8, 0], sizes = [8, 324], strides = [1, 1]} : vector<16x324xf32> to vector<8x324xf32>
    %c0_51 = arith.constant 0 : index
    %c19_52 = arith.constant 19 : index
    %59 = vector.load %arg12[%c0_51, %c19_52] : memref<8x362xf32, #tpu.memory_space<vmem>>, vector<8x324xf32>
    tpu.vector_store %arg12[%c0_51, %c19_52], %57 {strides = array<i32>} : memref<8x362xf32, #tpu.memory_space<vmem>>, vector<8x324xf32>,
    %c0_53 = arith.constant 0 : index
    %c0_54 = arith.constant 0 : index
    %c0_55 = arith.constant 0 : index
    %60 = vector.load %arg4[%c0_53, %c0_54, %c0_55] : memref<9x8x8xf32, #tpu.memory_space<vmem>>, vector<1x8x8xf32>
    %61 = vector.shape_cast %60 : vector<1x8x8xf32> to vector<8x8xf32>
    %c0_56 = arith.constant 0 : index
    %c0_57 = arith.constant 0 : index
    %62 = vector.load %arg12[%c0_56, %c0_57] : memref<8x362xf32, #tpu.memory_space<vmem>>, vector<8x324xf32>
    %cst_58 = arith.constant dense<0.000000e+00> : vector<8x324xf32>
    %63 = tpu.matmul %61, %62, %cst_58 {dimension_numbers = #tpu.dot_dimension_numbers<[1], [0], [0], [1], [0, 0, 1, 1], [], []>} : vector<8x8xf32>, vector<8x324xf32>, vector<8x324xf32> -> vector<8x324xf32>
    %c1_59 = arith.constant 1 : index
    %c0_60 = arith.constant 0 : index
    %c0_61 = arith.constant 0 : index
    %64 = vector.load %arg4[%c1_59, %c0_60, %c0_61] : memref<9x8x8xf32, #tpu.memory_space<vmem>>, vector<1x8x8xf32>
    %65 = vector.shape_cast %64 : vector<1x8x8xf32> to vector<8x8xf32>
    %c0_62 = arith.constant 0 : index
    %c1_63 = arith.constant 1 : index
    %66 = vector.load %arg12[%c0_62, %c1_63] : memref<8x362xf32, #tpu.memory_space<vmem>>, vector<8x324xf32>
    %cst_64 = arith.constant dense<0.000000e+00> : vector<8x324xf32>
    %67 = tpu.matmul %65, %66, %cst_64 {dimension_numbers = #tpu.dot_dimension_numbers<[1], [0], [0], [1], [0, 0, 1, 1], [], []>} : vector<8x8xf32>, vector<8x324xf32>, vector<8x324xf32> -> vector<8x324xf32>
    %68 = arith.addf %63, %67 : vector<8x324xf32>
    %c2_65 = arith.constant 2 : index
    %c0_66 = arith.constant 0 : index
    %c0_67 = arith.constant 0 : index
    %69 = vector.load %arg4[%c2_65, %c0_66, %c0_67] : memref<9x8x8xf32, #tpu.memory_space<vmem>>, vector<1x8x8xf32>
    %70 = vector.shape_cast %69 : vector<1x8x8xf32> to vector<8x8xf32>
    %c0_68 = arith.constant 0 : index
    %c2_69 = arith.constant 2 : index
    %71 = vector.load %arg12[%c0_68, %c2_69] : memref<8x362xf32, #tpu.memory_space<vmem>>, vector<8x324xf32>
    %cst_70 = arith.constant dense<0.000000e+00> : vector<8x324xf32>
    %72 = tpu.matmul %70, %71, %cst_70 {dimension_numbers = #tpu.dot_dimension_numbers<[1], [0], [0], [1], [0, 0, 1, 1], [], []>} : vector<8x8xf32>, vector<8x324xf32>, vector<8x324xf32> -> vector<8x324xf32>
    %73 = arith.addf %68, %72 : vector<8x324xf32>
    %c3_71 = arith.constant 3 : index
    %c0_72 = arith.constant 0 : index
    %c0_73 = arith.constant 0 : index
    %74 = vector.load %arg4[%c3_71, %c0_72, %c0_73] : memref<9x8x8xf32, #tpu.memory_space<vmem>>, vector<1x8x8xf32>
    %75 = vector.shape_cast %74 : vector<1x8x8xf32> to vector<8x8xf32>
    %c0_74 = arith.constant 0 : index
    %c18_75 = arith.constant 18 : index
    %76 = vector.load %arg12[%c0_74, %c18_75] : memref<8x362xf32, #tpu.memory_space<vmem>>, vector<8x324xf32>
    %cst_76 = arith.constant dense<0.000000e+00> : vector<8x324xf32>
    %77 = tpu.matmul %75, %76, %cst_76 {dimension_numbers = #tpu.dot_dimension_numbers<[1], [0], [0], [1], [0, 0, 1, 1], [], []>} : vector<8x8xf32>, vector<8x324xf32>, vector<8x324xf32> -> vector<8x324xf32>
    %78 = arith.addf %73, %77 : vector<8x324xf32>
    %c4_77 = arith.constant 4 : index
    %c0_78 = arith.constant 0 : index
    %c0_79 = arith.constant 0 : index
    %79 = vector.load %arg4[%c4_77, %c0_78, %c0_79] : memref<9x8x8xf32, #tpu.memory_space<vmem>>, vector<1x8x8xf32>
    %80 = vector.shape_cast %79 : vector<1x8x8xf32> to vector<8x8xf32>
    %c0_80 = arith.constant 0 : index
    %c19_81 = arith.constant 19 : index
    %81 = vector.load %arg12[%c0_80, %c19_81] : memref<8x362xf32, #tpu.memory_space<vmem>>, vector<8x324xf32>
    %cst_82 = arith.constant dense<0.000000e+00> : vector<8x324xf32>
    %82 = tpu.matmul %80, %81, %cst_82 {dimension_numbers = #tpu.dot_dimension_numbers<[1], [0], [0], [1], [0, 0, 1, 1], [], []>} : vector<8x8xf32>, vector<8x324xf32>, vector<8x324xf32> -> vector<8x324xf32>
    %83 = arith.addf %78, %82 : vector<8x324xf32>
    %c5_83 = arith.constant 5 : index
    %c0_84 = arith.constant 0 : index
    %c0_85 = arith.constant 0 : index
    %84 = vector.load %arg4[%c5_83, %c0_84, %c0_85] : memref<9x8x8xf32, #tpu.memory_space<vmem>>, vector<1x8x8xf32>
    %85 = vector.shape_cast %84 : vector<1x8x8xf32> to vector<8x8xf32>
    %c0_86 = arith.constant 0 : index
    %c20_87 = arith.constant 20 : index
    %86 = vector.load %arg12[%c0_86, %c20_87] : memref<8x362xf32, #tpu.memory_space<vmem>>, vector<8x324xf32>
    %cst_88 = arith.constant dense<0.000000e+00> : vector<8x324xf32>
    %87 = tpu.matmul %85, %86, %cst_88 {dimension_numbers = #tpu.dot_dimension_numbers<[1], [0], [0], [1], [0, 0, 1, 1], [], []>} : vector<8x8xf32>, vector<8x324xf32>, vector<8x324xf32> -> vector<8x324xf32>
    %88 = arith.addf %83, %87 : vector<8x324xf32>
    %c6_89 = arith.constant 6 : index
    %c0_90 = arith.constant 0 : index
    %c0_91 = arith.constant 0 : index
    %89 = vector.load %arg4[%c6_89, %c0_90, %c0_91] : memref<9x8x8xf32, #tpu.memory_space<vmem>>, vector<1x8x8xf32>
    %90 = vector.shape_cast %89 : vector<1x8x8xf32> to vector<8x8xf32>
    %c0_92 = arith.constant 0 : index
    %c36_93 = arith.constant 36 : index
    %91 = vector.load %arg12[%c0_92, %c36_93] : memref<8x362xf32, #tpu.memory_space<vmem>>, vector<8x324xf32>
    %cst_94 = arith.constant dense<0.000000e+00> : vector<8x324xf32>
    %92 = tpu.matmul %90, %91, %cst_94 {dimension_numbers = #tpu.dot_dimension_numbers<[1], [0], [0], [1], [0, 0, 1, 1], [], []>} : vector<8x8xf32>, vector<8x324xf32>, vector<8x324xf32> -> vector<8x324xf32>
    %93 = arith.addf %88, %92 : vector<8x324xf32>
    %c7_95 = arith.constant 7 : index
    %c0_96 = arith.constant 0 : index
    %c0_97 = arith.constant 0 : index
    %94 = vector.load %arg4[%c7_95, %c0_96, %c0_97] : memref<9x8x8xf32, #tpu.memory_space<vmem>>, vector<1x8x8xf32>
    %95 = vector.shape_cast %94 : vector<1x8x8xf32> to vector<8x8xf32>
    %c0_98 = arith.constant 0 : index
    %c37_99 = arith.constant 37 : index
    %96 = vector.load %arg12[%c0_98, %c37_99] : memref<8x362xf32, #tpu.memory_space<vmem>>, vector<8x324xf32>
    %cst_100 = arith.constant dense<0.000000e+00> : vector<8x324xf32>
    %97 = tpu.matmul %95, %96, %cst_100 {dimension_numbers = #tpu.dot_dimension_numbers<[1], [0], [0], [1], [0, 0, 1, 1], [], []>} : vector<8x8xf32>, vector<8x324xf32>, vector<8x324xf32> -> vector<8x324xf32>
    %98 = arith.addf %93, %97 : vector<8x324xf32>
    %c8_101 = arith.constant 8 : index
    %c0_102 = arith.constant 0 : index
    %c0_103 = arith.constant 0 : index
    %99 = vector.load %arg4[%c8_101, %c0_102, %c0_103] : memref<9x8x8xf32, #tpu.memory_space<vmem>>, vector<1x8x8xf32>
    %100 = vector.shape_cast %99 : vector<1x8x8xf32> to vector<8x8xf32>
    %c0_104 = arith.constant 0 : index
    %c38_105 = arith.constant 38 : index
    %101 = vector.load %arg12[%c0_104, %c38_105] : memref<8x362xf32, #tpu.memory_space<vmem>>, vector<8x324xf32>
    %cst_106 = arith.constant dense<0.000000e+00> : vector<8x324xf32>
    %102 = tpu.matmul %100, %101, %cst_106 {dimension_numbers = #tpu.dot_dimension_numbers<[1], [0], [0], [1], [0, 0, 1, 1], [], []>} : vector<8x8xf32>, vector<8x324xf32>, vector<8x324xf32> -> vector<8x324xf32>
    %103 = arith.addf %98, %102 : vector<8x324xf32>
    %c0_107 = arith.constant 0 : index
    %c0_108 = arith.constant 0 : index
    %104 = vector.load %arg5[%c0_107, %c0_108] : memref<8x1xf32, #tpu.memory_space<vmem>>, vector<8x1xf32>
    %105 = vector.broadcast %104 : vector<8x1xf32> to vector<8x324xf32>
    %106 = arith.addf %103, %105 : vector<8x324xf32>
    %cst_109 = arith.constant 0.000000e+00 : f32
    %107 = vector.broadcast %cst_109 : f32 to vector<8x324xf32>
    %108 = arith.maximumf %106, %107 : vector<8x324xf32>
    %109 = vector.broadcast %0 : vector<1x324xf32> to vector<8x324xf32>
    %110 = arith.mulf %108, %109 : vector<8x324xf32>
    %c0_110 = arith.constant 0 : index
    %c19_111 = arith.constant 19 : index
    %111 = vector.load %arg12[%c0_110, %c19_111] : memref<8x362xf32, #tpu.memory_space<vmem>>, vector<8x324xf32>
    tpu.vector_store %arg12[%c0_110, %c19_111], %110 {strides = array<i32>} : memref<8x362xf32, #tpu.memory_space<vmem>>, vector<8x324xf32>,
    %c0_112 = arith.constant 0 : index
    %c0_113 = arith.constant 0 : index
    %c0_114 = arith.constant 0 : index
    %112 = vector.load %arg6[%c0_112, %c0_113, %c0_114] : memref<9x3x8xf32, #tpu.memory_space<vmem>>, vector<1x3x8xf32>
    %113 = vector.shape_cast %112 : vector<1x3x8xf32> to vector<3x8xf32>
    %c0_115 = arith.constant 0 : index
    %c0_116 = arith.constant 0 : index
    %114 = vector.load %arg12[%c0_115, %c0_116] : memref<8x362xf32, #tpu.memory_space<vmem>>, vector<8x324xf32>
    %cst_117 = arith.constant dense<0.000000e+00> : vector<3x324xf32>
    %115 = tpu.matmul %113, %114, %cst_117 {dimension_numbers = #tpu.dot_dimension_numbers<[1], [0], [0], [1], [0, 0, 1, 1], [], []>} : vector<3x8xf32>, vector<8x324xf32>, vector<3x324xf32> -> vector<3x324xf32>
    %c1_118 = arith.constant 1 : index
    %c0_119 = arith.constant 0 : index
    %c0_120 = arith.constant 0 : index
    %116 = vector.load %arg6[%c1_118, %c0_119, %c0_120] : memref<9x3x8xf32, #tpu.memory_space<vmem>>, vector<1x3x8xf32>
    %117 = vector.shape_cast %116 : vector<1x3x8xf32> to vector<3x8xf32>
    %c0_121 = arith.constant 0 : index
    %c1_122 = arith.constant 1 : index
    %118 = vector.load %arg12[%c0_121, %c1_122] : memref<8x362xf32, #tpu.memory_space<vmem>>, vector<8x324xf32>
    %cst_123 = arith.constant dense<0.000000e+00> : vector<3x324xf32>
    %119 = tpu.matmul %117, %118, %cst_123 {dimension_numbers = #tpu.dot_dimension_numbers<[1], [0], [0], [1], [0, 0, 1, 1], [], []>} : vector<3x8xf32>, vector<8x324xf32>, vector<3x324xf32> -> vector<3x324xf32>
    %120 = arith.addf %115, %119 : vector<3x324xf32>
    %c2_124 = arith.constant 2 : index
    %c0_125 = arith.constant 0 : index
    %c0_126 = arith.constant 0 : index
    %121 = vector.load %arg6[%c2_124, %c0_125, %c0_126] : memref<9x3x8xf32, #tpu.memory_space<vmem>>, vector<1x3x8xf32>
    %122 = vector.shape_cast %121 : vector<1x3x8xf32> to vector<3x8xf32>
    %c0_127 = arith.constant 0 : index
    %c2_128 = arith.constant 2 : index
    %123 = vector.load %arg12[%c0_127, %c2_128] : memref<8x362xf32, #tpu.memory_space<vmem>>, vector<8x324xf32>
    %cst_129 = arith.constant dense<0.000000e+00> : vector<3x324xf32>
    %124 = tpu.matmul %122, %123, %cst_129 {dimension_numbers = #tpu.dot_dimension_numbers<[1], [0], [0], [1], [0, 0, 1, 1], [], []>} : vector<3x8xf32>, vector<8x324xf32>, vector<3x324xf32> -> vector<3x324xf32>
    %125 = arith.addf %120, %124 : vector<3x324xf32>
    %c3_130 = arith.constant 3 : index
    %c0_131 = arith.constant 0 : index
    %c0_132 = arith.constant 0 : index
    %126 = vector.load %arg6[%c3_130, %c0_131, %c0_132] : memref<9x3x8xf32, #tpu.memory_space<vmem>>, vector<1x3x8xf32>
    %127 = vector.shape_cast %126 : vector<1x3x8xf32> to vector<3x8xf32>
    %c0_133 = arith.constant 0 : index
    %c18_134 = arith.constant 18 : index
    %128 = vector.load %arg12[%c0_133, %c18_134] : memref<8x362xf32, #tpu.memory_space<vmem>>, vector<8x324xf32>
    %cst_135 = arith.constant dense<0.000000e+00> : vector<3x324xf32>
    %129 = tpu.matmul %127, %128, %cst_135 {dimension_numbers = #tpu.dot_dimension_numbers<[1], [0], [0], [1], [0, 0, 1, 1], [], []>} : vector<3x8xf32>, vector<8x324xf32>, vector<3x324xf32> -> vector<3x324xf32>
    %130 = arith.addf %125, %129 : vector<3x324xf32>
    %c4_136 = arith.constant 4 : index
    %c0_137 = arith.constant 0 : index
    %c0_138 = arith.constant 0 : index
    %131 = vector.load %arg6[%c4_136, %c0_137, %c0_138] : memref<9x3x8xf32, #tpu.memory_space<vmem>>, vector<1x3x8xf32>
    %132 = vector.shape_cast %131 : vector<1x3x8xf32> to vector<3x8xf32>
    %c0_139 = arith.constant 0 : index
    %c19_140 = arith.constant 19 : index
    %133 = vector.load %arg12[%c0_139, %c19_140] : memref<8x362xf32, #tpu.memory_space<vmem>>, vector<8x324xf32>
    %cst_141 = arith.constant dense<0.000000e+00> : vector<3x324xf32>
    %134 = tpu.matmul %132, %133, %cst_141 {dimension_numbers = #tpu.dot_dimension_numbers<[1], [0], [0], [1], [0, 0, 1, 1], [], []>} : vector<3x8xf32>, vector<8x324xf32>, vector<3x324xf32> -> vector<3x324xf32>
    %135 = arith.addf %130, %134 : vector<3x324xf32>
    %c5_142 = arith.constant 5 : index
    %c0_143 = arith.constant 0 : index
    %c0_144 = arith.constant 0 : index
    %136 = vector.load %arg6[%c5_142, %c0_143, %c0_144] : memref<9x3x8xf32, #tpu.memory_space<vmem>>, vector<1x3x8xf32>
    %137 = vector.shape_cast %136 : vector<1x3x8xf32> to vector<3x8xf32>
    %c0_145 = arith.constant 0 : index
    %c20_146 = arith.constant 20 : index
    %138 = vector.load %arg12[%c0_145, %c20_146] : memref<8x362xf32, #tpu.memory_space<vmem>>, vector<8x324xf32>
    %cst_147 = arith.constant dense<0.000000e+00> : vector<3x324xf32>
    %139 = tpu.matmul %137, %138, %cst_147 {dimension_numbers = #tpu.dot_dimension_numbers<[1], [0], [0], [1], [0, 0, 1, 1], [], []>} : vector<3x8xf32>, vector<8x324xf32>, vector<3x324xf32> -> vector<3x324xf32>
    %140 = arith.addf %135, %139 : vector<3x324xf32>
    %c6_148 = arith.constant 6 : index
    %c0_149 = arith.constant 0 : index
    %c0_150 = arith.constant 0 : index
    %141 = vector.load %arg6[%c6_148, %c0_149, %c0_150] : memref<9x3x8xf32, #tpu.memory_space<vmem>>, vector<1x3x8xf32>
    %142 = vector.shape_cast %141 : vector<1x3x8xf32> to vector<3x8xf32>
    %c0_151 = arith.constant 0 : index
    %c36_152 = arith.constant 36 : index
    %143 = vector.load %arg12[%c0_151, %c36_152] : memref<8x362xf32, #tpu.memory_space<vmem>>, vector<8x324xf32>
    %cst_153 = arith.constant dense<0.000000e+00> : vector<3x324xf32>
    %144 = tpu.matmul %142, %143, %cst_153 {dimension_numbers = #tpu.dot_dimension_numbers<[1], [0], [0], [1], [0, 0, 1, 1], [], []>} : vector<3x8xf32>, vector<8x324xf32>, vector<3x324xf32> -> vector<3x324xf32>
    %145 = arith.addf %140, %144 : vector<3x324xf32>
    %c7_154 = arith.constant 7 : index
    %c0_155 = arith.constant 0 : index
    %c0_156 = arith.constant 0 : index
    %146 = vector.load %arg6[%c7_154, %c0_155, %c0_156] : memref<9x3x8xf32, #tpu.memory_space<vmem>>, vector<1x3x8xf32>
    %147 = vector.shape_cast %146 : vector<1x3x8xf32> to vector<3x8xf32>
    %c0_157 = arith.constant 0 : index
    %c37_158 = arith.constant 37 : index
    %148 = vector.load %arg12[%c0_157, %c37_158] : memref<8x362xf32, #tpu.memory_space<vmem>>, vector<8x324xf32>
    %cst_159 = arith.constant dense<0.000000e+00> : vector<3x324xf32>
    %149 = tpu.matmul %147, %148, %cst_159 {dimension_numbers = #tpu.dot_dimension_numbers<[1], [0], [0], [1], [0, 0, 1, 1], [], []>} : vector<3x8xf32>, vector<8x324xf32>, vector<3x324xf32> -> vector<3x324xf32>
    %150 = arith.addf %145, %149 : vector<3x324xf32>
    %c8_160 = arith.constant 8 : index
    %c0_161 = arith.constant 0 : index
    %c0_162 = arith.constant 0 : index
    %151 = vector.load %arg6[%c8_160, %c0_161, %c0_162] : memref<9x3x8xf32, #tpu.memory_space<vmem>>, vector<1x3x8xf32>
    %152 = vector.shape_cast %151 : vector<1x3x8xf32> to vector<3x8xf32>
    %c0_163 = arith.constant 0 : index
    %c38_164 = arith.constant 38 : index
    %153 = vector.load %arg12[%c0_163, %c38_164] : memref<8x362xf32, #tpu.memory_space<vmem>>, vector<8x324xf32>
    %cst_165 = arith.constant dense<0.000000e+00> : vector<3x324xf32>
    %154 = tpu.matmul %152, %153, %cst_165 {dimension_numbers = #tpu.dot_dimension_numbers<[1], [0], [0], [1], [0, 0, 1, 1], [], []>} : vector<3x8xf32>, vector<8x324xf32>, vector<3x324xf32> -> vector<3x324xf32>
    %155 = arith.addf %150, %154 : vector<3x324xf32>
    %c0_166 = arith.constant 0 : index
    %c0_167 = arith.constant 0 : index
    %156 = vector.load %arg7[%c0_166, %c0_167] : memref<3x1xf32, #tpu.memory_space<vmem>>, vector<3x1xf32>
    %157 = vector.broadcast %156 : vector<3x1xf32> to vector<3x324xf32>
    %158 = arith.addf %155, %157 : vector<3x324xf32>
    %159 = vector.broadcast %0 : vector<1x324xf32> to vector<3x324xf32>
    %160 = arith.mulf %158, %159 : vector<3x324xf32>
    %c0_168 = arith.constant 0 : index
    %c0_169 = arith.constant 0 : index
    %161 = vector.load %arg8[%c0_168, %c0_169] : memref<36x8xf32, #tpu.memory_space<vmem>>, vector<36x8xf32>
    %cst_170 = arith.constant dense<0.000000e+00> : vector<36x324xf32>
    %162 = tpu.matmul %161, %58, %cst_170 {dimension_numbers = #tpu.dot_dimension_numbers<[1], [0], [0], [1], [0, 0, 1, 1], [], []>} : vector<36x8xf32>, vector<8x324xf32>, vector<36x324xf32> -> vector<36x324xf32>
    %c0_171 = arith.constant 0 : index
    %c0_172 = arith.constant 0 : index
    %163 = vector.load %arg9[%c0_171, %c0_172] : memref<36x1xf32, #tpu.memory_space<vmem>>, vector<36x1xf32>
    %164 = vector.broadcast %163 : vector<36x1xf32> to vector<36x324xf32>
    %165 = arith.addf %162, %164 : vector<36x324xf32>
    %cst_173 = arith.constant 1.000000e-01 : f32
    %166 = vector.broadcast %cst_173 : f32 to vector<36x324xf32>
    %167 = arith.mulf %166, %165 : vector<36x324xf32>
    %c0_174 = arith.constant 0 : index
    %c19_175 = arith.constant 19 : index
    %168 = vector.load %arg12[%c0_174, %c19_175] : memref<8x362xf32, #tpu.memory_space<vmem>>, vector<3x324xf32>
    tpu.vector_store %arg12[%c0_174, %c19_175], %160 {strides = array<i32>} : memref<8x362xf32, #tpu.memory_space<vmem>>, vector<3x324xf32>,
    %c0_176 = arith.constant 0 : index
    %c0_177 = arith.constant 0 : index
    %169 = vector.load %arg12[%c0_176, %c0_177] : memref<8x362xf32, #tpu.memory_space<vmem>>, vector<3x324xf32>
    %c0_178 = arith.constant 0 : index
    %c1_179 = arith.constant 1 : index
    %170 = vector.load %arg12[%c0_178, %c1_179] : memref<8x362xf32, #tpu.memory_space<vmem>>, vector<3x324xf32>
    %c0_180 = arith.constant 0 : index
    %c2_181 = arith.constant 2 : index
    %171 = vector.load %arg12[%c0_180, %c2_181] : memref<8x362xf32, #tpu.memory_space<vmem>>, vector<3x324xf32>
    %c0_182 = arith.constant 0 : index
    %c18_183 = arith.constant 18 : index
    %172 = vector.load %arg12[%c0_182, %c18_183] : memref<8x362xf32, #tpu.memory_space<vmem>>, vector<3x324xf32>
    %c0_184 = arith.constant 0 : index
    %c19_185 = arith.constant 19 : index
    %173 = vector.load %arg12[%c0_184, %c19_185] : memref<8x362xf32, #tpu.memory_space<vmem>>, vector<3x324xf32>
    %c0_186 = arith.constant 0 : index
    %c20_187 = arith.constant 20 : index
    %174 = vector.load %arg12[%c0_186, %c20_187] : memref<8x362xf32, #tpu.memory_space<vmem>>, vector<3x324xf32>
    %c0_188 = arith.constant 0 : index
    %c36_189 = arith.constant 36 : index
    %175 = vector.load %arg12[%c0_188, %c36_189] : memref<8x362xf32, #tpu.memory_space<vmem>>, vector<3x324xf32>
    %c0_190 = arith.constant 0 : index
    %c37_191 = arith.constant 37 : index
    %176 = vector.load %arg12[%c0_190, %c37_191] : memref<8x362xf32, #tpu.memory_space<vmem>>, vector<3x324xf32>
    %c0_192 = arith.constant 0 : index
    %c38_193 = arith.constant 38 : index
    %177 = vector.load %arg12[%c0_192, %c38_193] : memref<8x362xf32, #tpu.memory_space<vmem>>, vector<3x324xf32>
    %178 = vector.extract_strided_slice %167 {offsets = [0, 0], sizes = [1, 324], strides = [1, 1]} : vector<36x324xf32> to vector<1x324xf32>
    %179 = vector.extract_strided_slice %167 {offsets = [1, 0], sizes = [1, 324], strides = [1, 1]} : vector<36x324xf32> to vector<1x324xf32>
    %180 = vector.extract_strided_slice %167 {offsets = [2, 0], sizes = [1, 324], strides = [1, 1]} : vector<36x324xf32> to vector<1x324xf32>
    %181 = vector.extract_strided_slice %167 {offsets = [3, 0], sizes = [1, 324], strides = [1, 1]} : vector<36x324xf32> to vector<1x324xf32>
    %182 = vector.extract_strided_slice %167 {offsets = [4, 0], sizes = [1, 324], strides = [1, 1]} : vector<36x324xf32> to vector<1x324xf32>
    %183 = vector.extract_strided_slice %167 {offsets = [5, 0], sizes = [1, 324], strides = [1, 1]} : vector<36x324xf32> to vector<1x324xf32>
    %184 = vector.extract_strided_slice %167 {offsets = [6, 0], sizes = [1, 324], strides = [1, 1]} : vector<36x324xf32> to vector<1x324xf32>
    %185 = vector.extract_strided_slice %167 {offsets = [7, 0], sizes = [1, 324], strides = [1, 1]} : vector<36x324xf32> to vector<1x324xf32>
    %186 = vector.extract_strided_slice %167 {offsets = [8, 0], sizes = [1, 324], strides = [1, 1]} : vector<36x324xf32> to vector<1x324xf32>
    %187 = arith.maximumf %178, %179 : vector<1x324xf32>
    %188 = arith.maximumf %187, %180 : vector<1x324xf32>
    %189 = arith.maximumf %188, %181 : vector<1x324xf32>
    %190 = arith.maximumf %189, %182 : vector<1x324xf32>
    %191 = arith.maximumf %190, %183 : vector<1x324xf32>
    %192 = arith.maximumf %191, %184 : vector<1x324xf32>
    %193 = arith.maximumf %192, %185 : vector<1x324xf32>
    %194 = arith.maximumf %193, %186 : vector<1x324xf32>
    %195 = arith.subf %178, %194 : vector<1x324xf32>
    %196 = math.exp %195 : vector<1x324xf32>
    %197 = arith.subf %179, %194 : vector<1x324xf32>
    %198 = math.exp %197 : vector<1x324xf32>
    %199 = arith.subf %180, %194 : vector<1x324xf32>
    %200 = math.exp %199 : vector<1x324xf32>
    %201 = arith.subf %181, %194 : vector<1x324xf32>
    %202 = math.exp %201 : vector<1x324xf32>
    %203 = arith.subf %182, %194 : vector<1x324xf32>
    %204 = math.exp %203 : vector<1x324xf32>
    %205 = arith.subf %183, %194 : vector<1x324xf32>
    %206 = math.exp %205 : vector<1x324xf32>
    %207 = arith.subf %184, %194 : vector<1x324xf32>
    %208 = math.exp %207 : vector<1x324xf32>
    %209 = arith.subf %185, %194 : vector<1x324xf32>
    %210 = math.exp %209 : vector<1x324xf32>
    %211 = arith.subf %186, %194 : vector<1x324xf32>
    %212 = math.exp %211 : vector<1x324xf32>
    %213 = arith.addf %196, %198 : vector<1x324xf32>
    %214 = arith.addf %213, %200 : vector<1x324xf32>
    %215 = arith.addf %214, %202 : vector<1x324xf32>
    %216 = arith.addf %215, %204 : vector<1x324xf32>
    %217 = arith.addf %216, %206 : vector<1x324xf32>
    %218 = arith.addf %217, %208 : vector<1x324xf32>
    %219 = arith.addf %218, %210 : vector<1x324xf32>
    %220 = arith.addf %219, %212 : vector<1x324xf32>
    %221 = tpu.reciprocal %220 {approx = true} : vector<1x324xf32> -> vector<1x324xf32>
    %222 = arith.mulf %196, %221 : vector<1x324xf32>
    %223 = vector.broadcast %222 : vector<1x324xf32> to vector<3x324xf32>
    %224 = arith.mulf %223, %169 : vector<3x324xf32>
    %225 = arith.mulf %198, %221 : vector<1x324xf32>
    %226 = vector.broadcast %225 : vector<1x324xf32> to vector<3x324xf32>
    %227 = arith.mulf %226, %170 : vector<3x324xf32>
    %228 = arith.addf %224, %227 : vector<3x324xf32>
    %229 = arith.mulf %200, %221 : vector<1x324xf32>
    %230 = vector.broadcast %229 : vector<1x324xf32> to vector<3x324xf32>
    %231 = arith.mulf %230, %171 : vector<3x324xf32>
    %232 = arith.addf %228, %231 : vector<3x324xf32>
    %233 = arith.mulf %202, %221 : vector<1x324xf32>
    %234 = vector.broadcast %233 : vector<1x324xf32> to vector<3x324xf32>
    %235 = arith.mulf %234, %172 : vector<3x324xf32>
    %236 = arith.addf %232, %235 : vector<3x324xf32>
    %237 = arith.mulf %204, %221 : vector<1x324xf32>
    %238 = vector.broadcast %237 : vector<1x324xf32> to vector<3x324xf32>
    %239 = arith.mulf %238, %173 : vector<3x324xf32>
    %240 = arith.addf %236, %239 : vector<3x324xf32>
    %241 = arith.mulf %206, %221 : vector<1x324xf32>
    %242 = vector.broadcast %241 : vector<1x324xf32> to vector<3x324xf32>
    %243 = arith.mulf %242, %174 : vector<3x324xf32>
    %244 = arith.addf %240, %243 : vector<3x324xf32>
    %245 = arith.mulf %208, %221 : vector<1x324xf32>
    %246 = vector.broadcast %245 : vector<1x324xf32> to vector<3x324xf32>
    %247 = arith.mulf %246, %175 : vector<3x324xf32>
    %248 = arith.addf %244, %247 : vector<3x324xf32>
    %249 = arith.mulf %210, %221 : vector<1x324xf32>
    %250 = vector.broadcast %249 : vector<1x324xf32> to vector<3x324xf32>
    %251 = arith.mulf %250, %176 : vector<3x324xf32>
    %252 = arith.addf %248, %251 : vector<3x324xf32>
    %253 = arith.mulf %212, %221 : vector<1x324xf32>
    %254 = vector.broadcast %253 : vector<1x324xf32> to vector<3x324xf32>
    %255 = arith.mulf %254, %177 : vector<3x324xf32>
    %256 = arith.addf %252, %255 : vector<3x324xf32>
    %c0_194 = arith.constant 0 : index
    %c0_195 = arith.constant 0 : index
    %c0_196 = arith.constant 0 : index
    %257 = vector.load %arg11[%c0_194, %c0_195, %c0_196] : memref<1x12x324xf32, #tpu.memory_space<vmem>>, vector<1x3x324xf32>
    %258 = vector.shape_cast %257 : vector<1x3x324xf32> to vector<3x324xf32>
    %259 = vector.shape_cast %256 : vector<3x324xf32> to vector<1x3x324xf32>
    tpu.vector_store %arg11[%c0_194, %c0_195, %c0_196], %259 {strides = array<i32>} : memref<1x12x324xf32, #tpu.memory_space<vmem>>, vector<1x3x324xf32>,
    %260 = vector.extract_strided_slice %167 {offsets = [9, 0], sizes = [1, 324], strides = [1, 1]} : vector<36x324xf32> to vector<1x324xf32>
    %261 = vector.extract_strided_slice %167 {offsets = [10, 0], sizes = [1, 324], strides = [1, 1]} : vector<36x324xf32> to vector<1x324xf32>
    %262 = vector.extract_strided_slice %167 {offsets = [11, 0], sizes = [1, 324], strides = [1, 1]} : vector<36x324xf32> to vector<1x324xf32>
    %263 = vector.extract_strided_slice %167 {offsets = [12, 0], sizes = [1, 324], strides = [1, 1]} : vector<36x324xf32> to vector<1x324xf32>
    %264 = vector.extract_strided_slice %167 {offsets = [13, 0], sizes = [1, 324], strides = [1, 1]} : vector<36x324xf32> to vector<1x324xf32>
    %265 = vector.extract_strided_slice %167 {offsets = [14, 0], sizes = [1, 324], strides = [1, 1]} : vector<36x324xf32> to vector<1x324xf32>
    %266 = vector.extract_strided_slice %167 {offsets = [15, 0], sizes = [1, 324], strides = [1, 1]} : vector<36x324xf32> to vector<1x324xf32>
    %267 = vector.extract_strided_slice %167 {offsets = [16, 0], sizes = [1, 324], strides = [1, 1]} : vector<36x324xf32> to vector<1x324xf32>
    %268 = vector.extract_strided_slice %167 {offsets = [17, 0], sizes = [1, 324], strides = [1, 1]} : vector<36x324xf32> to vector<1x324xf32>
    %269 = arith.maximumf %260, %261 : vector<1x324xf32>
    %270 = arith.maximumf %269, %262 : vector<1x324xf32>
    %271 = arith.maximumf %270, %263 : vector<1x324xf32>
    %272 = arith.maximumf %271, %264 : vector<1x324xf32>
    %273 = arith.maximumf %272, %265 : vector<1x324xf32>
    %274 = arith.maximumf %273, %266 : vector<1x324xf32>
    %275 = arith.maximumf %274, %267 : vector<1x324xf32>
    %276 = arith.maximumf %275, %268 : vector<1x324xf32>
    %277 = arith.subf %260, %276 : vector<1x324xf32>
    %278 = math.exp %277 : vector<1x324xf32>
    %279 = arith.subf %261, %276 : vector<1x324xf32>
    %280 = math.exp %279 : vector<1x324xf32>
    %281 = arith.subf %262, %276 : vector<1x324xf32>
    %282 = math.exp %281 : vector<1x324xf32>
    %283 = arith.subf %263, %276 : vector<1x324xf32>
    %284 = math.exp %283 : vector<1x324xf32>
    %285 = arith.subf %264, %276 : vector<1x324xf32>
    %286 = math.exp %285 : vector<1x324xf32>
    %287 = arith.subf %265, %276 : vector<1x324xf32>
    %288 = math.exp %287 : vector<1x324xf32>
    %289 = arith.subf %266, %276 : vector<1x324xf32>
    %290 = math.exp %289 : vector<1x324xf32>
    %291 = arith.subf %267, %276 : vector<1x324xf32>
    %292 = math.exp %291 : vector<1x324xf32>
    %293 = arith.subf %268, %276 : vector<1x324xf32>
    %294 = math.exp %293 : vector<1x324xf32>
    %295 = arith.addf %278, %280 : vector<1x324xf32>
    %296 = arith.addf %295, %282 : vector<1x324xf32>
    %297 = arith.addf %296, %284 : vector<1x324xf32>
    %298 = arith.addf %297, %286 : vector<1x324xf32>
    %299 = arith.addf %298, %288 : vector<1x324xf32>
    %300 = arith.addf %299, %290 : vector<1x324xf32>
    %301 = arith.addf %300, %292 : vector<1x324xf32>
    %302 = arith.addf %301, %294 : vector<1x324xf32>
    %303 = tpu.reciprocal %302 {approx = true} : vector<1x324xf32> -> vector<1x324xf32>
    %304 = arith.mulf %278, %303 : vector<1x324xf32>
    %305 = vector.broadcast %304 : vector<1x324xf32> to vector<3x324xf32>
    %306 = arith.mulf %305, %169 : vector<3x324xf32>
    %307 = arith.mulf %280, %303 : vector<1x324xf32>
    %308 = vector.broadcast %307 : vector<1x324xf32> to vector<3x324xf32>
    %309 = arith.mulf %308, %170 : vector<3x324xf32>
    %310 = arith.addf %306, %309 : vector<3x324xf32>
    %311 = arith.mulf %282, %303 : vector<1x324xf32>
    %312 = vector.broadcast %311 : vector<1x324xf32> to vector<3x324xf32>
    %313 = arith.mulf %312, %171 : vector<3x324xf32>
    %314 = arith.addf %310, %313 : vector<3x324xf32>
    %315 = arith.mulf %284, %303 : vector<1x324xf32>
    %316 = vector.broadcast %315 : vector<1x324xf32> to vector<3x324xf32>
    %317 = arith.mulf %316, %172 : vector<3x324xf32>
    %318 = arith.addf %314, %317 : vector<3x324xf32>
    %319 = arith.mulf %286, %303 : vector<1x324xf32>
    %320 = vector.broadcast %319 : vector<1x324xf32> to vector<3x324xf32>
    %321 = arith.mulf %320, %173 : vector<3x324xf32>
    %322 = arith.addf %318, %321 : vector<3x324xf32>
    %323 = arith.mulf %288, %303 : vector<1x324xf32>
    %324 = vector.broadcast %323 : vector<1x324xf32> to vector<3x324xf32>
    %325 = arith.mulf %324, %174 : vector<3x324xf32>
    %326 = arith.addf %322, %325 : vector<3x324xf32>
    %327 = arith.mulf %290, %303 : vector<1x324xf32>
    %328 = vector.broadcast %327 : vector<1x324xf32> to vector<3x324xf32>
    %329 = arith.mulf %328, %175 : vector<3x324xf32>
    %330 = arith.addf %326, %329 : vector<3x324xf32>
    %331 = arith.mulf %292, %303 : vector<1x324xf32>
    %332 = vector.broadcast %331 : vector<1x324xf32> to vector<3x324xf32>
    %333 = arith.mulf %332, %176 : vector<3x324xf32>
    %334 = arith.addf %330, %333 : vector<3x324xf32>
    %335 = arith.mulf %294, %303 : vector<1x324xf32>
    %336 = vector.broadcast %335 : vector<1x324xf32> to vector<3x324xf32>
    %337 = arith.mulf %336, %177 : vector<3x324xf32>
    %338 = arith.addf %334, %337 : vector<3x324xf32>
    %c0_197 = arith.constant 0 : index
    %c3_198 = arith.constant 3 : index
    %c0_199 = arith.constant 0 : index
    %339 = vector.load %arg11[%c0_197, %c3_198, %c0_199] : memref<1x12x324xf32, #tpu.memory_space<vmem>>, vector<1x3x324xf32>
    %340 = vector.shape_cast %339 : vector<1x3x324xf32> to vector<3x324xf32>
    %341 = vector.shape_cast %338 : vector<3x324xf32> to vector<1x3x324xf32>
    tpu.vector_store %arg11[%c0_197, %c3_198, %c0_199], %341 {strides = array<i32>} : memref<1x12x324xf32, #tpu.memory_space<vmem>>, vector<1x3x324xf32>,
    %342 = vector.extract_strided_slice %167 {offsets = [18, 0], sizes = [1, 324], strides = [1, 1]} : vector<36x324xf32> to vector<1x324xf32>
    %343 = vector.extract_strided_slice %167 {offsets = [19, 0], sizes = [1, 324], strides = [1, 1]} : vector<36x324xf32> to vector<1x324xf32>
    %344 = vector.extract_strided_slice %167 {offsets = [20, 0], sizes = [1, 324], strides = [1, 1]} : vector<36x324xf32> to vector<1x324xf32>
    %345 = vector.extract_strided_slice %167 {offsets = [21, 0], sizes = [1, 324], strides = [1, 1]} : vector<36x324xf32> to vector<1x324xf32>
    %346 = vector.extract_strided_slice %167 {offsets = [22, 0], sizes = [1, 324], strides = [1, 1]} : vector<36x324xf32> to vector<1x324xf32>
    %347 = vector.extract_strided_slice %167 {offsets = [23, 0], sizes = [1, 324], strides = [1, 1]} : vector<36x324xf32> to vector<1x324xf32>
    %348 = vector.extract_strided_slice %167 {offsets = [24, 0], sizes = [1, 324], strides = [1, 1]} : vector<36x324xf32> to vector<1x324xf32>
    %349 = vector.extract_strided_slice %167 {offsets = [25, 0], sizes = [1, 324], strides = [1, 1]} : vector<36x324xf32> to vector<1x324xf32>
    %350 = vector.extract_strided_slice %167 {offsets = [26, 0], sizes = [1, 324], strides = [1, 1]} : vector<36x324xf32> to vector<1x324xf32>
    %351 = arith.maximumf %342, %343 : vector<1x324xf32>
    %352 = arith.maximumf %351, %344 : vector<1x324xf32>
    %353 = arith.maximumf %352, %345 : vector<1x324xf32>
    %354 = arith.maximumf %353, %346 : vector<1x324xf32>
    %355 = arith.maximumf %354, %347 : vector<1x324xf32>
    %356 = arith.maximumf %355, %348 : vector<1x324xf32>
    %357 = arith.maximumf %356, %349 : vector<1x324xf32>
    %358 = arith.maximumf %357, %350 : vector<1x324xf32>
    %359 = arith.subf %342, %358 : vector<1x324xf32>
    %360 = math.exp %359 : vector<1x324xf32>
    %361 = arith.subf %343, %358 : vector<1x324xf32>
    %362 = math.exp %361 : vector<1x324xf32>
    %363 = arith.subf %344, %358 : vector<1x324xf32>
    %364 = math.exp %363 : vector<1x324xf32>
    %365 = arith.subf %345, %358 : vector<1x324xf32>
    %366 = math.exp %365 : vector<1x324xf32>
    %367 = arith.subf %346, %358 : vector<1x324xf32>
    %368 = math.exp %367 : vector<1x324xf32>
    %369 = arith.subf %347, %358 : vector<1x324xf32>
    %370 = math.exp %369 : vector<1x324xf32>
    %371 = arith.subf %348, %358 : vector<1x324xf32>
    %372 = math.exp %371 : vector<1x324xf32>
    %373 = arith.subf %349, %358 : vector<1x324xf32>
    %374 = math.exp %373 : vector<1x324xf32>
    %375 = arith.subf %350, %358 : vector<1x324xf32>
    %376 = math.exp %375 : vector<1x324xf32>
    %377 = arith.addf %360, %362 : vector<1x324xf32>
    %378 = arith.addf %377, %364 : vector<1x324xf32>
    %379 = arith.addf %378, %366 : vector<1x324xf32>
    %380 = arith.addf %379, %368 : vector<1x324xf32>
    %381 = arith.addf %380, %370 : vector<1x324xf32>
    %382 = arith.addf %381, %372 : vector<1x324xf32>
    %383 = arith.addf %382, %374 : vector<1x324xf32>
    %384 = arith.addf %383, %376 : vector<1x324xf32>
    %385 = tpu.reciprocal %384 {approx = true} : vector<1x324xf32> -> vector<1x324xf32>
    %386 = arith.mulf %360, %385 : vector<1x324xf32>
    %387 = vector.broadcast %386 : vector<1x324xf32> to vector<3x324xf32>
    %388 = arith.mulf %387, %169 : vector<3x324xf32>
    %389 = arith.mulf %362, %385 : vector<1x324xf32>
    %390 = vector.broadcast %389 : vector<1x324xf32> to vector<3x324xf32>
    %391 = arith.mulf %390, %170 : vector<3x324xf32>
    %392 = arith.addf %388, %391 : vector<3x324xf32>
    %393 = arith.mulf %364, %385 : vector<1x324xf32>
    %394 = vector.broadcast %393 : vector<1x324xf32> to vector<3x324xf32>
    %395 = arith.mulf %394, %171 : vector<3x324xf32>
    %396 = arith.addf %392, %395 : vector<3x324xf32>
    %397 = arith.mulf %366, %385 : vector<1x324xf32>
    %398 = vector.broadcast %397 : vector<1x324xf32> to vector<3x324xf32>
    %399 = arith.mulf %398, %172 : vector<3x324xf32>
    %400 = arith.addf %396, %399 : vector<3x324xf32>
    %401 = arith.mulf %368, %385 : vector<1x324xf32>
    %402 = vector.broadcast %401 : vector<1x324xf32> to vector<3x324xf32>
    %403 = arith.mulf %402, %173 : vector<3x324xf32>
    %404 = arith.addf %400, %403 : vector<3x324xf32>
    %405 = arith.mulf %370, %385 : vector<1x324xf32>
    %406 = vector.broadcast %405 : vector<1x324xf32> to vector<3x324xf32>
    %407 = arith.mulf %406, %174 : vector<3x324xf32>
    %408 = arith.addf %404, %407 : vector<3x324xf32>
    %409 = arith.mulf %372, %385 : vector<1x324xf32>
    %410 = vector.broadcast %409 : vector<1x324xf32> to vector<3x324xf32>
    %411 = arith.mulf %410, %175 : vector<3x324xf32>
    %412 = arith.addf %408, %411 : vector<3x324xf32>
    %413 = arith.mulf %374, %385 : vector<1x324xf32>
    %414 = vector.broadcast %413 : vector<1x324xf32> to vector<3x324xf32>
    %415 = arith.mulf %414, %176 : vector<3x324xf32>
    %416 = arith.addf %412, %415 : vector<3x324xf32>
    %417 = arith.mulf %376, %385 : vector<1x324xf32>
    %418 = vector.broadcast %417 : vector<1x324xf32> to vector<3x324xf32>
    %419 = arith.mulf %418, %177 : vector<3x324xf32>
    %420 = arith.addf %416, %419 : vector<3x324xf32>
    %c0_200 = arith.constant 0 : index
    %c6_201 = arith.constant 6 : index
    %c0_202 = arith.constant 0 : index
    %421 = vector.load %arg11[%c0_200, %c6_201, %c0_202] : memref<1x12x324xf32, #tpu.memory_space<vmem>>, vector<1x3x324xf32>
    %422 = vector.shape_cast %421 : vector<1x3x324xf32> to vector<3x324xf32>
    %423 = vector.shape_cast %420 : vector<3x324xf32> to vector<1x3x324xf32>
    tpu.vector_store %arg11[%c0_200, %c6_201, %c0_202], %423 {strides = array<i32>} : memref<1x12x324xf32, #tpu.memory_space<vmem>>, vector<1x3x324xf32>,
    %424 = vector.extract_strided_slice %167 {offsets = [27, 0], sizes = [1, 324], strides = [1, 1]} : vector<36x324xf32> to vector<1x324xf32>
    %425 = vector.extract_strided_slice %167 {offsets = [28, 0], sizes = [1, 324], strides = [1, 1]} : vector<36x324xf32> to vector<1x324xf32>
    %426 = vector.extract_strided_slice %167 {offsets = [29, 0], sizes = [1, 324], strides = [1, 1]} : vector<36x324xf32> to vector<1x324xf32>
    %427 = vector.extract_strided_slice %167 {offsets = [30, 0], sizes = [1, 324], strides = [1, 1]} : vector<36x324xf32> to vector<1x324xf32>
    %428 = vector.extract_strided_slice %167 {offsets = [31, 0], sizes = [1, 324], strides = [1, 1]} : vector<36x324xf32> to vector<1x324xf32>
    %429 = vector.extract_strided_slice %167 {offsets = [32, 0], sizes = [1, 324], strides = [1, 1]} : vector<36x324xf32> to vector<1x324xf32>
    %430 = vector.extract_strided_slice %167 {offsets = [33, 0], sizes = [1, 324], strides = [1, 1]} : vector<36x324xf32> to vector<1x324xf32>
    %431 = vector.extract_strided_slice %167 {offsets = [34, 0], sizes = [1, 324], strides = [1, 1]} : vector<36x324xf32> to vector<1x324xf32>
    %432 = vector.extract_strided_slice %167 {offsets = [35, 0], sizes = [1, 324], strides = [1, 1]} : vector<36x324xf32> to vector<1x324xf32>
    %433 = arith.maximumf %424, %425 : vector<1x324xf32>
    %434 = arith.maximumf %433, %426 : vector<1x324xf32>
    %435 = arith.maximumf %434, %427 : vector<1x324xf32>
    %436 = arith.maximumf %435, %428 : vector<1x324xf32>
    %437 = arith.maximumf %436, %429 : vector<1x324xf32>
    %438 = arith.maximumf %437, %430 : vector<1x324xf32>
    %439 = arith.maximumf %438, %431 : vector<1x324xf32>
    %440 = arith.maximumf %439, %432 : vector<1x324xf32>
    %441 = arith.subf %424, %440 : vector<1x324xf32>
    %442 = math.exp %441 : vector<1x324xf32>
    %443 = arith.subf %425, %440 : vector<1x324xf32>
    %444 = math.exp %443 : vector<1x324xf32>
    %445 = arith.subf %426, %440 : vector<1x324xf32>
    %446 = math.exp %445 : vector<1x324xf32>
    %447 = arith.subf %427, %440 : vector<1x324xf32>
    %448 = math.exp %447 : vector<1x324xf32>
    %449 = arith.subf %428, %440 : vector<1x324xf32>
    %450 = math.exp %449 : vector<1x324xf32>
    %451 = arith.subf %429, %440 : vector<1x324xf32>
    %452 = math.exp %451 : vector<1x324xf32>
    %453 = arith.subf %430, %440 : vector<1x324xf32>
    %454 = math.exp %453 : vector<1x324xf32>
    %455 = arith.subf %431, %440 : vector<1x324xf32>
    %456 = math.exp %455 : vector<1x324xf32>
    %457 = arith.subf %432, %440 : vector<1x324xf32>
    %458 = math.exp %457 : vector<1x324xf32>
    %459 = arith.addf %442, %444 : vector<1x324xf32>
    %460 = arith.addf %459, %446 : vector<1x324xf32>
    %461 = arith.addf %460, %448 : vector<1x324xf32>
    %462 = arith.addf %461, %450 : vector<1x324xf32>
    %463 = arith.addf %462, %452 : vector<1x324xf32>
    %464 = arith.addf %463, %454 : vector<1x324xf32>
    %465 = arith.addf %464, %456 : vector<1x324xf32>
    %466 = arith.addf %465, %458 : vector<1x324xf32>
    %467 = tpu.reciprocal %466 {approx = true} : vector<1x324xf32> -> vector<1x324xf32>
    %468 = arith.mulf %442, %467 : vector<1x324xf32>
    %469 = vector.broadcast %468 : vector<1x324xf32> to vector<3x324xf32>
    %470 = arith.mulf %469, %169 : vector<3x324xf32>
    %471 = arith.mulf %444, %467 : vector<1x324xf32>
    %472 = vector.broadcast %471 : vector<1x324xf32> to vector<3x324xf32>
    %473 = arith.mulf %472, %170 : vector<3x324xf32>
    %474 = arith.addf %470, %473 : vector<3x324xf32>
    %475 = arith.mulf %446, %467 : vector<1x324xf32>
    %476 = vector.broadcast %475 : vector<1x324xf32> to vector<3x324xf32>
    %477 = arith.mulf %476, %171 : vector<3x324xf32>
    %478 = arith.addf %474, %477 : vector<3x324xf32>
    %479 = arith.mulf %448, %467 : vector<1x324xf32>
    %480 = vector.broadcast %479 : vector<1x324xf32> to vector<3x324xf32>
    %481 = arith.mulf %480, %172 : vector<3x324xf32>
    %482 = arith.addf %478, %481 : vector<3x324xf32>
    %483 = arith.mulf %450, %467 : vector<1x324xf32>
    %484 = vector.broadcast %483 : vector<1x324xf32> to vector<3x324xf32>
    %485 = arith.mulf %484, %173 : vector<3x324xf32>
    %486 = arith.addf %482, %485 : vector<3x324xf32>
    %487 = arith.mulf %452, %467 : vector<1x324xf32>
    %488 = vector.broadcast %487 : vector<1x324xf32> to vector<3x324xf32>
    %489 = arith.mulf %488, %174 : vector<3x324xf32>
    %490 = arith.addf %486, %489 : vector<3x324xf32>
    %491 = arith.mulf %454, %467 : vector<1x324xf32>
    %492 = vector.broadcast %491 : vector<1x324xf32> to vector<3x324xf32>
    %493 = arith.mulf %492, %175 : vector<3x324xf32>
    %494 = arith.addf %490, %493 : vector<3x324xf32>
    %495 = arith.mulf %456, %467 : vector<1x324xf32>
    %496 = vector.broadcast %495 : vector<1x324xf32> to vector<3x324xf32>
    %497 = arith.mulf %496, %176 : vector<3x324xf32>
    %498 = arith.addf %494, %497 : vector<3x324xf32>
    %499 = arith.mulf %458, %467 : vector<1x324xf32>
    %500 = vector.broadcast %499 : vector<1x324xf32> to vector<3x324xf32>
    %501 = arith.mulf %500, %177 : vector<3x324xf32>
    %502 = arith.addf %498, %501 : vector<3x324xf32>
    %c0_203 = arith.constant 0 : index
    %c9 = arith.constant 9 : index
    %c0_204 = arith.constant 0 : index
    %503 = vector.load %arg11[%c0_203, %c9, %c0_204] : memref<1x12x324xf32, #tpu.memory_space<vmem>>, vector<1x3x324xf32>
    %504 = vector.shape_cast %503 : vector<1x3x324xf32> to vector<3x324xf32>
    %505 = vector.shape_cast %502 : vector<3x324xf32> to vector<1x3x324xf32>
    tpu.vector_store %arg11[%c0_203, %c9, %c0_204], %505 {strides = array<i32>} : memref<1x12x324xf32, #tpu.memory_space<vmem>>, vector<1x3x324xf32>,
    return
  }
  func.func @transform_0(%arg0: i32) -> (i32, i32, i32) {
    %c0_i32 = arith.constant 0 : i32
    %c0_i32_0 = arith.constant 0 : i32
    %c0_i32_1 = arith.constant 0 : i32
    return %arg0, %c0_i32, %c0_i32_0 : i32, i32, i32
  }
  func.func @transform_1(%arg0: i32) -> (i32, i32, i32) {
    %c0_i32 = arith.constant 0 : i32
    %c0_i32_0 = arith.constant 0 : i32
    %c0_i32_1 = arith.constant 0 : i32
    %c0_i32_2 = arith.constant 0 : i32
    return %c0_i32, %c0_i32_0, %c0_i32_1 : i32, i32, i32
  }
  func.func @transform_2(%arg0: i32) -> (i32, i32) {
    %c0_i32 = arith.constant 0 : i32
    %c0_i32_0 = arith.constant 0 : i32
    %c0_i32_1 = arith.constant 0 : i32
    return %c0_i32, %c0_i32_0 : i32, i32
  }
  func.func @transform_3(%arg0: i32) -> (i32, i32, i32) {
    %c0_i32 = arith.constant 0 : i32
    %c0_i32_0 = arith.constant 0 : i32
    %c0_i32_1 = arith.constant 0 : i32
    %c0_i32_2 = arith.constant 0 : i32
    return %c0_i32, %c0_i32_0, %c0_i32_1 : i32, i32, i32
  }
  func.func @transform_4(%arg0: i32) -> (i32, i32) {
    %c0_i32 = arith.constant 0 : i32
    %c0_i32_0 = arith.constant 0 : i32
    %c0_i32_1 = arith.constant 0 : i32
    return %c0_i32, %c0_i32_0 : i32, i32
  }
  func.func @transform_5(%arg0: i32) -> (i32, i32, i32) {
    %c0_i32 = arith.constant 0 : i32
    %c0_i32_0 = arith.constant 0 : i32
    %c0_i32_1 = arith.constant 0 : i32
    %c0_i32_2 = arith.constant 0 : i32
    return %c0_i32, %c0_i32_0, %c0_i32_1 : i32, i32, i32
  }
  func.func @transform_6(%arg0: i32) -> (i32, i32) {
    %c0_i32 = arith.constant 0 : i32
    %c0_i32_0 = arith.constant 0 : i32
    %c0_i32_1 = arith.constant 0 : i32
    return %c0_i32, %c0_i32_0 : i32, i32
  }
  func.func @transform_7(%arg0: i32) -> (i32, i32) {
    %c0_i32 = arith.constant 0 : i32
    %c0_i32_0 = arith.constant 0 : i32
    %c0_i32_1 = arith.constant 0 : i32
    return %c0_i32, %c0_i32_0 : i32, i32
  }
  func.func @transform_8(%arg0: i32) -> (i32, i32) {
    %c0_i32 = arith.constant 0 : i32
    %c0_i32_0 = arith.constant 0 : i32
    %c0_i32_1 = arith.constant 0 : i32
    return %c0_i32, %c0_i32_0 : i32, i32
  }
  func.func @transform_9(%arg0: i32) -> (i32, i32) {
    %c0_i32 = arith.constant 0 : i32
    %c0_i32_0 = arith.constant 0 : i32
    %c0_i32_1 = arith.constant 0 : i32
    return %c0_i32, %c0_i32_0 : i32, i32
  }
  func.func @transform_10(%arg0: i32) -> (i32, i32, i32) {
    %c0_i32 = arith.constant 0 : i32
    %c0_i32_0 = arith.constant 0 : i32
    %c0_i32_1 = arith.constant 0 : i32
    return %arg0, %c0_i32, %c0_i32_0 : i32, i32, i32
  }
}

</mosaic_0001>

<bundles_post_ra>
// kernel: tpu_custom_call.1
= control target key start
LH: loop header
LB: loop body
LE: loop exit
PB: predicated region body
PF: predicated region fallthrough
CT: control target
= control target key end

     0   :  { %s8222_s13 = smov 0   ;;  %s10552_s0 = inlined_call_operand.vmem [shape: f32[2,4,324], index: 0, kind: input, shape index: {}]   ;;  %s10553_s1 = inlined_call_operand.vmem [shape: f32[9,16,4], index: 1, kind: input, shape index: {}]   ;;  %s10554_s2 = inlined_call_operand.vmem [shape: f32[16,1], index: 2, kind: input, shape index: {}]   ;;  %s10555_s3 = inlined_call_operand.vmem [shape: f32[9,8,8], index: 3, kind: input, shape index: {}]   ;;  %s10556_s4 = inlined_call_operand.vmem [shape: f32[8,1], index: 4, kind: input, shape index: {}]   ;;  %s10557_s5 = inlined_call_operand.vmem [shape: f32[9,3,8], index: 5, kind: input, shape index: {}]   ;;  %s10558_s6 = inlined_call_operand.vmem [shape: f32[3,1], index: 6, kind: input, shape index: {}]   ;;  %s10559_s7 = inlined_call_operand.vmem [shape: f32[36,8], index: 7, kind: input, shape index: {}]   ;;  %s10560_s8 = inlined_call_operand.vmem [shape: f32[36,1], index: 8, kind: input, shape index: {}]   ;;  %s10561_s9 = inlined_call_operand.vmem [shape: f32[1,324], index: 9, kind: input, shape index: {}]   ;;  %s10562_s10 = inlined_call_operand.vmem [shape: f32[2,12,324], index: 10, kind: output, shape index: {}]  }
   0x1 LB: > { %s7509_s14 = sadd.s32 4294967295, %s8153_s13   ;;  %p7513_p0 = scmp.ge.s32.totalorder %s8153_s13, 1  ;;  %s8153_s13 = sphi %s8222_s13, %s20_s13  }
   0x2   : > { %p312_p1 = scmp.lt.s32.totalorder %s8153_s13, 3 }
   0x4   : > { %p313_p2 = pnand %p7513_p0, %p312_p1 }
   0x6   : > { %316 = sbr.rel (%p313_p2) target bundleno = 1858 (0x742), region = 60 }
   0xb   : > { %p350_p3 = scmp.lt.s32.totalorder %s7509_s14, 1  ;;  %vm363_vm0 = vcmask 867328   ;;  %v8155_v0 = vmov 0.0   ;;  %s8156_s19 = smov 19   ;;  %vm382_vm1 = vcmask 1043608   ;;  %v8246_v5 = vld [vmem:[%s10553_s1 + $0x10] sm:$0xff] }
   0xc   : > { %361 = vst [vmem:[#allocation2] sm:$0xff] %v8155_v0  ;;  %362 = vst [vmem:[#allocation2 + $0x8] sm:$0xff] %v8155_v0  ;;  %485 = vmatprep.mubr.f32.mxu0 %v8155_v0  ;;  %vm407_vm2 = vcmask 31744   ;;  %vm376_vm3 = vcmask 154624   ;;  %vm385_vm4 = vcmask 707584   ;;  %s8157_s22 = smov 127  }
   0xd   : > { %364 = vst.msk [vmem:[#allocation2 + $0x10] sm:$0xff] %vm363_vm0, %v8155_v0  ;;  %s11097_s14 = smov (!%p350_p3, %s7509_s14), 1  ;;  %7730 = vmatprep.mubr.msk.f32.mxu1 %vm407_vm2, %v8246_v5  ;;  %s8158_s23 = smov 126   ;;  %v2011_v13 = vld [vmem:[%s10554_s2] sm:$0xff]  ;;  %v8165_v14 = vmov 0   ;;  %vm414_vm5 = vcmask 1043456  }
   0xe   : > { %s7880_s15 = smul.u32 12, %s11097_s14  ;;  %s8159_s24 = smov 110   ;;  %7902 = vset.pattern.permute.xlu1 %v8165_v14  ;;  %7903 = vset.pattern.permute.xlu0 %v8165_v14  ;;  %vm404_vm6 = vcmask 1039360   ;;  %v7517_v17 = vld [vmem:[%s10553_s1 + $0x18] sm:$0xff]  ;;  %v387_v21 = vld [vmem:[%s10553_s1] sm:$0xff]  ;;  %vm746_vm7 = vcmask 1031168  }
   0xf   : > { %s8160_s25 = smov 109   ;;  %s8161_s26 = smov 108   ;;  %v388_v26 = vld [vmem:[%s10553_s1 + $0x8] sm:$0xff]  ;;  %vm928_vm8 = vcmask 900096   ;;  %v7532_v27 = vld [vmem:[%s10553_s1 + $0x20] sm:$0xff]  ;;  %v7541_v36 = vld [vmem:[%s10553_s1 + $0x30] sm:$0xff] }
  0x10   : > { %s354_s18 = scalar_lea.vmem %s10552_s0, %s7880_s15  ;;  %s8162_s27 = smov 92   ;;  %v7533_v31 = vld [vmem:[%s10553_s1 + $0x28] sm:$0xff]  ;;  %vm1110_vm9 = vcmask 891904   ;;  %v7542_v40 = vld [vmem:[%s10553_s1 + $0x38] sm:$0xff]  ;;  %vm1292_vm10 = vcmask 883712   ;;  %v7550_v41 = vld [vmem:[%s10553_s1 + $0x40] sm:$0xff] }
  0x11   : > { %v365_v1 = vld [vmem:[%s354_s18] sm:$0xff]  ;;  %v366_v2 = vld [vmem:[%s354_s18 + $0x8] sm:$0xf]  ;;  %s10563_s28 = smov 91   ;;  %s8164_s29 = smov 90   ;;  %v7559_v50 = vld [vmem:[%s10553_s1 + $0x50] sm:$0xff] }
  0x12   : > { %370 = vrot.lane.b32.xlu0 %v365_v1, %s8156_s19  ;;  %v369_v3 = vcombine.high %v365_v1, %v365_v1  ;;  %374 = vrot.lane.b32.xlu1 %v366_v2, %s8156_s19  ;;  %v7551_v45 = vld [vmem:[%s10553_s1 + $0x48] sm:$0xff]  ;;  %vm1474_vm11 = vcmask 752640   ;;  %v7560_v54 = vld [vmem:[%s10553_s1 + $0x58] sm:$0xff]  ;;  %vm1656_vm12 = vcmask 744448   ;;  %vm1838_vm13 = vcmask 736256  }
  0x13   : > { %v7568_v55 = vld [vmem:[%s10553_s1 + $0x60] sm:$0xff]  ;;  %v7569_v59 = vld [vmem:[%s10553_s1 + $0x68] sm:$0xff]  ;;  %v7577_v63 = vld [vmem:[%s10553_s1 + $0x70] sm:$0xff]  ;;  %vm2071_vm14 = vcmask 1047704   ;;  %vm2074_vm15 = vcmask 711680   ;;  %vm8166_vm0 = vmmov 0  }
  0x16   : > { %372 = vrot.lane.b32.xlu0 %v369_v3, %s8156_s19 }
  0x84   : > { %v371_v4 = vpop.permute.xlu0 %370  ;;  %v375_v6 = vpop.permute.xlu1 %374 }
  0x85   : > { %383 = vst.msk [vmem:[#allocation2] sm:$0xf] %vm382_vm1, %v371_v4  ;;  %vm2096_vm1 = vcmask 64512  }
  0x88   : > { %v373_v7 = vpop.permute.xlu0 %372 }
  0x89   : > { %v377_v8 = vsel %vm376_vm3, %v371_v4, %v373_v7  ;;  %v378_v9 = vsel %vm376_vm3, %v373_v7, %v375_v6  ;;  %v7578_v4 = vld [vmem:[%s10553_s1 + $0x78] sm:$0xff]  ;;  %v7587_v7 = vld [vmem:[%s10553_s1 + $0x88] sm:$0xff] }
  0x8a   : > { %384 = vst [vmem:[#allocation2 + $0x8] sm:$0xf] %v377_v8  ;;  %386 = vst.msk [vmem:[#allocation2 + $0x10] sm:$0xf] %vm385_vm4, %v378_v9  ;;  %vm5244_vm4 = vcmask 706560  }
  0x8c   : > { %v389_v12 = vld [vmem:[#allocation2] sm:$0xf] }
  0x91   : > { %v8252_v10 = vld [vmem:[#allocation2 + $0x10] sm:$0xf]  ;;  %v390_v11 = vld [vmem:[#allocation2 + $0x8] sm:$0xf] }
  0x92   : > { %402 = vrot.lane.b32.xlu0 %v8252_v10, %s8157_s22  ;;  %400 = vrot.lane.b32.xlu1 %v390_v11, %s8157_s22 }
  0x96   : > { %740 = vrot.lane.b32.xlu0 %v389_v12, %s8158_s23  ;;  %398 = vrot.lane.b32.xlu1 %v389_v12, %s8157_s22 }
  0x9a   : > { %742 = vrot.lane.b32.xlu0 %v390_v11, %s8158_s23  ;;  %744 = vrot.lane.b32.xlu1 %v8252_v10, %s8158_s23 }
  0x9e   : > { %926 = vrot.lane.b32.xlu0 %v8252_v10, %s8159_s24  ;;  %924 = vrot.lane.b32.xlu1 %v390_v11, %s8159_s24 }
  0xa2   : > { %1104 = vrot.lane.b32.xlu0 %v389_v12, %s8160_s25  ;;  %922 = vrot.lane.b32.xlu1 %v389_v12, %s8159_s24 }
  0xa6   : > { %1106 = vrot.lane.b32.xlu0 %v390_v11, %s8160_s25  ;;  %1108 = vrot.lane.b32.xlu1 %v8252_v10, %s8160_s25 }
  0xaa   : > { %1290 = vrot.lane.b32.xlu0 %v8252_v10, %s8161_s26  ;;  %1288 = vrot.lane.b32.xlu1 %v390_v11, %s8161_s26 }
  0xae   : > { %1468 = vrot.lane.b32.xlu0 %v389_v12, %s8162_s27  ;;  %1286 = vrot.lane.b32.xlu1 %v389_v12, %s8161_s26 }
  0xb2   : > { %1470 = vrot.lane.b32.xlu0 %v390_v11, %s8162_s27  ;;  %1472 = vrot.lane.b32.xlu1 %v8252_v10, %s8162_s27 }
  0xb6   : > { %1654 = vrot.lane.b32.xlu0 %v8252_v10, %s10563_s28  ;;  %1652 = vrot.lane.b32.xlu1 %v390_v11, %s10563_s28 }
  0xba   : > { %1834 = vrot.lane.b32.xlu0 %v390_v11, %s8164_s29  ;;  %1650 = vrot.lane.b32.xlu1 %v389_v12, %s10563_s28 }
  0xbe   : > { %1832 = vrot.lane.b32.xlu0 %v389_v12, %s8164_s29  ;;  %1836 = vrot.lane.b32.xlu1 %v8252_v10, %s8164_s29 }
  0xc2   : > { %2015 = vperm.xlu1 %7902, %v2011_v13  }
 0x104   : > { %v403_v15 = vpop.permute.xlu0 %402  ;;  %v401_v16 = vpop.permute.xlu1 %400 }
 0x105   : > { %7728 = vmatprep.subr.msk.mxu1 %vm414_vm5, %v403_v15  ;;  %v406_v18 = vsel %vm404_vm6, %v401_v16, %v403_v15 }
 0x106   : > { %7518 = vmatprep.subr.msk.mxu0 %vm414_vm5, %v406_v18  ;;  %7729 = vmatpush3.msk.msra.mxu1 %vm414_vm5, %v403_v15 }
 0x107   : > { %7731 = vmatmul.mubr.msk.f32.vlgmr.msra.gmra.mxu1 %vm407_vm2, %v7517_v17  ;;  %7525 = vmatprep.subr.msk.mxu1 %vm414_vm5, %v390_v11 }
 0x108   : > { %v741_v19 = vpop.permute.xlu0 %740  ;;  %v399_v20 = vpop.permute.xlu1 %398  ;;  %7526 = vmatpush1.msk.msra.mxu1 %vm414_vm5, %v389_v12  ;;  %649 = vmatprep.mubr.f32.mxu1 %v8155_v0 }
 0x109   : > { %v405_v22 = vsel %vm404_vm6, %v399_v20, %v401_v16 }
 0x10a   : > { %7519 = vmatpush1.msk.msra.mxu0 %vm414_vm5, %v405_v22 }
 0x10b   : > { %7520 = vmatmul.mubr.msk.f32.vlgmr.msra.gmra.mxu0 %vm407_vm2, %v8246_v5  ;;  %7527 = vmatmul.mubr.msk.f32.vlgmr.msra.gmra.mxu1 %vm407_vm2, %v387_v21  ;;  %v7586_v5 = vld [vmem:[%s10553_s1 + $0x80] sm:$0xff] }
 0x10c   : > { %7733 = vmatprep.subr.msk.mxu0 %vm414_vm5, %v8252_v10  ;;  %v743_v23 = vpop.permute.xlu0 %742  ;;  %v745_v24 = vpop.permute.xlu1 %744  ;;  %491 = vmatprep.mubr.f32.mxu0 %v8155_v0 }
 0x10d   : > { %7734 = vmatpush3.msk.msra.mxu0 %vm414_vm5, %v8252_v10  ;;  %7738 = vmatprep.subr.msk.mxu1 %vm414_vm5, %v745_v24  ;;  %v748_v25 = vsel %vm746_vm7, %v743_v23, %v745_v24  ;;  %v747_v32 = vsel %vm746_vm7, %v741_v19, %v743_v23 }
 0x10e   : > { %655 = vmatprep.mubr.f32.mxu1 %v8155_v0  ;;  %7534 = vmatprep.subr.msk.mxu0 %vm414_vm5, %v748_v25 }
 0x10f   : > { %7739 = vmatpush3.msk.msra.mxu1 %vm414_vm5, %v745_v24  ;;  %7521 = vmatmul.mubr.msk.f32.gmra.mxu0 %vm407_vm2, %v7517_v17 }
 0x110   : > { %7528 = vmatmul.mubr.msk.f32.gmra.mxu1 %vm407_vm2, %v388_v26  ;;  %v927_v28 = vpop.permute.xlu0 %926  ;;  %v925_v29 = vpop.permute.xlu1 %924  ;;  %7735 = vmatprep.mubr.msk.f32.mxu0 %vm407_vm2, %v387_v21 }
 0x111   : > { %v930_v30 = vsel %vm928_vm8, %v925_v29, %v927_v28  ;;  %7740 = vmatprep.mubr.msk.f32.mxu1 %vm407_vm2, %v7532_v27 }
 0x112   : > { %7543 = vmatprep.subr.msk.mxu1 %vm414_vm5, %v930_v30 }
 0x113   : > { %7736 = vmatmul.mubr.msk.f32.vlgmr.msra.gmra.mxu0 %vm407_vm2, %v388_v26 }
 0x114   : > { %7535 = vmatpush1.msk.msra.mxu0 %vm414_vm5, %v747_v32  ;;  %v1105_v33 = vpop.permute.xlu0 %1104  ;;  %v923_v34 = vpop.permute.xlu1 %922  ;;  %7741 = vmatmul.mubr.msk.f32.vlgmr.msra.gmra.mxu1 %vm407_vm2, %v7533_v31 }
 0x115   : > { %7743 = vmatprep.subr.msk.mxu0 %vm414_vm5, %v927_v28  ;;  %v929_v35 = vsel %vm928_vm8, %v923_v34, %v925_v29  ;;  %825 = vmatprep.mubr.f32.mxu0 %v8155_v0 }
 0x116   : > { %7544 = vmatpush1.msk.msra.mxu1 %vm414_vm5, %v929_v35  ;;  %1007 = vmatprep.mubr.f32.mxu1 %v8155_v0 }
 0x117   : > { %7536 = vmatmul.mubr.msk.f32.vlgmr.msra.gmra.mxu0 %vm407_vm2, %v7532_v27 }
 0x118   : > { %7744 = vmatpush3.msk.msra.mxu0 %vm414_vm5, %v927_v28  ;;  %v1107_v37 = vpop.permute.xlu0 %1106  ;;  %v1109_v38 = vpop.permute.xlu1 %1108  ;;  %7545 = vmatmul.mubr.msk.f32.vlgmr.msra.gmra.mxu1 %vm407_vm2, %v7541_v36 }
 0x119   : > { %7748 = vmatprep.subr.msk.mxu1 %vm414_vm5, %v1109_v38  ;;  %831 = vmatprep.mubr.f32.mxu0 %v8155_v0  ;;  %v1112_v39 = vsel %vm1110_vm9, %v1107_v37, %v1109_v38  ;;  %v1111_v46 = vsel %vm1110_vm9, %v1105_v33, %v1107_v37 }
 0x11a   : > { %7552 = vmatprep.subr.msk.mxu0 %vm414_vm5, %v1112_v39  ;;  %7749 = vmatpush3.msk.msra.mxu1 %vm414_vm5, %v1109_v38 }
 0x11b   : > { %7537 = vmatmul.mubr.msk.f32.gmra.mxu0 %vm407_vm2, %v7533_v31  ;;  %1013 = vmatprep.mubr.f32.mxu1 %v8155_v0 }
 0x11c   : > { %v1291_v42 = vpop.permute.xlu0 %1290  ;;  %v1289_v43 = vpop.permute.xlu1 %1288  ;;  %7546 = vmatmul.mubr.msk.f32.gmra.mxu1 %vm407_vm2, %v7542_v40  ;;  %7745 = vmatprep.mubr.msk.f32.mxu0 %vm407_vm2, %v7541_v36 }
 0x11d   : > { %v1294_v44 = vsel %vm1292_vm10, %v1289_v43, %v1291_v42  ;;  %7750 = vmatprep.mubr.msk.f32.mxu1 %vm407_vm2, %v7550_v41 }
 0x11e   : > { %7561 = vmatprep.subr.msk.mxu1 %vm414_vm5, %v1294_v44 }
 0x11f   : > { %7746 = vmatmul.mubr.msk.f32.vlgmr.msra.gmra.mxu0 %vm407_vm2, %v7542_v40 }
 0x120   : > { %7553 = vmatpush1.msk.msra.mxu0 %vm414_vm5, %v1111_v46  ;;  %v1469_v47 = vpop.permute.xlu0 %1468  ;;  %v1287_v48 = vpop.permute.xlu1 %1286  ;;  %7751 = vmatmul.mubr.msk.f32.vlgmr.msra.gmra.mxu1 %vm407_vm2, %v7551_v45 }
 0x121   : > { %7753 = vmatprep.subr.msk.mxu0 %vm414_vm5, %v1291_v42  ;;  %v1293_v49 = vsel %vm1292_vm10, %v1287_v48, %v1289_v43  ;;  %1189 = vmatprep.mubr.f32.mxu0 %v8155_v0 }
 0x122   : > { %7562 = vmatpush1.msk.msra.mxu1 %vm414_vm5, %v1293_v49  ;;  %1371 = vmatprep.mubr.f32.mxu1 %v8155_v0 }
 0x123   : > { %7554 = vmatmul.mubr.msk.f32.vlgmr.msra.gmra.mxu0 %vm407_vm2, %v7550_v41 }
 0x124   : > { %7754 = vmatpush3.msk.msra.mxu0 %vm414_vm5, %v1291_v42  ;;  %v1471_v51 = vpop.permute.xlu0 %1470  ;;  %v1473_v52 = vpop.permute.xlu1 %1472  ;;  %7563 = vmatmul.mubr.msk.f32.vlgmr.msra.gmra.mxu1 %vm407_vm2, %v7559_v50 }
 0x125   : > { %7758 = vmatprep.subr.msk.mxu1 %vm414_vm5, %v1473_v52  ;;  %1195 = vmatprep.mubr.f32.mxu0 %v8155_v0  ;;  %v1476_v53 = vsel %vm1474_vm11, %v1471_v51, %v1473_v52  ;;  %v1475_v60 = vsel %vm1474_vm11, %v1469_v47, %v1471_v51 }
 0x126   : > { %7570 = vmatprep.subr.msk.mxu0 %vm414_vm5, %v1476_v53  ;;  %7759 = vmatpush3.msk.msra.mxu1 %vm414_vm5, %v1473_v52 }
 0x127   : > { %7555 = vmatmul.mubr.msk.f32.gmra.mxu0 %vm407_vm2, %v7551_v45  ;;  %1377 = vmatprep.mubr.f32.mxu1 %v8155_v0 }
 0x128   : > { %v1655_v56 = vpop.permute.xlu0 %1654  ;;  %v1653_v57 = vpop.permute.xlu1 %1652  ;;  %7564 = vmatmul.mubr.msk.f32.gmra.mxu1 %vm407_vm2, %v7560_v54  ;;  %7755 = vmatprep.mubr.msk.f32.mxu0 %vm407_vm2, %v7559_v50 }
 0x129   : > { %v1658_v58 = vsel %vm1656_vm12, %v1653_v57, %v1655_v56  ;;  %7760 = vmatprep.mubr.msk.f32.mxu1 %vm407_vm2, %v7568_v55 }
 0x12a   : > { %7579 = vmatprep.subr.msk.mxu1 %vm414_vm5, %v1658_v58 }
 0x12b   : > { %7756 = vmatmul.mubr.msk.f32.vlgmr.msra.gmra.mxu0 %vm407_vm2, %v7560_v54 }
 0x12c   : > { %7571 = vmatpush1.msk.msra.mxu0 %vm414_vm5, %v1475_v60  ;;  %v1651_v61 = vpop.permute.xlu1 %1650  ;;  %7761 = vmatmul.mubr.msk.f32.vlgmr.msra.gmra.mxu1 %vm407_vm2, %v7569_v59  ;;  %v1835_v1 = vpop.permute.xlu0 %1834 }
 0x12d   : > { %7763 = vmatprep.subr.msk.mxu0 %vm414_vm5, %v1655_v56  ;;  %v1657_v62 = vsel %vm1656_vm12, %v1651_v61, %v1653_v57  ;;  %1553 = vmatprep.mubr.f32.mxu0 %v8155_v0 }
 0x12e   : > { %7580 = vmatpush1.msk.msra.mxu1 %vm414_vm5, %v1657_v62  ;;  %1735 = vmatprep.mubr.f32.mxu1 %v8155_v0 }
 0x12f   : > { %7572 = vmatmul.mubr.msk.f32.vlgmr.msra.gmra.mxu0 %vm407_vm2, %v7568_v55 }
 0x130   : > { %7764 = vmatpush3.msk.msra.mxu0 %vm414_vm5, %v1655_v56  ;;  %v1837_v2 = vpop.permute.xlu1 %1836  ;;  %7581 = vmatmul.mubr.msk.f32.vlgmr.msra.gmra.mxu1 %vm407_vm2, %v7577_v63  ;;  %v1833_v6 = vpop.permute.xlu0 %1832 }
 0x131   : > { %7768 = vmatprep.subr.msk.mxu1 %vm414_vm5, %v1837_v2  ;;  %1559 = vmatprep.mubr.f32.mxu0 %v8155_v0  ;;  %v1840_v3 = vsel %vm1838_vm13, %v1835_v1, %v1837_v2  ;;  %v1839_v8 = vsel %vm1838_vm13, %v1833_v6, %v1835_v1 }
 0x132   : > { %7588 = vmatprep.subr.msk.mxu0 %vm414_vm5, %v1840_v3  ;;  %7769 = vmatpush3.msk.msra.mxu1 %vm414_vm5, %v1837_v2 }
 0x133   : > { %7573 = vmatmul.mubr.msk.f32.gmra.mxu0 %vm407_vm2, %v7569_v59  ;;  %1741 = vmatprep.mubr.f32.mxu1 %v8155_v0 }
 0x134   : > { %7582 = vmatmul.mubr.msk.f32.gmra.mxu1 %vm407_vm2, %v7578_v4  ;;  %7765 = vmatprep.mubr.msk.f32.mxu0 %vm407_vm2, %v7577_v63 }
 0x135   : > { %7770 = vmatprep.mubr.msk.f32.mxu1 %vm407_vm2, %v7586_v5 }
 0x137   : > { %7766 = vmatmul.mubr.msk.f32.vlgmr.msra.gmra.mxu0 %vm407_vm2, %v7578_v4 }
 0x138   : > { %7589 = vmatpush1.msk.msra.mxu0 %vm414_vm5, %v1839_v8  ;;  %7771 = vmatmul.mubr.msk.f32.vlgmr.msra.gmra.mxu1 %vm407_vm2, %v7587_v7  ;;  %vm6390_vm5 = vcmask 553987  }
 0x139   : > { %1917 = vmatprep.mubr.f32.mxu0 %v8155_v0  ;;  %7773 = vmatprep.subr.mxu0 %v8155_v0 }
 0x13a   : > { %2164 = vmatprep.mubr.f32.mxu1 %v8155_v0 }
 0x13b   : > { %7590 = vmatmul.mubr.msk.f32.vlgmr.msra.gmra.mxu0 %vm407_vm2, %v7586_v5 }
 0x13c   : > { %1923 = vmatprep.mubr.f32.mxu0 %v8155_v0 }
 0x13f   : > { %7591 = vmatmul.mubr.msk.f32.gmra.mxu0 %vm407_vm2, %v7587_v7  ;;  %vm5241_vm2 = vcmask 1042584  }
 0x140   : > { %7775 = vmatprep.mubr.msk.f32.mxu0 %vm8166_vm0, %v8155_v0 }
 0x1c7   : > { %v7732_v9 = vpop.f32.mrf.mxu1 }
 0x1c9   : > { %v564_v10 = vpop.f32.mrf.mxu1 }
 0x1cb   : > { %v487_v11 = vpop.f32.mrf.mxu0  ;;  %v651_v12 = vpop.f32.mrf.mxu1 }
 0x1cc   : > { %v652_v50 = vadd.f32 %v651_v12, %v487_v11 }
 0x1cd   : > { %v489_v13 = vpop.f32.mrf.mxu0  ;;  %v653_v14 = vpop.f32.mrf.mxu1 }
 0x1ce   : > { %v654_v55 = vadd.f32 %v653_v14, %v489_v13  ;;  %v2036_v13 = vlaneseq }
 0x1cf   : > { %v493_v15 = vpop.f32.mrf.mxu0 }
 0x1d0   : > { %v657_v16 = vpop.f32.mrf.mxu1 }
 0x1d1   : > { %v658_v17 = vadd.f32 %v657_v16, %v493_v15  ;;  %v495_v18 = vpop.f32.mrf.mxu0 }
 0x1d2   : > { %v659_v19 = vpop.f32.mrf.mxu1 }
 0x1d3   : > { %v660_v20 = vadd.f32 %v659_v19, %v495_v18  ;;  %v7737_v21 = vpop.f32.mrf.mxu0 }
 0x1d4   : > { %v734_v22 = vadd.f32 %v7737_v21, %v7732_v9  ;;  %v7742_v23 = vpop.f32.mrf.mxu1 }
 0x1d5   : > { %v728_v24 = vpop.f32.mrf.mxu0 }
 0x1d6   : > { %v918_v25 = vadd.f32 %v7742_v23, %v734_v22  ;;  %v904_v26 = vpop.f32.mrf.mxu1  ;;  %v729_v51 = vadd.f32 %v728_v24, %v564_v10  ;;  %v8449_v23 = vshrl.u32 %v2036_v13, 7 }
 0x1d7   : > { %v827_v27 = vpop.f32.mrf.mxu0 }
 0x1d8   : > { %v1009_v28 = vpop.f32.mrf.mxu1  ;;  %v913_v56 = vadd.f32 %v827_v27, %v652_v50  ;;  %v915_v61 = vadd.f32 %v904_v26, %v729_v51  ;;  %10717 = vst [vmem:[#allocation3_spill] sm:$0xff] %v8449_v23 }
 0x1d9   : > { %v829_v29 = vpop.f32.mrf.mxu0 }
 0x1da   : > { %v1011_v30 = vpop.f32.mrf.mxu1  ;;  %v914_v62 = vadd.f32 %v829_v29, %v654_v55  ;;  %v1095_v4 = vadd.f32 %v1009_v28, %v913_v56 }
 0x1db   : > { %v833_v31 = vpop.f32.mrf.mxu0 }
 0x1dc   : > { %v916_v32 = vadd.f32 %v833_v31, %v658_v17  ;;  %v1015_v33 = vpop.f32.mrf.mxu1  ;;  %v1096_v9 = vadd.f32 %v1011_v30, %v914_v62 }
 0x1dd   : > { %v835_v34 = vpop.f32.mrf.mxu0 }
 0x1de   : > { %v917_v35 = vadd.f32 %v835_v34, %v660_v20  ;;  %v1098_v36 = vadd.f32 %v1015_v33, %v916_v32  ;;  %v1017_v37 = vpop.f32.mrf.mxu1 }
 0x1df   : > { %v7747_v38 = vpop.f32.mrf.mxu0 }
 0x1e0   : > { %v1099_v39 = vadd.f32 %v1017_v37, %v917_v35  ;;  %v1100_v40 = vadd.f32 %v7747_v38, %v918_v25  ;;  %v7752_v41 = vpop.f32.mrf.mxu1 }
 0x1e1   : > { %v1086_v42 = vpop.f32.mrf.mxu0 }
 0x1e2   : > { %v1282_v43 = vadd.f32 %v7752_v41, %v1100_v40  ;;  %v1268_v44 = vpop.f32.mrf.mxu1  ;;  %v1097_v5 = vadd.f32 %v1086_v42, %v915_v61  ;;  %v8456_v40 = vsub.s32 0, %v8449_v23  ;;  %v2016_v42 = vpop.permute.xlu1 %2015 }
 0x1e3   : > { %v1191_v45 = vpop.f32.mrf.mxu0 }
 0x1e4   : > { %v1373_v46 = vpop.f32.mrf.mxu1  ;;  %v1277_v10 = vadd.f32 %v1191_v45, %v1095_v4  ;;  %v1279_v14 = vadd.f32 %v1268_v44, %v1097_v5  ;;  %10718 = vst [vmem:[#allocation4_spill] sm:$0xff] %v8456_v40 }
 0x1e5   : > { %v1193_v47 = vpop.f32.mrf.mxu0 }
 0x1e6   : > { %v1375_v48 = vpop.f32.mrf.mxu1  ;;  %v1278_v15 = vadd.f32 %v1193_v47, %v1096_v9  ;;  %v1459_v18 = vadd.f32 %v1373_v46, %v1277_v10  ;;  %v8462_v47 = vsub.s32 1, %v8449_v23  ;;  %v3505_v9 = vld [vmem:[%s10556_s4] sm:$0xff] }
 0x1e7   : > { %v1197_v49 = vpop.f32.mrf.mxu0 }
 0x1e8   : > { %v1280_v52 = vadd.f32 %v1197_v49, %v1098_v36  ;;  %v1379_v53 = vpop.f32.mrf.mxu1  ;;  %v1460_v24 = vadd.f32 %v1375_v48, %v1278_v15  ;;  %10719 = vst [vmem:[#allocation5_spill] sm:$0xff] %v8462_v47  ;;  %v8465_v49 = vsub.s32 2, %v8449_v23 }
 0x1e9   : > { %v1199_v54 = vpop.f32.mrf.mxu0 }
 0x1ea   : > { %v1281_v57 = vadd.f32 %v1199_v54, %v1099_v39  ;;  %v1462_v58 = vadd.f32 %v1379_v53, %v1280_v52  ;;  %v1381_v59 = vpop.f32.mrf.mxu1  ;;  %10720 = vst [vmem:[#allocation6_spill] sm:$0xff] %v8465_v49 }
 0x1eb   : > { %v7757_v60 = vpop.f32.mrf.mxu0 }
 0x1ec   : > { %v1463_v63 = vadd.f32 %v1381_v59, %v1281_v57  ;;  %v1464_v1 = vadd.f32 %v7757_v60, %v1282_v43  ;;  %v7762_v2 = vpop.f32.mrf.mxu1  ;;  %v360_v43 = vld [vmem:[%s10561_s9] sm:$0x7] }
 0x1ed   : > { %v1450_v3 = vpop.f32.mrf.mxu0  ;;  %v8468_v53 = vrot.slane %v360_v43, %v8456_v40  ;;  %v8477_v62 = vrot.slane %v360_v43, %v8465_v49 }
 0x1ee   : > { %v1646_v6 = vadd.f32 %v7762_v2, %v1464_v1  ;;  %v1632_v7 = vpop.f32.mrf.mxu1  ;;  %v1461_v19 = vadd.f32 %v1450_v3, %v1279_v14  ;;  %v7595_v14 = vld [vmem:[%s10555_s3 + $0x8] sm:$0xff] }
 0x1ef   : > { %v1555_v8 = vpop.f32.mrf.mxu0 }
 0x1f0   : > { %v1737_v11 = vpop.f32.mrf.mxu1  ;;  %v1641_v25 = vadd.f32 %v1555_v8, %v1459_v18  ;;  %v1643_v30 = vadd.f32 %v1632_v7, %v1461_v19 }
 0x1f1   : > { %v1557_v12 = vpop.f32.mrf.mxu0 }
 0x1f2   : > { %v1739_v16 = vpop.f32.mrf.mxu1  ;;  %v1642_v31 = vadd.f32 %v1557_v12, %v1460_v24  ;;  %v1823_v36 = vadd.f32 %v1737_v11, %v1641_v25  ;;  %v7600_v25 = vld [vmem:[%s10555_s3 + $0x10] sm:$0xff] }
 0x1f3   : > { %v1561_v17 = vpop.f32.mrf.mxu0 }
 0x1f4   : > { %v1644_v20 = vadd.f32 %v1561_v17, %v1462_v58  ;;  %v1743_v21 = vpop.f32.mrf.mxu1  ;;  %v1824_v44 = vadd.f32 %v1739_v16, %v1642_v31  ;;  %v8473_v58 = vrot.slane %v360_v43, %v8462_v47  ;;  %v2076_v17 = vld [vmem:[%s10555_s3] sm:$0xff]  ;;  %v7609_v43 = vld [vmem:[%s10555_s3 + $0x28] sm:$0xff] }
 0x1f5   : > { %v1563_v22 = vpop.f32.mrf.mxu0 }
 0x1f6   : > { %v1645_v26 = vadd.f32 %v1563_v22, %v1463_v63  ;;  %v1826_v27 = vadd.f32 %v1743_v21, %v1644_v20  ;;  %v1745_v28 = vpop.f32.mrf.mxu1 }
 0x1f7   : > { %v7767_v29 = vpop.f32.mrf.mxu0 }
 0x1f8   : > { %v8451_v32 = vadd.f32 %v1745_v28, %v1645_v26  ;;  %v1828_v33 = vadd.f32 %v7767_v29, %v1646_v6  ;;  %v7772_v34 = vpop.f32.mrf.mxu1 }
 0x1f9   : > { %v1814_v35 = vpop.f32.mrf.mxu0 }
 0x1fa   : > { %v1825_v37 = vadd.f32 %v1814_v35, %v1643_v30  ;;  %v8453_v38 = vadd.f32 %v7772_v34, %v1828_v33  ;;  %v1996_v39 = vpop.f32.mrf.mxu1  ;;  %v7603_v30 = vld [vmem:[%s10555_s3 + $0x18] sm:$0xff] }
 0x1fb   : > { %v1919_v41 = vpop.f32.mrf.mxu0 }
 0x1fc   : > { %v2005_v45 = vadd.f32 %v1919_v41, %v1823_v36  ;;  %v2007_v46 = vadd.f32 %v1996_v39, %v1825_v37  ;;  %v7606_v36 = vld [vmem:[%s10555_s3 + $0x20] sm:$0xff] }
 0x1fd   : > { %v1921_v48 = vpop.f32.mrf.mxu0 }
 0x1fe   : > { %v2006_v50 = vadd.f32 %v1921_v48, %v1824_v44  ;;  %v2023_v51 = vadd.f32 %v2016_v42, %v2005_v45  ;;  %v2025_v52 = vadd.f32 %v2016_v42, %v2007_v46 }
 0x1ff   : > { %v1925_v54 = vpop.f32.mrf.mxu0 }
 0x200   : > { %v2024_v55 = vadd.f32 %v2016_v42, %v2006_v50  ;;  %v2029_v56 = vmax.f32 %v2023_v51, 0.0  ;;  %v8470_v57 = vadd.f32 %v1925_v54, %v1826_v27  ;;  %v2031_v60 = vmax.f32 %v2025_v52, 0.0  ;;  %v7612_v50 = vld [vmem:[%s10555_s3 + $0x30] sm:$0xff] }
 0x202   : > { %v2030_v59 = vmax.f32 %v2024_v55, 0.0  ;;  %v2051_v61 = vmul.f32 %v8468_v53, %v2029_v56  ;;  %v2053_v1 = vmul.f32 %v8477_v62, %v2031_v60  ;;  %v7615_v56 = vld [vmem:[%s10555_s3 + $0x38] sm:$0xff] }
 0x204   : > { %2060 = vrot.lane.b32.xlu0 %v2051_v61, %s8156_s19  ;;  %v2052_v63 = vmul.f32 %v8473_v58, %v2030_v59 }
 0x206   : > { %2062 = vrot.lane.b32.xlu1 %v2052_v63, %s8156_s19 }
 0x208   : > { %2064 = vrot.lane.b32.xlu0 %v2053_v1, %s8156_s19  ;;  %v7618_v1 = vld [vmem:[%s10555_s3 + $0x40] sm:$0xff] }
 0x276   : > { %v2061_v2 = vpop.permute.xlu0 %2060 }
 0x277   : > { %2072 = vst.msk [vmem:[#allocation2] sm:$0xff] %vm2071_vm14, %v2061_v2 }
 0x278   : > { %v2063_v3 = vpop.permute.xlu1 %2062 }
 0x279   : > { %v2066_v8 = vsel %vm376_vm3, %v2061_v2, %v2063_v3 }
 0x27a   : > { %v2065_v4 = vpop.permute.xlu0 %2064 }
 0x27b   : > { %v2067_v5 = vsel %vm376_vm3, %v2063_v3, %v2065_v4 }
 0x27c   : > { %2075 = vst.msk [vmem:[#allocation2 + $0x10] sm:$0xff] %vm2074_vm15, %v2067_v5 }
 0x27e   : > { %v2077_v6 = vld [vmem:[#allocation2] sm:$0xff] }
 0x27f   : > { %2387 = vrot.lane.b32.xlu0 %v2077_v6, %s8158_s23  ;;  %2085 = vrot.lane.b32.xlu1 %v2077_v6, %s8157_s22 }
 0x283   : > { %2707 = vrot.lane.b32.xlu0 %v2077_v6, %s8160_s25  ;;  %2547 = vrot.lane.b32.xlu1 %v2077_v6, %s8159_s24  ;;  %v2079_v7 = vld [vmem:[#allocation2 + $0x10] sm:$0xff] }
 0x287   : > { %2867 = vrot.lane.b32.xlu1 %v2077_v6, %s8161_s26  ;;  %2089 = vrot.lane.b32.xlu0 %v2079_v7, %s8157_s22 }
 0x28b   : > { %2087 = vrot.lane.b32.xlu1 %v2066_v8, %s8157_s22  ;;  %3027 = vrot.lane.b32.xlu0 %v2077_v6, %s8162_s27 }
 0x28f   : > { %3187 = vrot.lane.b32.xlu1 %v2077_v6, %s10563_s28  ;;  %2389 = vrot.lane.b32.xlu0 %v2066_v8, %s8158_s23 }
 0x293   : > { %2391 = vrot.lane.b32.xlu1 %v2079_v7, %s8158_s23  ;;  %2551 = vrot.lane.b32.xlu0 %v2079_v7, %s8159_s24 }
 0x297   : > { %2549 = vrot.lane.b32.xlu1 %v2066_v8, %s8159_s24  ;;  %2709 = vrot.lane.b32.xlu0 %v2066_v8, %s8160_s25 }
 0x29b   : > { %2711 = vrot.lane.b32.xlu1 %v2079_v7, %s8160_s25  ;;  %2871 = vrot.lane.b32.xlu0 %v2079_v7, %s8161_s26 }
 0x29f   : > { %2869 = vrot.lane.b32.xlu1 %v2066_v8, %s8161_s26  ;;  %3029 = vrot.lane.b32.xlu0 %v2066_v8, %s8162_s27 }
 0x2a3   : > { %3031 = vrot.lane.b32.xlu1 %v2079_v7, %s8162_s27  ;;  %3191 = vrot.lane.b32.xlu0 %v2079_v7, %s10563_s28 }
 0x2a7   : > { %3189 = vrot.lane.b32.xlu1 %v2066_v8, %s10563_s28  ;;  %3349 = vrot.lane.b32.xlu0 %v2066_v8, %s8164_s29 }
 0x2ab   : > { %3351 = vrot.lane.b32.xlu1 %v2079_v7, %s8164_s29  ;;  %3347 = vrot.lane.b32.xlu0 %v2077_v6, %s8164_s29 }
 0x2af   : > { %3508 = vperm.xlu1 %7902, %v3505_v9  }
 0x2f1   : > { %v2086_v10 = vpop.permute.xlu1 %2085  ;;  %v2388_v11 = vpop.permute.xlu0 %2387 }
 0x2f5   : > { %v2548_v12 = vpop.permute.xlu1 %2547  ;;  %v2708_v13 = vpop.permute.xlu0 %2707 }
 0x2f9   : > { %v8520_v15 = vpop.permute.xlu1 %2867  ;;  %v2090_v16 = vpop.permute.xlu0 %2089 }
 0x2fa   : > { %7774 = vmatpush3.msra.mxu0 %v2090_v16 }
 0x2fb   : > { %7778 = vmatprep.subr.mxu0 %v8155_v0  ;;  %7776 = vmatmul.mubr.msk.f32.vlgmr.msra.gmra.mxu0 %vm2096_vm1, %v7595_v14 }
 0x2fc   : > { %7779 = vmatpush3.msra.mxu0 %v2079_v7  ;;  %7780 = vmatprep.mubr.msk.f32.mxu0 %vm8166_vm0, %v8155_v0 }
 0x2fd   : > { %v2088_v18 = vpop.permute.xlu1 %2087  ;;  %v8529_v19 = vpop.permute.xlu0 %3027  ;;  %7783 = vmatprep.subr.mxu0 %v8155_v0 }
 0x2fe   : > { %v2091_v20 = vsel %vm404_vm6, %v2086_v10, %v2088_v18  ;;  %v2092_v21 = vsel %vm404_vm6, %v2088_v18, %v2090_v16 }
 0x2ff   : > { %2130 = vmatprep.subr.mxu1 %v2092_v21  ;;  %7781 = vmatmul.mubr.msk.f32.vlgmr.msra.gmra.mxu0 %vm2096_vm1, %v2076_v17 }
 0x300   : > { %2131 = vmatpush1.msra.mxu1 %v2091_v20  ;;  %7785 = vmatprep.mubr.msk.f32.mxu0 %vm8166_vm0, %v8155_v0 }
 0x301   : > { %v8537_v22 = vpop.permute.xlu1 %3187  ;;  %7596 = vmatmul.mubr.msk.f32.vlgmr.msra.gmra.mxu1 %vm2096_vm1, %v7595_v14  ;;  %2274 = vmatprep.subr.mxu1 %v2066_v8  ;;  %v2390_v24 = vpop.permute.xlu0 %2389 }
 0x302   : > { %2275 = vmatpush1.msra.mxu1 %v2077_v6  ;;  %2308 = vmatprep.mubr.f32.mxu1 %v8155_v0  ;;  %v2393_v29 = vsel %vm746_vm7, %v2388_v11, %v2390_v24  ;;  %v8623_v6 = vpop.f32.mrf.mxu0 }
 0x305   : > { %v2392_v26 = vpop.permute.xlu1 %2391  ;;  %7598 = vmatmul.mubr.msk.f32.vlgmr.msra.gmra.mxu1 %vm2096_vm1, %v2076_v17  ;;  %v2552_v27 = vpop.permute.xlu0 %2551 }
 0x306   : > { %7784 = vmatpush3.msra.mxu0 %v2392_v26  ;;  %v2394_v28 = vsel %vm746_vm7, %v2390_v24, %v2392_v26  ;;  %2465 = vmatprep.mubr.f32.mxu1 %v8155_v0 }
 0x307   : > { %2431 = vmatprep.subr.mxu1 %v2394_v28  ;;  %7786 = vmatmul.mubr.msk.f32.vlgmr.msra.gmra.mxu0 %vm2096_vm1, %v7600_v25 }
 0x308   : > { %7788 = vmatprep.subr.mxu0 %v8155_v0  ;;  %2432 = vmatpush1.msra.mxu1 %v2393_v29 }
 0x309   : > { %7789 = vmatpush3.msra.mxu0 %v2552_v27  ;;  %v2550_v31 = vpop.permute.xlu1 %2549  ;;  %7601 = vmatmul.mubr.msk.f32.vlgmr.msra.gmra.mxu1 %vm2096_vm1, %v7600_v25  ;;  %v2710_v33 = vpop.permute.xlu0 %2709 }
 0x30a   : > { %v2553_v34 = vsel %vm928_vm8, %v2548_v12, %v2550_v31  ;;  %7790 = vmatprep.mubr.msk.f32.mxu0 %vm8166_vm0, %v8155_v0  ;;  %v2554_v35 = vsel %vm928_vm8, %v2550_v31, %v2552_v27  ;;  %2625 = vmatprep.mubr.f32.mxu1 %v8155_v0  ;;  %v2713_v42 = vsel %vm1110_vm9, %v2708_v13, %v2710_v33 }
 0x30b   : > { %2591 = vmatprep.subr.mxu1 %v2554_v35  ;;  %7791 = vmatmul.mubr.msk.f32.vlgmr.msra.gmra.mxu0 %vm2096_vm1, %v7603_v30 }
 0x30c   : > { %2592 = vmatpush1.msra.mxu1 %v2553_v34  ;;  %7793 = vmatprep.subr.mxu0 %v8155_v0 }
 0x30d   : > { %v2712_v37 = vpop.permute.xlu1 %2711  ;;  %7604 = vmatmul.mubr.msk.f32.vlgmr.msra.gmra.mxu1 %vm2096_vm1, %v7603_v30  ;;  %v2872_v39 = vpop.permute.xlu0 %2871  ;;  %7795 = vmatprep.mubr.msk.f32.mxu0 %vm8166_vm0, %v8155_v0 }
 0x30e   : > { %7794 = vmatpush3.msra.mxu0 %v2712_v37  ;;  %v2714_v41 = vsel %vm1110_vm9, %v2710_v33, %v2712_v37  ;;  %2785 = vmatprep.mubr.f32.mxu1 %v8155_v0 }
 0x30f   : > { %2751 = vmatprep.subr.mxu1 %v2714_v41  ;;  %7796 = vmatmul.mubr.msk.f32.vlgmr.msra.gmra.mxu0 %vm2096_vm1, %v7606_v36 }
 0x310   : > { %7798 = vmatprep.subr.mxu0 %v8155_v0  ;;  %2752 = vmatpush1.msra.mxu1 %v2713_v42 }
 0x311   : > { %7799 = vmatpush3.msra.mxu0 %v2872_v39  ;;  %v2870_v44 = vpop.permute.xlu1 %2869  ;;  %7607 = vmatmul.mubr.msk.f32.vlgmr.msra.gmra.mxu1 %vm2096_vm1, %v7606_v36  ;;  %v3030_v45 = vpop.permute.xlu0 %3029 }
 0x312   : > { %v2873_v46 = vsel %vm1292_vm10, %v8520_v15, %v2870_v44  ;;  %7800 = vmatprep.mubr.msk.f32.mxu0 %vm8166_vm0, %v8155_v0  ;;  %v2874_v48 = vsel %vm1292_vm10, %v2870_v44, %v2872_v39  ;;  %2945 = vmatprep.mubr.f32.mxu1 %v8155_v0  ;;  %v3033_v55 = vsel %vm1474_vm11, %v8529_v19, %v3030_v45 }
 0x313   : > { %2911 = vmatprep.subr.mxu1 %v2874_v48  ;;  %7801 = vmatmul.mubr.msk.f32.vlgmr.msra.gmra.mxu0 %vm2096_vm1, %v7609_v43 }
 0x314   : > { %2912 = vmatpush1.msra.mxu1 %v2873_v46  ;;  %7803 = vmatprep.subr.mxu0 %v8155_v0 }
 0x315   : > { %v3032_v51 = vpop.permute.xlu1 %3031  ;;  %7610 = vmatmul.mubr.msk.f32.vlgmr.msra.gmra.mxu1 %vm2096_vm1, %v7609_v43  ;;  %v3192_v52 = vpop.permute.xlu0 %3191  ;;  %7805 = vmatprep.mubr.msk.f32.mxu0 %vm8166_vm0, %v8155_v0 }
 0x316   : > { %7804 = vmatpush3.msra.mxu0 %v3032_v51  ;;  %v3034_v54 = vsel %vm1474_vm11, %v3030_v45, %v3032_v51  ;;  %3105 = vmatprep.mubr.f32.mxu1 %v8155_v0 }
 0x317   : > { %3071 = vmatprep.subr.mxu1 %v3034_v54  ;;  %7806 = vmatmul.mubr.msk.f32.vlgmr.msra.gmra.mxu0 %vm2096_vm1, %v7612_v50 }
 0x318   : > { %7808 = vmatprep.subr.mxu0 %v8155_v0  ;;  %3072 = vmatpush1.msra.mxu1 %v3033_v55 }
 0x319   : > { %7809 = vmatpush3.msra.mxu0 %v3192_v52  ;;  %v3190_v59 = vpop.permute.xlu1 %3189  ;;  %7613 = vmatmul.mubr.msk.f32.vlgmr.msra.gmra.mxu1 %vm2096_vm1, %v7612_v50  ;;  %v3350_v60 = vpop.permute.xlu0 %3349 }
 0x31a   : > { %v3193_v61 = vsel %vm1656_vm12, %v8537_v22, %v3190_v59  ;;  %7810 = vmatprep.mubr.msk.f32.mxu0 %vm8166_vm0, %v8155_v0  ;;  %v3194_v63 = vsel %vm1656_vm12, %v3190_v59, %v3192_v52  ;;  %3265 = vmatprep.mubr.f32.mxu1 %v8155_v0 }
 0x31b   : > { %3231 = vmatprep.subr.mxu1 %v3194_v63  ;;  %7811 = vmatmul.mubr.msk.f32.vlgmr.msra.gmra.mxu0 %vm2096_vm1, %v7615_v56 }
 0x31c   : > { %3232 = vmatpush1.msra.mxu1 %v3193_v61  ;;  %7813 = vmatprep.subr.mxu0 %v8155_v0 }
 0x31d   : > { %v3352_v2 = vpop.permute.xlu1 %3351  ;;  %7616 = vmatmul.mubr.msk.f32.vlgmr.msra.gmra.mxu1 %vm2096_vm1, %v7615_v56  ;;  %v3348_v3 = vpop.permute.xlu0 %3347  ;;  %7815 = vmatprep.mubr.msk.f32.mxu0 %vm8166_vm0, %v8155_v0 }
 0x31e   : > { %v3353_v4 = vsel %vm1838_vm13, %v3348_v3, %v3350_v60  ;;  %7814 = vmatpush3.msra.mxu0 %v3352_v2  ;;  %v3354_v5 = vsel %vm1838_vm13, %v3350_v60, %v3352_v2  ;;  %3425 = vmatprep.mubr.f32.mxu1 %v8155_v0 }
 0x31f   : > { %3391 = vmatprep.subr.mxu1 %v3354_v5  ;;  %7816 = vmatmul.mubr.msk.f32.vlgmr.msra.gmra.mxu0 %vm2096_vm1, %v7618_v1 }
 0x320   : > { %3392 = vmatpush1.msra.mxu1 %v3353_v4  ;;  %7818 = vmatprep.subr.mxu0 %v8155_v0 }
 0x321   : > { %7619 = vmatmul.mubr.msk.f32.vlgmr.msra.gmra.mxu1 %vm2096_vm1, %v7618_v1  ;;  %7820 = vmatprep.mubr.msk.f32.mxu0 %vm8166_vm0, %v8155_v0 }
 0x322   : > { %3624 = vmatprep.mubr.f32.mxu1 %v8155_v0 }
 0x3bb   : > { %v2237_v7 = vpop.f32.mrf.mxu0 }
 0x3bd   : > { %v7777_v8 = vpop.f32.mrf.mxu0 }
 0x3bf   : > { %v2381_v9 = vpop.f32.mrf.mxu0 }
 0x3c0   : > { %v2382_v20 = vadd.f32 %v2381_v9, %v2237_v7 }
 0x3c1   : > { %v2166_v10 = vpop.f32.mrf.mxu1  ;;  %v7782_v11 = vpop.f32.mrf.mxu0 }
 0x3c3   : > { %v2168_v12 = vpop.f32.mrf.mxu1 }
 0x3c5   : > { %v2310_v13 = vpop.f32.mrf.mxu1 }
 0x3c6   : > { %v2311_v31 = vadd.f32 %v2310_v13, %v2166_v10  ;;  %v3509_v13 = vpop.permute.xlu1 %3508 }
 0x3c7   : > { %v2312_v14 = vpop.f32.mrf.mxu1  ;;  %v2538_v15 = vpop.f32.mrf.mxu0 }
 0x3c8   : > { %v2544_v26 = vadd.f32 %v2538_v15, %v2382_v20  ;;  %v2313_v36 = vadd.f32 %v2312_v14, %v2168_v12 }
 0x3c9   : > { %v2467_v16 = vpop.f32.mrf.mxu1  ;;  %v7787_v17 = vpop.f32.mrf.mxu0 }
 0x3ca   : > { %v2542_v37 = vadd.f32 %v2467_v16, %v2311_v31 }
 0x3cb   : > { %v2469_v18 = vpop.f32.mrf.mxu1  ;;  %v2698_v19 = vpop.f32.mrf.mxu0 }
 0x3cc   : > { %v2704_v33 = vadd.f32 %v2698_v19, %v2544_v26  ;;  %v2543_v42 = vadd.f32 %v2469_v18, %v2313_v36  ;;  %v4984_v36 = vld [vmem:[%s10560_s8 + $0x10] sm:$0xff] }
 0x3cd   : > { %v2627_v21 = vpop.f32.mrf.mxu1  ;;  %v7792_v22 = vpop.f32.mrf.mxu0 }
 0x3ce   : > { %v2702_v43 = vadd.f32 %v2627_v21, %v2542_v37  ;;  %v4982_v37 = vld [vmem:[%s10560_s8] sm:$0xff] }
 0x3cf   : > { %v2629_v24 = vpop.f32.mrf.mxu1  ;;  %v2858_v25 = vpop.f32.mrf.mxu0 }
 0x3d0   : > { %v2864_v44 = vadd.f32 %v2858_v25, %v2704_v33  ;;  %v2703_v48 = vadd.f32 %v2629_v24, %v2543_v42  ;;  %v4986_v42 = vld [vmem:[%s10560_s8 + $0x20] sm:$0xf] }
 0x3d1   : > { %v2787_v27 = vpop.f32.mrf.mxu1  ;;  %v7797_v28 = vpop.f32.mrf.mxu0 }
 0x3d2   : > { %v2862_v50 = vadd.f32 %v2787_v27, %v2702_v43 }
 0x3d3   : > { %v2789_v29 = vpop.f32.mrf.mxu1  ;;  %v3018_v30 = vpop.f32.mrf.mxu0 }
 0x3d4   : > { %v3024_v51 = vadd.f32 %v3018_v30, %v2864_v44  ;;  %v2863_v55 = vadd.f32 %v2789_v29, %v2703_v48  ;;  %v7621_v48 = vld [vmem:[%s10557_s5 + $0x4] sm:$0x7] }
 0x3d5   : > { %v2947_v34 = vpop.f32.mrf.mxu1  ;;  %v7802_v35 = vpop.f32.mrf.mxu0 }
 0x3d6   : > { %v3022_v56 = vadd.f32 %v2947_v34, %v2862_v50  ;;  %v2012_v34 = vld [vmem:[%s10554_s2 + $0x8] sm:$0xff] }
 0x3d7   : > { %v2949_v39 = vpop.f32.mrf.mxu1  ;;  %v3178_v41 = vpop.f32.mrf.mxu0  ;;  %v4983_v35 = vld [vmem:[%s10560_s8 + $0x8] sm:$0xff] }
 0x3d8   : > { %v3184_v59 = vadd.f32 %v3178_v41, %v3024_v51  ;;  %v3023_v63 = vadd.f32 %v2949_v39, %v2863_v55  ;;  %v4965_v39 = vld [vmem:[%s10558_s6] sm:$0x7]  ;;  %v4985_v41 = vld [vmem:[%s10560_s8 + $0x18] sm:$0xff] }
 0x3d9   : > { %v3107_v45 = vpop.f32.mrf.mxu1  ;;  %v7807_v46 = vpop.f32.mrf.mxu0 }
 0x3da   : > { %v3182_v1 = vadd.f32 %v3107_v45, %v3022_v56 }
 0x3db   : > { %v3109_v52 = vpop.f32.mrf.mxu1  ;;  %v3338_v54 = vpop.f32.mrf.mxu0 }
 0x3dc   : > { %v3344_v2 = vadd.f32 %v3338_v54, %v3184_v59  ;;  %v3183_v5 = vadd.f32 %v3109_v52, %v3023_v63  ;;  %v3537_v52 = vld [vmem:[%s10557_s5] sm:$0x7] }
 0x3dd   : > { %v3267_v60 = vpop.f32.mrf.mxu1  ;;  %v7812_v61 = vpop.f32.mrf.mxu0 }
 0x3de   : > { %v3342_v7 = vadd.f32 %v3267_v60, %v3182_v1 }
 0x3df   : > { %v3269_v3 = vpop.f32.mrf.mxu1  ;;  %v3498_v4 = vpop.f32.mrf.mxu0 }
 0x3e0   : > { %v3504_v8 = vadd.f32 %v3498_v4, %v3344_v2  ;;  %v3343_v11 = vadd.f32 %v3269_v3, %v3183_v5  ;;  %v7626_v2 = vld [vmem:[%s10557_s5 + $0x8] sm:$0x7] }
 0x3e1   : > { %v3427_v9 = vpop.f32.mrf.mxu1  ;;  %v7817_v10 = vpop.f32.mrf.mxu0 }
 0x3e2   : > { %v3502_v12 = vadd.f32 %v3427_v9, %v3342_v7  ;;  %v3513_v15 = vadd.f32 %v3509_v13, %v3504_v8  ;;  %v7629_v8 = vld [vmem:[%s10557_s5 + $0xc] sm:$0x7] }
 0x3e3   : > { %v3429_v14 = vpop.f32.mrf.mxu1 }
 0x3e4   : > { %v3511_v16 = vadd.f32 %v3509_v13, %v3502_v12  ;;  %v3503_v17 = vadd.f32 %v3429_v14, %v3343_v11  ;;  %v3516_v20 = vmax.f32 %v3513_v15, 0.0 }
 0x3e6   : > { %v3514_v18 = vmax.f32 %v3511_v16, 0.0  ;;  %v3512_v19 = vadd.f32 %v3509_v13, %v3503_v17  ;;  %v3519_v25 = vmul.f32 %v3516_v20, %v8477_v62  ;;  %v7632_v13 = vld [vmem:[%s10557_s5 + $0x10] sm:$0x7] }
 0x3e8   : > { %v3515_v21 = vmax.f32 %v3512_v19, 0.0  ;;  %v3517_v22 = vmul.f32 %v3514_v18, %v8468_v53  ;;  %v7635_v18 = vld [vmem:[%s10557_s5 + $0x14] sm:$0x7] }
 0x3ea   : > { %3523 = vrot.lane.b32.xlu0 %v3517_v22, %s8156_s19  ;;  %v3518_v24 = vmul.f32 %v3515_v21, %v8473_v58 }
 0x3ec   : > { %3525 = vrot.lane.b32.xlu1 %v3518_v24, %s8156_s19  ;;  %v7638_v24 = vld [vmem:[%s10557_s5 + $0x18] sm:$0x7] }
 0x3ee   : > { %3527 = vrot.lane.b32.xlu0 %v3519_v25, %s8156_s19 }
 0x45c   : > { %v3524_v26 = vpop.permute.xlu0 %3523 }
 0x45d   : > { %3534 = vst.msk [vmem:[#allocation2] sm:$0xff] %vm2071_vm14, %v3524_v26 }
 0x45e   : > { %v3526_v27 = vpop.permute.xlu1 %3525 }
 0x45f   : > { %v8633_v28 = vsel %vm376_vm3, %v3524_v26, %v3526_v27 }
 0x460   : > { %3535 = vst [vmem:[#allocation2 + $0x8] sm:$0xff] %v8633_v28  ;;  %v3528_v29 = vpop.permute.xlu0 %3527 }
 0x461   : > { %v3530_v30 = vsel %vm376_vm3, %v3526_v27, %v3528_v29  ;;  %v7641_v29 = vld [vmem:[%s10557_s5 + $0x1c] sm:$0x7] }
 0x462   : > { %3536 = vst.msk [vmem:[#allocation2 + $0x10] sm:$0xff] %vm2074_vm15, %v3530_v30 }
 0x464   : > { %v8638_v31 = vld [vmem:[#allocation2] sm:$0xff] }
 0x465   : > { %3847 = vrot.lane.b32.xlu0 %v8638_v31, %s8158_s23  ;;  %3546 = vrot.lane.b32.xlu1 %v8638_v31, %s8157_s22 }
 0x469   : > { %4167 = vrot.lane.b32.xlu0 %v8638_v31, %s8160_s25  ;;  %4007 = vrot.lane.b32.xlu1 %v8638_v31, %s8159_s24  ;;  %v3540_v33 = vld [vmem:[#allocation2 + $0x10] sm:$0xff] }
 0x46d   : > { %4327 = vrot.lane.b32.xlu1 %v8638_v31, %s8161_s26  ;;  %3550 = vrot.lane.b32.xlu0 %v3540_v33, %s8157_s22 }
 0x471   : > { %4487 = vrot.lane.b32.xlu0 %v8638_v31, %s8162_s27  ;;  %3548 = vrot.lane.b32.xlu1 %v8633_v28, %s8157_s22 }
 0x475   : > { %3849 = vrot.lane.b32.xlu0 %v8633_v28, %s8158_s23  ;;  %4647 = vrot.lane.b32.xlu1 %v8638_v31, %s10563_s28 }
 0x479   : > { %4011 = vrot.lane.b32.xlu0 %v3540_v33, %s8159_s24  ;;  %3851 = vrot.lane.b32.xlu1 %v3540_v33, %s8158_s23 }
 0x47d   : > { %4169 = vrot.lane.b32.xlu0 %v8633_v28, %s8160_s25  ;;  %4009 = vrot.lane.b32.xlu1 %v8633_v28, %s8159_s24 }
 0x481   : > { %4331 = vrot.lane.b32.xlu0 %v3540_v33, %s8161_s26  ;;  %4171 = vrot.lane.b32.xlu1 %v3540_v33, %s8160_s25 }
 0x485   : > { %4489 = vrot.lane.b32.xlu0 %v8633_v28, %s8162_s27  ;;  %4329 = vrot.lane.b32.xlu1 %v8633_v28, %s8161_s26 }
 0x489   : > { %4651 = vrot.lane.b32.xlu0 %v3540_v33, %s10563_s28  ;;  %4491 = vrot.lane.b32.xlu1 %v3540_v33, %s8162_s27 }
 0x48d   : > { %4809 = vrot.lane.b32.xlu0 %v8633_v28, %s8164_s29  ;;  %4649 = vrot.lane.b32.xlu1 %v8633_v28, %s10563_s28 }
 0x491   : > { %4807 = vrot.lane.b32.xlu0 %v8638_v31, %s8164_s29  ;;  %4811 = vrot.lane.b32.xlu1 %v3540_v33, %s8164_s29 }
 0x495   : > { %2020 = vperm.xlu1 %7902, %v2012_v34   ;;  %4968 = vperm.xlu0 %7903, %v4965_v39   ;;  %v2009_v39 = vadd.f32 %v8623_v6, %v8451_v32  ;;  %v4978_v32 = vld [vmem:[%s10559_s7 + $0x8] sm:$0xff]  ;;  %v4981_v6 = vld [vmem:[%s10559_s7 + $0x20] sm:$0xf] }
 0x499   : > { %4994 = vperm.xlu1 %7902, %v4983_v35   ;;  %5004 = vperm.xlu0 %7903, %v4985_v41   ;;  %v7644_v35 = vld [vmem:[%s10557_s5 + $0x20] sm:$0x7] }
 0x49d   : > { %4999 = vperm.xlu1 %7902, %v4984_v36   ;;  %5009 = vperm.xlu0 %7903, %v4986_v42  }
 0x4a1   : > { %4989 = vperm.xlu1 %7902, %v4982_v37  }
 0x4d7   : > { %v3848_v43 = vpop.permute.xlu0 %3847  ;;  %v3547_v44 = vpop.permute.xlu1 %3546 }
 0x4db   : > { %v4168_v45 = vpop.permute.xlu0 %4167  ;;  %v4008_v46 = vpop.permute.xlu1 %4007 }
 0x4df   : > { %v3551_v50 = vpop.permute.xlu0 %3550  ;;  %v8704_v51 = vpop.permute.xlu1 %4327 }
 0x4e0   : > { %7819 = vmatpush3.msra.mxu0 %v3551_v50 }
 0x4e1   : > { %7823 = vmatprep.subr.mxu0 %v8155_v0  ;;  %7821 = vmatmul.mubr.msk.f32.vlgmr.msra.gmra.mxu0 %vm2096_vm1, %v7621_v48 }
 0x4e2   : > { %7824 = vmatpush3.msra.mxu0 %v3540_v33  ;;  %7825 = vmatprep.mubr.msk.f32.mxu0 %vm8166_vm0, %v8155_v0 }
 0x4e3   : > { %v8713_v54 = vpop.permute.xlu0 %4487  ;;  %v3549_v55 = vpop.permute.xlu1 %3548  ;;  %7828 = vmatprep.subr.mxu0 %v8155_v0 }
 0x4e4   : > { %v3552_v56 = vsel %vm404_vm6, %v3547_v44, %v3549_v55  ;;  %v3553_v59 = vsel %vm404_vm6, %v3549_v55, %v3551_v50 }
 0x4e5   : > { %3590 = vmatprep.subr.mxu1 %v3553_v59  ;;  %7826 = vmatmul.mubr.msk.f32.vlgmr.msra.gmra.mxu0 %vm2096_vm1, %v3537_v52 }
 0x4e6   : > { %3591 = vmatpush1.msra.mxu1 %v3552_v56  ;;  %7830 = vmatprep.mubr.msk.f32.mxu0 %vm8166_vm0, %v8155_v0 }
 0x4e7   : > { %v3850_v60 = vpop.permute.xlu0 %3849  ;;  %7622 = vmatmul.mubr.msk.f32.vlgmr.msra.gmra.mxu1 %vm2096_vm1, %v7621_v48  ;;  %3734 = vmatprep.subr.mxu1 %v8633_v28  ;;  %v8723_v61 = vpop.permute.xlu1 %4647 }
 0x4e8   : > { %3735 = vmatpush1.msra.mxu1 %v8638_v31  ;;  %3768 = vmatprep.mubr.f32.mxu1 %v8155_v0  ;;  %v3853_v4 = vsel %vm746_vm7, %v3848_v43, %v3850_v60 }
 0x4eb   : > { %v4012_v63 = vpop.permute.xlu0 %4011  ;;  %7624 = vmatmul.mubr.msk.f32.vlgmr.msra.gmra.mxu1 %vm2096_vm1, %v3537_v52  ;;  %v3852_v1 = vpop.permute.xlu1 %3851 }
 0x4ec   : > { %7829 = vmatpush3.msra.mxu0 %v3852_v1  ;;  %v3854_v3 = vsel %vm746_vm7, %v3850_v60, %v3852_v1  ;;  %3925 = vmatprep.mubr.f32.mxu1 %v8155_v0 }
 0x4ed   : > { %3891 = vmatprep.subr.mxu1 %v3854_v3  ;;  %7833 = vmatprep.subr.mxu0 %v8155_v0 }
 0x4ee   : > { %3892 = vmatpush1.msra.mxu1 %v3853_v4  ;;  %7831 = vmatmul.mubr.msk.f32.vlgmr.msra.gmra.mxu0 %vm2096_vm1, %v7626_v2 }
 0x4ef   : > { %7834 = vmatpush3.msra.mxu0 %v4012_v63  ;;  %v4170_v5 = vpop.permute.xlu0 %4169  ;;  %7627 = vmatmul.mubr.msk.f32.vlgmr.msra.gmra.mxu1 %vm2096_vm1, %v7626_v2  ;;  %v4010_v7 = vpop.permute.xlu1 %4009 }
 0x4f0   : > { %v4013_v9 = vsel %vm928_vm8, %v4008_v46, %v4010_v7  ;;  %v4014_v10 = vsel %vm928_vm8, %v4010_v7, %v4012_v63  ;;  %7835 = vmatprep.mubr.msk.f32.mxu0 %vm8166_vm0, %v8155_v0  ;;  %4085 = vmatprep.mubr.f32.mxu1 %v8155_v0  ;;  %v4173_v15 = vsel %vm1110_vm9, %v4168_v45, %v4170_v5 }
 0x4f1   : > { %4051 = vmatprep.subr.mxu1 %v4014_v10  ;;  %7838 = vmatprep.subr.mxu0 %v8155_v0 }
 0x4f2   : > { %4052 = vmatpush1.msra.mxu1 %v4013_v9  ;;  %7836 = vmatmul.mubr.msk.f32.vlgmr.msra.gmra.mxu0 %vm2096_vm1, %v7629_v8 }
 0x4f3   : > { %v4332_v11 = vpop.permute.xlu0 %4331  ;;  %7630 = vmatmul.mubr.msk.f32.vlgmr.msra.gmra.mxu1 %vm2096_vm1, %v7629_v8  ;;  %v4172_v12 = vpop.permute.xlu1 %4171  ;;  %7840 = vmatprep.mubr.msk.f32.mxu0 %vm8166_vm0, %v8155_v0 }
 0x4f4   : > { %7839 = vmatpush3.msra.mxu0 %v4172_v12  ;;  %v4174_v14 = vsel %vm1110_vm9, %v4170_v5, %v4172_v12  ;;  %4245 = vmatprep.mubr.f32.mxu1 %v8155_v0 }
 0x4f5   : > { %4211 = vmatprep.subr.mxu1 %v4174_v14  ;;  %7843 = vmatprep.subr.mxu0 %v8155_v0 }
 0x4f6   : > { %4212 = vmatpush1.msra.mxu1 %v4173_v15  ;;  %7841 = vmatmul.mubr.msk.f32.vlgmr.msra.gmra.mxu0 %vm2096_vm1, %v7632_v13 }
 0x4f7   : > { %7844 = vmatpush3.msra.mxu0 %v4332_v11  ;;  %v4490_v16 = vpop.permute.xlu0 %4489  ;;  %7633 = vmatmul.mubr.msk.f32.vlgmr.msra.gmra.mxu1 %vm2096_vm1, %v7632_v13  ;;  %v4330_v17 = vpop.permute.xlu1 %4329 }
 0x4f8   : > { %v4333_v19 = vsel %vm1292_vm10, %v8704_v51, %v4330_v17  ;;  %v4334_v20 = vsel %vm1292_vm10, %v4330_v17, %v4332_v11  ;;  %7845 = vmatprep.mubr.msk.f32.mxu0 %vm8166_vm0, %v8155_v0  ;;  %4405 = vmatprep.mubr.f32.mxu1 %v8155_v0  ;;  %v4493_v26 = vsel %vm1474_vm11, %v8713_v54, %v4490_v16  ;;  %v4977_v54 = vld [vmem:[%s10559_s7] sm:$0xff] }
 0x4f9   : > { %4371 = vmatprep.subr.mxu1 %v4334_v20  ;;  %7848 = vmatprep.subr.mxu0 %v8155_v0 }
 0x4fa   : > { %4372 = vmatpush1.msra.mxu1 %v4333_v19  ;;  %7846 = vmatmul.mubr.msk.f32.vlgmr.msra.gmra.mxu0 %vm2096_vm1, %v7635_v18 }
 0x4fb   : > { %v4652_v21 = vpop.permute.xlu0 %4651  ;;  %7636 = vmatmul.mubr.msk.f32.vlgmr.msra.gmra.mxu1 %vm2096_vm1, %v7635_v18  ;;  %v4492_v22 = vpop.permute.xlu1 %4491  ;;  %7850 = vmatprep.mubr.msk.f32.mxu0 %vm8166_vm0, %v8155_v0 }
 0x4fc   : > { %7849 = vmatpush3.msra.mxu0 %v4492_v22  ;;  %v4494_v25 = vsel %vm1474_vm11, %v4490_v16, %v4492_v22  ;;  %4565 = vmatprep.mubr.f32.mxu1 %v8155_v0 }
 0x4fd   : > { %4531 = vmatprep.subr.mxu1 %v4494_v25  ;;  %7853 = vmatprep.subr.mxu0 %v8155_v0 }
 0x4fe   : > { %4532 = vmatpush1.msra.mxu1 %v4493_v26  ;;  %7851 = vmatmul.mubr.msk.f32.vlgmr.msra.gmra.mxu0 %vm2096_vm1, %v7638_v24 }
 0x4ff   : > { %7854 = vmatpush3.msra.mxu0 %v4652_v21  ;;  %v4810_v27 = vpop.permute.xlu0 %4809  ;;  %7639 = vmatmul.mubr.msk.f32.vlgmr.msra.gmra.mxu1 %vm2096_vm1, %v7638_v24  ;;  %v4650_v28 = vpop.permute.xlu1 %4649 }
 0x500   : > { %v4653_v30 = vsel %vm1656_vm12, %v8723_v61, %v4650_v28  ;;  %v4654_v31 = vsel %vm1656_vm12, %v4650_v28, %v4652_v21  ;;  %4725 = vmatprep.mubr.f32.mxu1 %v8155_v0  ;;  %7855 = vmatprep.mubr.msk.f32.mxu0 %vm8166_vm0, %v8155_v0 }
 0x501   : > { %4691 = vmatprep.subr.mxu1 %v4654_v31  ;;  %7858 = vmatprep.subr.mxu0 %v8155_v0 }
 0x502   : > { %4692 = vmatpush1.msra.mxu1 %v4653_v30  ;;  %7856 = vmatmul.mubr.msk.f32.vlgmr.msra.gmra.mxu0 %vm2096_vm1, %v7641_v29 }
 0x503   : > { %v4808_v33 = vpop.permute.xlu0 %4807  ;;  %7642 = vmatmul.mubr.msk.f32.vlgmr.msra.gmra.mxu1 %vm2096_vm1, %v7641_v29  ;;  %v4812_v34 = vpop.permute.xlu1 %4811  ;;  %7860 = vmatprep.mubr.msk.f32.mxu0 %vm8166_vm0, %v8155_v0 }
 0x504   : > { %v4813_v36 = vsel %vm1838_vm13, %v4808_v33, %v4810_v27  ;;  %7859 = vmatpush3.msra.mxu0 %v4812_v34  ;;  %v4814_v37 = vsel %vm1838_vm13, %v4810_v27, %v4812_v34  ;;  %4885 = vmatprep.mubr.f32.mxu1 %v8155_v0 }
 0x505   : > { %4851 = vmatprep.subr.mxu1 %v4814_v37  ;;  %7863 = vmatprep.subr.mxu0 %v8155_v0 }
 0x506   : > { %4852 = vmatpush1.msra.mxu1 %v4813_v36  ;;  %7861 = vmatmul.mubr.msk.f32.vlgmr.msra.gmra.mxu0 %vm2096_vm1, %v7644_v35 }
 0x507   : > { %7645 = vmatmul.mubr.msk.f32.vlgmr.msra.gmra.mxu1 %vm2096_vm1, %v7644_v35  ;;  %7865 = vmatprep.mubr.msk.f32.mxu0 %vm8166_vm0, %v8155_v0 }
 0x508   : > { %5091 = vmatprep.mubr.f32.mxu1 %v8155_v0 }
 0x510   : > { %v2021_v41 = vpop.permute.xlu1 %2020 }
 0x511   : > { %v2026_v42 = vadd.f32 %v2021_v41, %v8470_v57  ;;  %v2027_v43 = vadd.f32 %v2021_v41, %v2009_v39  ;;  %v2028_v44 = vadd.f32 %v2021_v41, %v8453_v38  ;;  %v4979_v38 = vld [vmem:[%s10559_s7 + $0x10] sm:$0xff]  ;;  %v4980_v57 = vld [vmem:[%s10559_s7 + $0x18] sm:$0xff] }
 0x513   : > { %v2032_v45 = vmax.f32 %v2026_v42, 0.0  ;;  %v2033_v46 = vmax.f32 %v2027_v43, 0.0  ;;  %v2034_v48 = vmax.f32 %v2028_v44, 0.0 }
 0x515   : > { %v2054_v50 = vmul.f32 %v8468_v53, %v2032_v45  ;;  %v2056_v51 = vmul.f32 %v8477_v62, %v2034_v48  ;;  %v2055_v52 = vmul.f32 %v8473_v58, %v2033_v46 }
 0x517   : > { %5057 = vmatprep.subr.mxu1 %v2055_v52  ;;  %7864 = vmatpush3.msra.mxu0 %v2056_v51 }
 0x518   : > { %5058 = vmatpush1.msra.mxu1 %v2054_v50  ;;  %7866 = vmatmul.mubr.msk.f32.vlgmr.msra.gmra.mxu0 %vm2096_vm1, %v4977_v54 }
 0x519   : > { %7647 = vmatmul.mubr.msk.f32.vlgmr.msra.gmra.mxu1 %vm2096_vm1, %v4977_v54  ;;  %7868 = vmatprep.mubr.msk.f32.mxu0 %vm8166_vm0, %v8155_v0 }
 0x51a   : > { %5097 = vmatprep.mubr.f32.mxu1 %v8155_v0 }
 0x51c   : > { %7869 = vmatmul.mubr.msk.f32.gmra.mxu0 %vm2096_vm1, %v4978_v32 }
 0x51d   : > { %7648 = vmatmul.mubr.msk.f32.gmra.mxu1 %vm2096_vm1, %v4978_v32  ;;  %7871 = vmatprep.mubr.msk.f32.mxu0 %vm8166_vm0, %v8155_v0 }
 0x51e   : > { %5103 = vmatprep.mubr.f32.mxu1 %v8155_v0 }
 0x520   : > { %7872 = vmatmul.mubr.msk.f32.gmra.mxu0 %vm2096_vm1, %v4979_v38 }
 0x521   : > { %7649 = vmatmul.mubr.msk.f32.gmra.mxu1 %vm2096_vm1, %v4979_v38  ;;  %7874 = vmatprep.mubr.msk.f32.mxu0 %vm8166_vm0, %v8155_v0 }
 0x522   : > { %5109 = vmatprep.mubr.f32.mxu1 %v8155_v0 }
 0x524   : > { %7875 = vmatmul.mubr.msk.f32.gmra.mxu0 %vm2096_vm1, %v4980_v57 }
 0x525   : > { %7650 = vmatmul.mubr.msk.f32.gmra.mxu1 %vm2096_vm1, %v4980_v57  ;;  %7877 = vmatprep.mubr.msk.f32.mxu0 %vm8166_vm0, %v8155_v0 }
 0x526   : > { %5115 = vmatprep.mubr.f32.mxu1 %v8155_v0 }
 0x528   : > { %7878 = vmatmul.mubr.msk.f32.gmra.mxu0 %vm2096_vm1, %v4981_v6 }
 0x529   : > { %7651 = vmatmul.mubr.msk.f32.gmra.mxu1 %vm2096_vm1, %v4981_v6 }
 0x5a1   : > { %v3697_v55 = vpop.f32.mrf.mxu0 }
 0x5a3   : > { %v7822_v56 = vpop.f32.mrf.mxu0 }
 0x5a4   : > { %v4969_v56 = vpop.permute.xlu0 %4968 }
 0x5a5   : > { %v3841_v59 = vpop.f32.mrf.mxu0 }
 0x5a6   : > { %v3842_v2 = vadd.f32 %v3841_v59, %v3697_v55 }
 0x5a7   : > { %v3626_v60 = vpop.f32.mrf.mxu1  ;;  %v7827_v61 = vpop.f32.mrf.mxu0 }
 0x5a9   : > { %v3628_v63 = vpop.f32.mrf.mxu1 }
 0x5ab   : > { %v3770_v1 = vpop.f32.mrf.mxu1 }
 0x5ac   : > { %v3771_v19 = vadd.f32 %v3770_v1, %v3626_v60 }
 0x5ad   : > { %v3772_v3 = vpop.f32.mrf.mxu1 }
 0x5ae   : > { %v3998_v4 = vpop.f32.mrf.mxu0  ;;  %v3773_v22 = vadd.f32 %v3772_v3, %v3628_v63  ;;  %v4995_v63 = vpop.permute.xlu1 %4994 }
 0x5af   : > { %v3927_v5 = vpop.f32.mrf.mxu1  ;;  %v4004_v7 = vadd.f32 %v3998_v4, %v3842_v2 }
 0x5b0   : > { %v7832_v8 = vpop.f32.mrf.mxu0  ;;  %v4002_v24 = vadd.f32 %v3927_v5, %v3771_v19 }
 0x5b1   : > { %v3929_v9 = vpop.f32.mrf.mxu1 }
 0x5b2   : > { %v4158_v10 = vpop.f32.mrf.mxu0  ;;  %v4003_v28 = vadd.f32 %v3929_v9, %v3773_v22 }
 0x5b3   : > { %v4087_v0 = vpop.f32.mrf.mxu1  ;;  %v4164_v11 = vadd.f32 %v4158_v10, %v4004_v7  ;;  %v8858_v7 = vpop.permute.xlu1 %4999 }
 0x5b4   : > { %v7837_v12 = vpop.f32.mrf.mxu0  ;;  %v4162_v29 = vadd.f32 %v4087_v0, %v4002_v24 }
 0x5b5   : > { %v4089_v13 = vpop.f32.mrf.mxu1 }
 0x5b6   : > { %v4318_v14 = vpop.f32.mrf.mxu0  ;;  %v4163_v33 = vadd.f32 %v4089_v13, %v4003_v28 }
 0x5b7   : > { %v4247_v15 = vpop.f32.mrf.mxu1  ;;  %v4324_v16 = vadd.f32 %v4318_v14, %v4164_v11  ;;  %v4990_v8 = vpop.permute.xlu1 %4989 }
 0x5b8   : > { %v7842_v17 = vpop.f32.mrf.mxu0  ;;  %v4322_v34 = vadd.f32 %v4247_v15, %v4162_v29 }
 0x5b9   : > { %v4249_v18 = vpop.f32.mrf.mxu1 }
 0x5ba   : > { %v4478_v20 = vpop.f32.mrf.mxu0  ;;  %v4323_v39 = vadd.f32 %v4249_v18, %v4163_v33 }
 0x5bb   : > { %v4407_v21 = vpop.f32.mrf.mxu1  ;;  %v4484_v25 = vadd.f32 %v4478_v20, %v4324_v16 }
 0x5bc   : > { %v7847_v26 = vpop.f32.mrf.mxu0  ;;  %v4482_v41 = vadd.f32 %v4407_v21, %v4322_v34 }
 0x5bd   : > { %v4409_v27 = vpop.f32.mrf.mxu1 }
 0x5be   : > { %v4638_v30 = vpop.f32.mrf.mxu0  ;;  %v4483_v44 = vadd.f32 %v4409_v27, %v4323_v39 }
 0x5bf   : > { %v4567_v31 = vpop.f32.mrf.mxu1  ;;  %v4644_v35 = vadd.f32 %v4638_v30, %v4484_v25 }
 0x5c0   : > { %v7852_v36 = vpop.f32.mrf.mxu0  ;;  %v4642_v45 = vadd.f32 %v4567_v31, %v4482_v41 }
 0x5c1   : > { %v4569_v37 = vpop.f32.mrf.mxu1 }
 0x5c2   : > { %v4798_v42 = vpop.f32.mrf.mxu0  ;;  %v4643_v51 = vadd.f32 %v4569_v37, %v4483_v44 }
 0x5c3   : > { %v4727_v43 = vpop.f32.mrf.mxu1  ;;  %v4804_v46 = vadd.f32 %v4798_v42, %v4644_v35 }
 0x5c4   : > { %v7857_v48 = vpop.f32.mrf.mxu0  ;;  %v4802_v52 = vadd.f32 %v4727_v43, %v4642_v45 }
 0x5c5   : > { %v4729_v50 = vpop.f32.mrf.mxu1 }
 0x5c6   : > { %v4958_v54 = vpop.f32.mrf.mxu0  ;;  %v4803_v38 = vadd.f32 %v4729_v50, %v4643_v51 }
 0x5c7   : > { %v4887_v32 = vpop.f32.mrf.mxu1  ;;  %v4964_v6 = vadd.f32 %v4958_v54, %v4804_v46 }
 0x5c8   : > { %v4962_v57 = vadd.f32 %v4887_v32, %v4802_v52  ;;  %v7862_v55 = vpop.f32.mrf.mxu0 }
 0x5c9   : > { %v4889_v59 = vpop.f32.mrf.mxu1  ;;  %v4973_v1 = vadd.f32 %v4969_v56, %v4964_v6 }
 0x5ca   : > { %v4971_v60 = vadd.f32 %v4969_v56, %v4962_v57  ;;  %v4963_v61 = vadd.f32 %v4889_v59, %v4803_v38 }
 0x5cb   : > { %v4976_v5 = vmul.f32 %v4973_v1, %v8477_v62 }
 0x5cc   : > { %v4972_v2 = vadd.f32 %v4969_v56, %v4963_v61  ;;  %v4974_v3 = vmul.f32 %v4971_v60, %v8468_v53 }
 0x5ce   : > { %5230 = vrot.lane.b32.xlu1 %v4974_v3, %s8156_s19  ;;  %v4975_v4 = vmul.f32 %v4972_v2, %v8473_v58 }
 0x5d0   : > { %5232 = vrot.lane.b32.xlu0 %v4975_v4, %s8156_s19 }
 0x5d2   : > { %5234 = vrot.lane.b32.xlu1 %v4976_v5, %s8156_s19  ;;  %s10787_s19 = smov 91  }
 0x5d8   : > { %v5188_v9 = vpop.f32.mrf.mxu0 }
 0x5d9   : > { %v5189_v10 = vadd.f32 %v5188_v9, %v4990_v8  ;;  %v5093_v0 = vpop.f32.mrf.mxu1 }
 0x5da   : > { %v5094_v11 = vadd.f32 %v5093_v0, %v4990_v8  ;;  %v7867_v12 = vpop.f32.mrf.mxu0 }
 0x5db   : > { %v8861_v13 = vmul.f32 0.1, %v5189_v10  ;;  %v5095_v53 = vpop.f32.mrf.mxu1 }
 0x5dc   : > { %v8863_v14 = vmul.f32 0.1, %v5094_v11  ;;  %v5096_v58 = vadd.f32 %v5095_v53, %v4990_v8  ;;  %v5193_v15 = vpop.f32.mrf.mxu0 }
 0x5dd   : > { %v5194_v16 = vadd.f32 %v5193_v15, %v4995_v63  ;;  %v5254_v62 = vrot.slane %v8861_v13, 1  ;;  %v5263_v17 = vrot.slane %v8861_v13, 2  ;;  %v5099_v18 = vpop.f32.mrf.mxu1  ;;  %v5272_v20 = vrot.slane %v8861_v13, 3 }
 0x5de   : > { %v8867_v19 = vmul.f32 0.1, %v5096_v58  ;;  %v5281_v21 = vrot.slane %v8861_v13, 4  ;;  %v5290_v22 = vrot.slane %v8861_v13, 5  ;;  %v7870_v24 = vpop.f32.mrf.mxu0  ;;  %v5299_v27 = vrot.slane %v8861_v13, 6 }
 0x5df   : > { %v8872_v25 = vmul.f32 0.1, %v5194_v16  ;;  %v5260_v26 = vmax.f32 %v8861_v13, %v5254_v62  ;;  %v5100_v28 = vadd.f32 %v5099_v18, %v4995_v63  ;;  %v5101_v29 = vpop.f32.mrf.mxu1  ;;  %v5308_v30 = vrot.slane %v8861_v13, 7 }
 0x5e0   : > { %v5252_v31 = vrot.slane %v8863_v14, 1  ;;  %v5261_v33 = vrot.slane %v8863_v14, 2  ;;  %v5270_v34 = vrot.slane %v8863_v14, 3  ;;  %v5198_v35 = vpop.f32.mrf.mxu0  ;;  %v5279_v39 = vrot.slane %v8863_v14, 4 }
 0x5e1   : > { %v5269_v36 = vmax.f32 %v5260_v26, %v5263_v17  ;;  %v8880_v37 = vmul.f32 0.1, %v5100_v28  ;;  %v5288_v41 = vrot.slane %v8863_v14, 5  ;;  %v5297_v43 = vrot.slane %v8863_v14, 6  ;;  %v5105_v3 = vpop.f32.mrf.mxu1 }
 0x5e2   : > { %v5258_v42 = vmax.f32 %v8863_v14, %v5252_v31  ;;  %v5102_v44 = vadd.f32 %v5101_v29, %v4995_v63  ;;  %v5253_v45 = vrot.slane %v8867_v19, 1  ;;  %v7873_v46 = vpop.f32.mrf.mxu0  ;;  %v5306_v50 = vrot.slane %v8863_v14, 7 }
 0x5e3   : > { %10721 = vst [vmem:[#allocation7_spill] sm:$0xff] %v8880_v37  ;;  %v5278_v48 = vmax.f32 %v5269_v36, %v5272_v20  ;;  %v5262_v51 = vrot.slane %v8867_v19, 2  ;;  %v5271_v52 = vrot.slane %v8867_v19, 3  ;;  %v5280_v57 = vrot.slane %v8867_v19, 4 }
 0x5e4   : > { %v5267_v54 = vmax.f32 %v5258_v42, %v5261_v33  ;;  %v8890_v32 = vmul.f32 0.1, %v5102_v44  ;;  %v5259_v38 = vmax.f32 %v8867_v19, %v5253_v45  ;;  %v8894_v6 = vpop.f32.mrf.mxu0  ;;  %v5289_v56 = vrot.slane %v8867_v19, 5 }
 0x5e5   : > { %v5287_v55 = vmax.f32 %v5278_v48, %v5281_v21  ;;  %v5298_v59 = vrot.slane %v8867_v19, 6  ;;  %v5199_v60 = vadd.f32 %v5198_v35, %v8858_v7  ;;  %v5307_v1 = vrot.slane %v8867_v19, 7 }
 0x5e6   : > { %v5276_v61 = vmax.f32 %v5267_v54, %v5270_v34  ;;  %v5268_v63 = vmax.f32 %v5259_v38, %v5262_v51  ;;  %v5865_v2 = vrot.slane %v8872_v25, 1  ;;  %v7876_v4 = vpop.f32.mrf.mxu0  ;;  %v5874_v9 = vrot.slane %v8872_v25, 2 }
 0x5e7   : > { %v5296_v5 = vmax.f32 %v5287_v55, %v5290_v22  ;;  %v8901_v8 = vmul.f32 0.1, %v5199_v60  ;;  %v5883_v10 = vrot.slane %v8872_v25, 3  ;;  %v5892_v53 = vrot.slane %v8872_v25, 4 }
 0x5e8   : > { %v5285_v0 = vmax.f32 %v5276_v61, %v5279_v39  ;;  %v5277_v11 = vmax.f32 %v5268_v63, %v5271_v52  ;;  %v5871_v12 = vmax.f32 %v8872_v25, %v5865_v2  ;;  %v8907_v58 = vpop.f32.mrf.mxu0  ;;  %v5901_v16 = vrot.slane %v8872_v25, 5 }
 0x5e9   : > { %v5305_v15 = vmax.f32 %v5296_v5, %v5299_v27  ;;  %v5910_v62 = vrot.slane %v8872_v25, 6  ;;  %v5106_v17 = vadd.f32 %v5105_v3, %v8858_v7  ;;  %v5863_v22 = vrot.slane %v8880_v37, 1 }
 0x5ea   : > { %v5294_v18 = vmax.f32 %v5285_v0, %v5288_v41  ;;  %v5286_v20 = vmax.f32 %v5277_v11, %v5280_v57  ;;  %v5880_v21 = vmax.f32 %v5871_v12, %v5874_v9  ;;  %v7879_v24 = vpop.f32.mrf.mxu0  ;;  %v5922_v28 = vrot.slane %v8901_v8, 7 }
 0x5eb   : > { %v5314_v26 = vmax.f32 %v5305_v15, %v5308_v30  ;;  %v8914_v29 = vmul.f32 0.1, %v5106_v17  ;;  %v5872_v31 = vrot.slane %v8880_v37, 2  ;;  %v5869_v35 = vmax.f32 %v8880_v37, %v5863_v22 }
 0x5ec   : > { %v5303_v27 = vmax.f32 %v5294_v18, %v5297_v43  ;;  %v5295_v33 = vmax.f32 %v5286_v20, %v5289_v56  ;;  %v5889_v34 = vmax.f32 %v5880_v21, %v5883_v10  ;;  %v5881_v39 = vrot.slane %v8880_v37, 3 }
 0x5ed   : > { %10722 = vst [vmem:[#allocation8_spill] sm:$0xff] %v8914_v29  ;;  %v8919_v36 = vmax.f32 %v5314_v26, %v8872_v25  ;;  %v5890_v41 = vrot.slane %v8880_v37, 4  ;;  %v5899_v30 = vrot.slane %v8880_v37, 5  ;;  %v5878_v46 = vmax.f32 %v5869_v35, %v5872_v31 }
 0x5ee   : > { %v5312_v42 = vmax.f32 %v5303_v27, %v5306_v50  ;;  %v5304_v44 = vmax.f32 %v5295_v33, %v5298_v59  ;;  %v5898_v45 = vmax.f32 %v5889_v34, %v5892_v53 }
 0x5ef   : > { %v5347_v48 = vrot.slane %v8919_v36, 6  ;;  %v5362_v43 = vrot.slane %v8919_v36, 5  ;;  %v5377_v51 = vrot.slane %v8919_v36, 4  ;;  %v5392_v52 = vrot.slane %v8919_v36, 3 }
 0x5f0   : > { %v5407_v54 = vrot.slane %v8919_v36, 2  ;;  %v5422_v38 = vrot.slane %v8919_v36, 1  ;;  %v5437_v57 = vsub.f32 %v8872_v25, %v8919_v36  ;;  %v8933_v50 = vmax.f32 %v5312_v42, %v8880_v37 }
 0x5f1   : > { %v5353_v55 = vsub.f32 %v8861_v13, %v5347_v48  ;;  %v5368_v56 = vsub.f32 %v8861_v13, %v5362_v43  ;;  %v5383_v59 = vsub.f32 %v8861_v13, %v5377_v51  ;;  %v5398_v60 = vsub.f32 %v8861_v13, %v5392_v52  ;;  %v5107_v48 = vpop.f32.mrf.mxu1 }
 0x5f2   : > { %v5413_v61 = vsub.f32 %v8861_v13, %v5407_v54  ;;  %v5428_v63 = vsub.f32 %v8861_v13, %v5422_v38  ;;  %v5442_v2 = vmul.f32 1.442695, %v5437_v57  ;;  %v5345_v3 = vrot.slane %v8933_v50, 6 }
 0x5f3   : > { %v5358_v4 = vmul.f32 1.442695, %v5353_v55  ;;  %v5373_v5 = vmul.f32 1.442695, %v5368_v56  ;;  %v5388_v9 = vmul.f32 1.442695, %v5383_v59  ;;  %v5435_v10 = vsub.f32 %v8880_v37, %v8933_v50 }
 0x5f4   : > { %v5403_v0 = vmul.f32 1.442695, %v5398_v60  ;;  %v5418_v11 = vmul.f32 1.442695, %v5413_v61  ;;  %v5433_v12 = vmul.f32 1.442695, %v5428_v63  ;;  %7905 = vpow2.f32 %v5442_v2 }
 0x5f5   : > { %7907 = vpow2.f32 %v5358_v4  ;;  %v5351_v53 = vsub.f32 %v8863_v14, %v5345_v3  ;;  %v5360_v15 = vrot.slane %v8933_v50, 5  ;;  %v5375_v17 = vrot.slane %v8933_v50, 4 }
 0x5f6   : > { %7909 = vpow2.f32 %v5373_v5  ;;  %v5390_v18 = vrot.slane %v8933_v50, 3  ;;  %v5405_v20 = vrot.slane %v8933_v50, 2  ;;  %v5420_v21 = vrot.slane %v8933_v50, 1 }
 0x5f7   : > { %7911 = vpow2.f32 %v5388_v9  ;;  %v5354_v22 = vmul.f32 1.442695, %v5351_v53  ;;  %v5366_v24 = vsub.f32 %v8863_v14, %v5360_v15  ;;  %v5381_v26 = vsub.f32 %v8863_v14, %v5375_v17 }
 0x5f8   : > { %7913 = vpow2.f32 %v5403_v0  ;;  %v5396_v31 = vsub.f32 %v8863_v14, %v5390_v18  ;;  %v5411_v27 = vsub.f32 %v8863_v14, %v5405_v20  ;;  %v5426_v33 = vsub.f32 %v8863_v14, %v5420_v21  ;;  %v8997_v20 = vpop.permute.xlu0 %5004 }
 0x5f9   : > { %7915 = vpow2.f32 %v5418_v11  ;;  %v5369_v34 = vmul.f32 1.442695, %v5366_v24  ;;  %v5384_v35 = vmul.f32 1.442695, %v5381_v26  ;;  %v5908_v42 = vrot.slane %v8880_v37, 6 }
 0x5fa   : > { %7917 = vpow2.f32 %v5433_v12  ;;  %v5399_v43 = vmul.f32 1.442695, %v5396_v31  ;;  %v5414_v51 = vmul.f32 1.442695, %v5411_v27  ;;  %v5438_v52 = vmul.f32 1.442695, %v5435_v10 }
 0x5fb   : > { %7919 = vpow2.f32 %v5354_v22  ;;  %v5313_v54 = vmax.f32 %v5304_v44, %v5307_v1  ;;  %v5907_v38 = vmax.f32 %v5898_v45, %v5901_v16  ;;  %v5887_v57 = vmax.f32 %v5878_v46, %v5881_v39 }
 0x5fc   : > { %7921 = vpow2.f32 %v5369_v34  ;;  %v5429_v55 = vmul.f32 1.442695, %v5426_v33  ;;  %v5108_v56 = vadd.f32 %v5107_v48, %v8858_v7  ;;  %v5864_v59 = vrot.slane %v8890_v32, 1 }
 0x5fd   : > { %7923 = vpow2.f32 %v5384_v35  ;;  %v8963_v60 = vmax.f32 %v5313_v54, %v8890_v32  ;;  %v5916_v61 = vmax.f32 %v5907_v38, %v5910_v62  ;;  %v5896_v1 = vmax.f32 %v5887_v57, %v5890_v41 }
 0x5fe   : > { %7925 = vpow2.f32 %v5399_v43  ;;  %v5920_v16 = vrot.slane %v8914_v29, 7  ;;  %v5870_v39 = vmax.f32 %v8890_v32, %v5864_v59  ;;  %v5873_v44 = vrot.slane %v8890_v32, 2 }
 0x5ff   : > { %7927 = vpow2.f32 %v5414_v51  ;;  %v5361_v7 = vrot.slane %v8963_v60, 5  ;;  %v5391_v45 = vrot.slane %v8963_v60, 3  ;;  %v5421_v46 = vrot.slane %v8963_v60, 1 }
 0x600   : > { %7929 = vpow2.f32 %v5429_v55  ;;  %v5928_v62 = vmax.f32 %v5916_v61, %v5922_v28  ;;  %v5905_v41 = vmax.f32 %v5896_v1, %v5899_v30  ;;  %v8979_v63 = vmul.f32 0.1, %v5108_v56 }
 0x601   : > { %v8981_v2 = vpop.eup %7905  ;;  %v5367_v3 = vsub.f32 %v8867_v19, %v5361_v7  ;;  %v5397_v4 = vsub.f32 %v8867_v19, %v5391_v45  ;;  %v5427_v5 = vsub.f32 %v8867_v19, %v5421_v46  ;;  %v5879_v9 = vmax.f32 %v5870_v39, %v5873_v44 }
 0x602   : > { %10723 = vst [vmem:[#allocation9_spill] sm:$0xff] %v8979_v63  ;;  %10724 = vst [vmem:[#allocation10_spill] sm:$0xff] %v8981_v2  ;;  %v8986_v10 = vpop.eup %7907  ;;  %7931 = vpow2.f32 %v5438_v52  ;;  %v8989_v0 = vmax.f32 %v5928_v62, %v8901_v8  ;;  %v5882_v28 = vrot.slane %v8890_v32, 3  ;;  %v5891_v30 = vrot.slane %v8890_v32, 4 }
 0x603   : > { %10725 = vst [vmem:[#allocation11_spill] sm:$0xff] %v8986_v10  ;;  %v8993_v11 = vpop.eup %7909  ;;  %v5371_v12 = vmul.f32 1.442695, %v5367_v3  ;;  %v5401_v53 = vmul.f32 1.442695, %v5397_v4  ;;  %v5914_v17 = vmax.f32 %v5905_v41, %v5908_v42  ;;  %v5204_v35 = vadd.f32 %v8894_v6, %v8997_v20 }
 0x604   : > { %10726 = vst [vmem:[#allocation12_spill] sm:$0xff] %v8993_v11  ;;  %v5431_v15 = vmul.f32 1.442695, %v5427_v5  ;;  %v8995_v18 = vpop.eup %7911  ;;  %v5961_v21 = vrot.slane %v8989_v0, 6  ;;  %v5976_v22 = vrot.slane %v8989_v0, 5  ;;  %v5991_v24 = vrot.slane %v8989_v0, 4 }
 0x605   : > { %10727 = vst [vmem:[#allocation13_spill] sm:$0xff] %v8995_v18  ;;  %v6006_v26 = vrot.slane %v8989_v0, 3  ;;  %v9003_v31 = vpop.eup %7913  ;;  %v6021_v27 = vrot.slane %v8989_v0, 2  ;;  %v6036_v33 = vrot.slane %v8989_v0, 1  ;;  %v6051_v34 = vsub.f32 %v8901_v8, %v8989_v0 }
 0x606   : > { %10728 = vst [vmem:[#allocation14_spill] sm:$0xff] %v9003_v31  ;;  %v9011_v42 = vpop.eup %7915  ;;  %7933 = vpow2.f32 %v5371_v12  ;;  %v5967_v48 = vsub.f32 %v8872_v25, %v5961_v21  ;;  %v5982_v43 = vsub.f32 %v8872_v25, %v5976_v22  ;;  %v5997_v51 = vsub.f32 %v8872_v25, %v5991_v24 }
 0x607   : > { %10729 = vst [vmem:[#allocation15_spill] sm:$0xff] %v9011_v42  ;;  %v9016_v52 = vpop.eup %7917  ;;  %7935 = vpow2.f32 %v5401_v53  ;;  %v6012_v54 = vsub.f32 %v8872_v25, %v6006_v26  ;;  %v6027_v38 = vsub.f32 %v8872_v25, %v6021_v27  ;;  %v6042_v57 = vsub.f32 %v8901_v8, %v6036_v33 }
 0x608   : > { %10730 = vst [vmem:[#allocation16_spill] sm:$0xff] %v9016_v52  ;;  %v9021_v55 = vpop.eup %7919  ;;  %7937 = vpow2.f32 %v5431_v15  ;;  %v5972_v6 = vmul.f32 1.442695, %v5967_v48  ;;  %v5987_v56 = vmul.f32 1.442695, %v5982_v43  ;;  %v5926_v59 = vmax.f32 %v5914_v17, %v5920_v16 }
 0x609   : > { %v9023_v61 = vpop.eup %7921  ;;  %v6002_v1 = vmul.f32 1.442695, %v5997_v51  ;;  %v6017_v39 = vmul.f32 1.442695, %v6012_v54  ;;  %v6032_v44 = vmul.f32 1.442695, %v6027_v38  ;;  %v5888_v7 = vmax.f32 %v5879_v9, %v5882_v28 }
 0x60a   : > { %v9025_v45 = vpop.eup %7923  ;;  %7939 = vpow2.f32 %v5972_v6  ;;  %v6047_v46 = vmul.f32 1.442695, %v6042_v57  ;;  %v6056_v62 = vmul.f32 1.442695, %v6051_v34  ;;  %v9028_v41 = vmax.f32 %v5926_v59, %v8914_v29 }
 0x60b   : > { %10731 = vst [vmem:[#allocation17_spill] sm:$0xff] %v9025_v45  ;;  %v9030_v3 = vpop.eup %7925  ;;  %7941 = vpow2.f32 %v5987_v56  ;;  %v5897_v4 = vmax.f32 %v5888_v7, %v5891_v30  ;;  %v5900_v16 = vrot.slane %v8890_v32, 5  ;;  %v5909_v5 = vrot.slane %v8890_v32, 6 }
 0x60c   : > { %10732 = vst [vmem:[#allocation18_spill] sm:$0xff] %v9028_v41  ;;  %10733 = vst [vmem:[#allocation19_spill] sm:$0xff] %v9030_v3  ;;  %v9034_v12 = vpop.eup %7927  ;;  %v5959_v9 = vrot.slane %v9028_v41, 6  ;;  %v5974_v28 = vrot.slane %v9028_v41, 5  ;;  %v5989_v53 = vrot.slane %v9028_v41, 4  ;;  %v5921_v15 = vrot.slane %v8979_v63, 7 }
 0x60d   : > { %10734 = vst [vmem:[#allocation20_spill] sm:$0xff] %v9034_v12  ;;  %v9040_v17 = vpop.eup %7929  ;;  %7943 = vpow2.f32 %v6002_v1  ;;  %v6004_v21 = vrot.slane %v9028_v41, 3  ;;  %v6019_v30 = vrot.slane %v9028_v41, 2  ;;  %v6034_v22 = vrot.slane %v9028_v41, 1 }
 0x60e   : > { %10735 = vst [vmem:[#allocation21_spill] sm:$0xff] %v9040_v17  ;;  %7945 = vpow2.f32 %v6017_v39  ;;  %v5965_v24 = vsub.f32 %v8880_v37, %v5959_v9  ;;  %v5980_v26 = vsub.f32 %v8880_v37, %v5974_v28  ;;  %v5995_v27 = vsub.f32 %v8880_v37, %v5989_v53 }
 0x60f   : > { %v9048_v33 = vpop.eup %7931  ;;  %7947 = vpow2.f32 %v6032_v44  ;;  %v6010_v34 = vsub.f32 %v8880_v37, %v6004_v21  ;;  %v6025_v48 = vsub.f32 %v8880_v37, %v6019_v30  ;;  %v6040_v43 = vsub.f32 %v8914_v29, %v6034_v22  ;;  %v5111_v44 = vpop.f32.mrf.mxu1 }
 0x610   : > { %10736 = vst [vmem:[#allocation22_spill] sm:$0xff] %v9048_v33  ;;  %7949 = vpow2.f32 %v6047_v46  ;;  %v5968_v51 = vmul.f32 1.442695, %v5965_v24  ;;  %v5983_v54 = vmul.f32 1.442695, %v5980_v26  ;;  %v6049_v56 = vsub.f32 %v8914_v29, %v9028_v41 }
 0x611   : > { %v5998_v38 = vmul.f32 1.442695, %v5995_v27  ;;  %7951 = vpow2.f32 %v6056_v62  ;;  %v6013_v57 = vmul.f32 1.442695, %v6010_v34  ;;  %v6028_v6 = vmul.f32 1.442695, %v6025_v48  ;;  %v5113_v34 = vpop.f32.mrf.mxu1 }
 0x612   : > { %7953 = vpow2.f32 %v5968_v51  ;;  %v5906_v59 = vmax.f32 %v5897_v4, %v5900_v16  ;;  %v9055_v1 = vmul.f32 0.1, %v5204_v35  ;;  %v6394_v39 = vrot.slane %v8901_v8, 1 }
 0x613   : > { %v9058_v7 = vpop.eup %7933  ;;  %7955 = vpow2.f32 %v5983_v54  ;;  %v6043_v46 = vmul.f32 1.442695, %v6040_v43  ;;  %v6052_v9 = vmul.f32 1.442695, %v6049_v56  ;;  %v6403_v28 = vrot.slane %v8901_v8, 2 }
 0x614   : > { %10737 = vst [vmem:[#allocation23_spill] sm:$0xff] %v9058_v7  ;;  %v9061_v62 = vpop.eup %7935  ;;  %7957 = vpow2.f32 %v5998_v38  ;;  %v5915_v53 = vmax.f32 %v5906_v59, %v5909_v5  ;;  %v6400_v21 = vmax.f32 %v8901_v8, %v6394_v39  ;;  %v6412_v4 = vrot.slane %v8901_v8, 3 }
 0x615   : > { %10738 = vst [vmem:[#allocation24_spill] sm:$0xff] %v9061_v62  ;;  %v9065_v35 = vpop.eup %7937  ;;  %7959 = vpow2.f32 %v6013_v57  ;;  %v6421_v16 = vrot.slane %v8901_v8, 4  ;;  %v6430_v30 = vrot.slane %v8901_v8, 5  ;;  %v6442_v22 = vrot.slane %v9055_v1, 6 }
 0x616   : > { %10739 = vst [vmem:[#allocation25_spill] sm:$0xff] %v9065_v35  ;;  %7961 = vpow2.f32 %v6028_v6  ;;  %v5927_v24 = vmax.f32 %v5915_v53, %v5921_v15  ;;  %v6409_v26 = vmax.f32 %v6400_v21, %v6403_v28  ;;  %v5112_v27 = vadd.f32 %v5111_v44, %v8997_v20 }
 0x617   : > { %v9071_v5 = vpop.eup %7939  ;;  %7963 = vpow2.f32 %v6043_v46  ;;  %v6451_v48 = vrot.slane %v9055_v1, 7  ;;  %v6392_v43 = vrot.slane %v8914_v29, 1  ;;  %v6401_v51 = vrot.slane %v8914_v29, 2 }
 0x618   : > { %10740 = vst [vmem:[#allocation26_spill] sm:$0xff] %v9071_v5  ;;  %v9076_v54 = vpop.eup %7941  ;;  %v9079_v38 = vmax.f32 %v5927_v24, %v8979_v63  ;;  %v6418_v57 = vmax.f32 %v6409_v26, %v6412_v4  ;;  %v9081_v15 = vmul.f32 0.1, %v5112_v27  ;;  %v6410_v6 = vrot.slane %v8914_v29, 3 }
 0x619   : > { %10741 = vst [vmem:[#allocation27_spill] sm:$0xff] %v9076_v54  ;;  %7965 = vpow2.f32 %v6052_v9  ;;  %v6398_v56 = vmax.f32 %v8914_v29, %v6392_v43  ;;  %v6419_v59 = vrot.slane %v8914_v29, 4  ;;  %v5114_v39 = vadd.f32 %v5113_v34, %v8997_v20 }
 0x61a   : > { %10742 = vst [vmem:[#allocation28_spill] sm:$0xff] %v9079_v38  ;;  %v9087_v44 = vpop.eup %7943  ;;  %v5975_v46 = vrot.slane %v9079_v38, 5  ;;  %v6005_v28 = vrot.slane %v9079_v38, 3  ;;  %v6035_v53 = vrot.slane %v9079_v38, 1  ;;  %v6427_v21 = vmax.f32 %v6418_v57, %v6421_v16 }
 0x61b   : > { %10743 = vst [vmem:[#allocation29_spill] sm:$0xff] %v9087_v44  ;;  %v9092_v4 = vpop.eup %7945  ;;  %v6407_v24 = vmax.f32 %v6398_v56, %v6401_v51  ;;  %v6428_v9 = vrot.slane %v8914_v29, 5  ;;  %v6440_v26 = vrot.slane %v9081_v15, 6  ;;  %v9096_v27 = vmul.f32 0.1, %v5114_v39 }
 0x61c   : > { %10744 = vst [vmem:[#allocation30_spill] sm:$0xff] %v9092_v4  ;;  %v9098_v43 = vpop.eup %7947  ;;  %v5981_v20 = vsub.f32 %v8890_v32, %v5975_v46  ;;  %v6011_v34 = vsub.f32 %v8890_v32, %v6005_v28  ;;  %v6041_v49 = vsub.f32 %v8979_v63, %v6035_v53  ;;  %v6436_v47 = vmax.f32 %v6427_v21, %v6430_v30 }
 0x61d   : > { %10745 = vst [vmem:[#allocation31_spill] sm:$0xff] %v9098_v43  ;;  %v9103_v33 = vpop.eup %7949  ;;  %v6416_v16 = vmax.f32 %v6407_v24, %v6410_v6  ;;  %v6449_v51 = vrot.slane %v9081_v15, 7  ;;  %v6393_v57 = vrot.slane %v8979_v63, 1  ;;  %v6402_v56 = vrot.slane %v8979_v63, 2  ;;  %v9117_v24 = vpop.permute.xlu0 %5009 }
 0x61e   : > { %10746 = vst [vmem:[#allocation32_spill] sm:$0xff] %v9103_v33  ;;  %v9108_v39 = vpop.eup %7951  ;;  %v5985_v40 = vmul.f32 1.442695, %v5981_v20  ;;  %v6015_v35 = vmul.f32 1.442695, %v6011_v34  ;;  %v6448_v46 = vmax.f32 %v6436_v47, %v6442_v22  ;;  %v6411_v53 = vrot.slane %v8979_v63, 3 }
 0x61f   : > { %10747 = vst [vmem:[#allocation33_spill] sm:$0xff] %v9108_v39  ;;  %v6045_v17 = vmul.f32 1.442695, %v6041_v49  ;;  %v9110_v12 = vpop.eup %7953  ;;  %v6425_v28 = vmax.f32 %v6416_v16, %v6419_v59  ;;  %v6399_v30 = vmax.f32 %v8979_v63, %v6393_v57  ;;  %v6420_v6 = vrot.slane %v8979_v63, 4 }
 0x620   : > { %10748 = vst [vmem:[#allocation34_spill] sm:$0xff] %v9110_v12  ;;  %v9115_v21 = vpop.eup %7955  ;;  %7967 = vpow2.f32 %v5985_v40  ;;  %v6457_v2 = vmax.f32 %v6448_v46, %v6451_v48  ;;  %v5209_v34 = vadd.f32 %v8907_v58, %v9117_v24  ;;  %v6927_v48 = vrot.slane %v9055_v1, 1 }
 0x621   : > { %10749 = vst [vmem:[#allocation35_spill] sm:$0xff] %v9115_v21  ;;  %v9121_v47 = vpop.eup %7957  ;;  %7969 = vpow2.f32 %v6015_v35  ;;  %v6434_v22 = vmax.f32 %v6425_v28, %v6428_v9  ;;  %v6408_v59 = vmax.f32 %v6399_v30, %v6402_v56 }
 0x622   : > { %10750 = vst [vmem:[#allocation36_spill] sm:$0xff] %v9121_v47  ;;  %v9125_v16 = vpop.eup %7959  ;;  %7971 = vpow2.f32 %v6045_v17  ;;  %v9128_v57 = vmax.f32 %v6457_v2, %v9055_v1  ;;  %v9134_v35 = vmul.f32 0.1, %v5209_v34 }
 0x623   : > { %10751 = vst [vmem:[#allocation37_spill] sm:$0xff] %v9125_v16  ;;  %v9132_v46 = vpop.eup %7961  ;;  %v6446_v49 = vmax.f32 %v6434_v22, %v6440_v26  ;;  %v6417_v20 = vmax.f32 %v6408_v59, %v6411_v53 }
 0x624   : > { %10752 = vst [vmem:[#allocation38_spill] sm:$0xff] %v9132_v46  ;;  %v9137_v56 = vpop.eup %7963  ;;  %v6490_v58 = vrot.slane %v9128_v57, 6  ;;  %v6505_v17 = vrot.slane %v9128_v57, 5  ;;  %v6520_v2 = vrot.slane %v9128_v57, 4  ;;  %v6535_v28 = vrot.slane %v9128_v57, 3 }
 0x625   : > { %10753 = vst [vmem:[#allocation39_spill] sm:$0xff] %v9137_v56  ;;  %v6550_v30 = vrot.slane %v9128_v57, 2  ;;  %v6565_v40 = vrot.slane %v9128_v57, 1  ;;  %v6580_v26 = vsub.f32 %v9055_v1, %v9128_v57  ;;  %v6455_v53 = vmax.f32 %v6446_v49, %v6449_v51 }
 0x626   : > { %v9147_v22 = vpop.eup %7965  ;;  %v6496_v59 = vsub.f32 %v8901_v8, %v6490_v58  ;;  %v6511_v34 = vsub.f32 %v8901_v8, %v6505_v17  ;;  %v6526_v9 = vsub.f32 %v8901_v8, %v6520_v2  ;;  %v6541_v56 = vsub.f32 %v8901_v8, %v6535_v28 }
 0x627   : > { %10754 = vst [vmem:[#allocation40_spill] sm:$0xff] %v9147_v22  ;;  %v6556_v46 = vsub.f32 %v9055_v1, %v6550_v30  ;;  %v6571_v16 = vsub.f32 %v9055_v1, %v6565_v40  ;;  %v6585_v47 = vmul.f32 1.442695, %v6580_v26  ;;  %v9156_v21 = vmax.f32 %v6455_v53, %v9081_v15 }
 0x628   : > { %v6501_v12 = vmul.f32 1.442695, %v6496_v59  ;;  %v6516_v51 = vmul.f32 1.442695, %v6511_v34  ;;  %v6531_v49 = vmul.f32 1.442695, %v6526_v9  ;;  %v6426_v22 = vmax.f32 %v6417_v20, %v6420_v6 }
 0x629   : > { %10755 = vst [vmem:[#allocation41_spill] sm:$0xff] %v9156_v21  ;;  %v6546_v39 = vmul.f32 1.442695, %v6541_v56  ;;  %v6561_v58 = vmul.f32 1.442695, %v6556_v46  ;;  %7973 = vpow2.f32 %v6585_v47  ;;  %v6488_v17 = vrot.slane %v9156_v21, 6 }
 0x62a   : > { %v6576_v38 = vmul.f32 1.442695, %v6571_v16  ;;  %7975 = vpow2.f32 %v6501_v12  ;;  %v6503_v2 = vrot.slane %v9156_v21, 5  ;;  %v6518_v28 = vrot.slane %v9156_v21, 4 }
 0x62b   : > { %7977 = vpow2.f32 %v6516_v51  ;;  %v6533_v40 = vrot.slane %v9156_v21, 3  ;;  %v6548_v30 = vrot.slane %v9156_v21, 2  ;;  %v6563_v26 = vrot.slane %v9156_v21, 1 }
 0x62c   : > { %7979 = vpow2.f32 %v6531_v49  ;;  %v6494_v6 = vsub.f32 %v8914_v29, %v6488_v17  ;;  %v6509_v20 = vsub.f32 %v8914_v29, %v6503_v2  ;;  %v6524_v12 = vsub.f32 %v8914_v29, %v6518_v28 }
 0x62d   : > { %v9167_v47 = vpop.eup %7967  ;;  %7981 = vpow2.f32 %v6546_v39  ;;  %v6539_v16 = vsub.f32 %v8914_v29, %v6533_v40  ;;  %v6554_v46 = vsub.f32 %v9081_v15, %v6548_v30  ;;  %v6569_v9 = vsub.f32 %v9081_v15, %v6563_v26 }
 0x62e   : > { %10756 = vst [vmem:[#allocation42_spill] sm:$0xff] %v9167_v47  ;;  %v9172_v56 = vpop.eup %7969  ;;  %7983 = vpow2.f32 %v6561_v58  ;;  %v6497_v53 = vmul.f32 1.442695, %v6494_v6  ;;  %v6512_v59 = vmul.f32 1.442695, %v6509_v20  ;;  %v6945_v2 = vrot.slane %v9055_v1, 3  ;;  %v5117_v58 = vpop.f32.mrf.mxu1 }
 0x62f   : > { %10757 = vst [vmem:[#allocation43_spill] sm:$0xff] %v9172_v56  ;;  %v6527_v34 = vmul.f32 1.442695, %v6524_v12  ;;  %v9174_v51 = vpop.eup %7971  ;;  %7985 = vpow2.f32 %v6576_v38  ;;  %v6542_v49 = vmul.f32 1.442695, %v6539_v16  ;;  %v6578_v39 = vsub.f32 %v9081_v15, %v9156_v21 }
 0x630   : > { %10758 = vst [vmem:[#allocation44_spill] sm:$0xff] %v9174_v51  ;;  %v6557_v17 = vmul.f32 1.442695, %v6554_v46  ;;  %7987 = vpow2.f32 %v6497_v53  ;;  %v10759_v28 = vrot.slane %v8979_v63, 5  ;;  %v6933_v30 = vmax.f32 %v9055_v1, %v6927_v48 }
 0x631   : > { %7989 = vpow2.f32 %v6512_v59  ;;  %v6572_v26 = vmul.f32 1.442695, %v6569_v9  ;;  %v6954_v6 = vrot.slane %v9055_v1, 4  ;;  %v6966_v38 = vrot.slane %v9134_v35, 5 }
 0x632   : > { %v6435_v40 = vmax.f32 %v6426_v22, %v10759_v28  ;;  %7991 = vpow2.f32 %v6527_v34  ;;  %v6581_v20 = vmul.f32 1.442695, %v6578_v39  ;;  %v10760_v12 = vrot.slane %v9096_v27, 6 }
 0x633   : > { %v10761_v46 = vrot.slane %v9055_v1, 2  ;;  %7993 = vpow2.f32 %v6542_v49  ;;  %v6975_v22 = vrot.slane %v9134_v35, 6  ;;  %v5118_v48 = vadd.f32 %v5117_v58, %v9117_v24 }
 0x634   : > { %v6447_v16 = vmax.f32 %v6435_v40, %v10760_v12  ;;  %v6925_v59 = vrot.slane %v9081_v15, 1  ;;  %7995 = vpow2.f32 %v6557_v17  ;;  %v10762_v9 = vrot.slane %v9096_v27, 7 }
 0x635   : > { %v6942_v53 = vmax.f32 %v6933_v30, %v10761_v46  ;;  %v6984_v34 = vrot.slane %v9134_v35, 7  ;;  %7997 = vpow2.f32 %v6572_v26  ;;  %v9194_v39 = vmul.f32 0.1, %v5118_v48 }
 0x636   : > { %v6456_v28 = vmax.f32 %v6447_v16, %v10762_v9  ;;  %v6931_v40 = vmax.f32 %v9081_v15, %v6925_v59  ;;  %v6934_v49 = vrot.slane %v9081_v15, 2  ;;  %v9198_v30 = vpop.eup %7973  ;;  %7999 = vpow2.f32 %v6581_v20  ;;  %v5119_v16 = vpop.f32.mrf.mxu1 }
 0x637   : > { %v6951_v51 = vmax.f32 %v6942_v53, %v6945_v2  ;;  %10763 = vst [vmem:[#allocation45_spill] sm:$0xff] %v9198_v30  ;;  %v6943_v12 = vrot.slane %v9081_v15, 3  ;;  %v9204_v2 = vpop.eup %7975  ;;  %v6952_v26 = vrot.slane %v9081_v15, 4  ;;  %v6964_v53 = vrot.slane %v9194_v39, 5 }
 0x638   : > { %v9201_v58 = vmax.f32 %v6456_v28, %v9096_v27  ;;  %10765 = vst [vmem:[#allocation47_spill] sm:$0xff] %v9204_v2  ;;  %v6940_v46 = vmax.f32 %v6931_v40, %v6934_v49  ;;  %v6973_v48 = vrot.slane %v9194_v39, 6  ;;  %v9209_v59 = vpop.eup %7977  ;;  %v6982_v40 = vrot.slane %v9194_v39, 7 }
 0x639   : > { %v6960_v17 = vmax.f32 %v6951_v51, %v6954_v6  ;;  %10766 = vst [vmem:[#allocation48_spill] sm:$0xff] %v9209_v59  ;;  %v9214_v28 = vpop.eup %7979  ;;  %v5120_v49 = vadd.f32 %v5119_v16, %v9117_v24  ;;  %v6926_v21 = vrot.slane %v9096_v27, 1  ;;  %v6935_v24 = vrot.slane %v9096_v27, 2 }
 0x63a   : > { %10764 = vst [vmem:[#allocation46_spill] sm:$0xff] %v9201_v58  ;;  %v6504_v20 = vrot.slane %v9201_v58, 5  ;;  %v6534_v9 = vrot.slane %v9201_v58, 3  ;;  %v6564_v51 = vrot.slane %v9201_v58, 1  ;;  %10767 = vst [vmem:[#allocation49_spill] sm:$0xff] %v9214_v28  ;;  %v6949_v29 = vmax.f32 %v6940_v46, %v6943_v12  ;;  %v9219_v56 = vpop.eup %7981 }
 0x63b   : > { %v6972_v6 = vmax.f32 %v6960_v17, %v6966_v38  ;;  %10768 = vst [vmem:[#allocation50_spill] sm:$0xff] %v9219_v56  ;;  %v9224_v58 = vpop.eup %7983  ;;  %v9226_v17 = vmul.f32 0.1, %v5120_v49  ;;  %v6932_v12 = vmax.f32 %v9096_v27, %v6926_v21 }
 0x63c   : > { %v6510_v47 = vsub.f32 %v8979_v63, %v6504_v20  ;;  %v6540_v30 = vsub.f32 %v8979_v63, %v6534_v9  ;;  %v6570_v37 = vsub.f32 %v9096_v27, %v6564_v51  ;;  %10769 = vst [vmem:[#allocation51_spill] sm:$0xff] %v9224_v58  ;;  %v6958_v38 = vmax.f32 %v6949_v29, %v6952_v26  ;;  %v9230_v16 = vpop.eup %7985 }
 0x63d   : > { %v6981_v41 = vmax.f32 %v6972_v6, %v6975_v22  ;;  %10770 = vst [vmem:[#allocation52_spill] sm:$0xff] %v9230_v16  ;;  %v9232_v45 = vpop.eup %7987  ;;  %v6941_v51 = vmax.f32 %v6932_v12, %v6935_v24  ;;  %v6944_v22 = vrot.slane %v9096_v27, 3 }
 0x63e   : > { %v6514_v46 = vmul.f32 1.442695, %v6510_v47  ;;  %v6544_v62 = vmul.f32 1.442695, %v6540_v30  ;;  %v6574_v3 = vmul.f32 1.442695, %v6570_v37  ;;  %v6970_v9 = vmax.f32 %v6958_v38, %v6964_v53  ;;  %v9236_v26 = vpop.eup %7989 }
 0x63f   : > { %v6990_v20 = vmax.f32 %v6981_v41, %v6984_v34  ;;  %10771 = vst [vmem:[#allocation53_spill] sm:$0xff] %v9232_v45  ;;  %10772 = vst [vmem:[#allocation54_spill] sm:$0xff] %v9236_v26  ;;  %v9243_v37 = vpop.eup %7991  ;;  %v9245_v34 = vmax.f32 %v6941_v51, %v6944_v22 }
 0x640   : > { %8001 = vpow2.f32 %v6514_v46  ;;  %10773 = vst [vmem:[#allocation55_spill] sm:$0xff] %v9243_v37  ;;  %v6979_v41 = vmax.f32 %v6970_v9, %v6973_v48  ;;  %v9247_v30 = vpop.eup %7993  ;;  %v5231_v12 = vpop.permute.xlu1 %5230 }
 0x641   : > { %v9239_v21 = vmax.f32 %v6990_v20, %v9134_v35  ;;  %8003 = vpow2.f32 %v6544_v62  ;;  %10774 = vst [vmem:[#allocation56_spill] sm:$0xff] %v9247_v30  ;;  %v9252_v24 = vpop.eup %7995  ;;  %5242 = vst.msk [vmem:[#allocation2] sm:$0x7] %vm5241_vm2, %v5231_v12 }
 0x642   : > { %8005 = vpow2.f32 %v6574_v3  ;;  %10775 = vst [vmem:[#allocation57_spill] sm:$0xff] %v9252_v24  ;;  %v9259_v3 = vpop.eup %7997  ;;  %v6988_v47 = vmax.f32 %v6979_v41, %v6982_v40 }
 0x643   : > { %v7023_v53 = vrot.slane %v9239_v21, 6  ;;  %v7038_v49 = vrot.slane %v9239_v21, 5  ;;  %v7053_v38 = vrot.slane %v9239_v21, 4  ;;  %v7068_v46 = vrot.slane %v9239_v21, 3  ;;  %10776 = vst [vmem:[#allocation58_spill] sm:$0xff] %v9259_v3  ;;  %v9264_v6 = vpop.eup %7999 }
 0x644   : > { %v7083_v62 = vrot.slane %v9239_v21, 2  ;;  %v7098_v48 = vrot.slane %v9239_v21, 1  ;;  %v7113_v20 = vsub.f32 %v9134_v35, %v9239_v21  ;;  %10777 = vst [vmem:[#allocation59_spill] sm:$0xff] %v9264_v6  ;;  %v9270_v3 = vmax.f32 %v6988_v47, %v9194_v39 }
 0x645   : > { %v7029_v9 = vsub.f32 %v9055_v1, %v7023_v53  ;;  %v7044_v51 = vsub.f32 %v9055_v1, %v7038_v49  ;;  %v7059_v22 = vsub.f32 %v9055_v1, %v7053_v38  ;;  %v7074_v29 = vsub.f32 %v9134_v35, %v7068_v46 }
 0x646   : > { %v7089_v24 = vsub.f32 %v9134_v35, %v7083_v62  ;;  %v7104_v30 = vsub.f32 %v9134_v35, %v7098_v48  ;;  %v7118_v37 = vmul.f32 1.442695, %v7113_v20  ;;  %v7021_v40 = vrot.slane %v9270_v3, 6  ;;  %v5233_v48 = vpop.permute.xlu0 %5232 }
 0x647   : > { %v7034_v26 = vmul.f32 1.442695, %v7029_v9  ;;  %v7049_v45 = vmul.f32 1.442695, %v7044_v51  ;;  %v7064_v63 = vmul.f32 1.442695, %v7059_v22  ;;  %v5235_v51 = vpop.permute.xlu1 %5234 }
 0x648   : > { %v7079_v53 = vmul.f32 1.442695, %v7074_v29  ;;  %v7094_v49 = vmul.f32 1.442695, %v7089_v24  ;;  %v7109_v7 = vmul.f32 1.442695, %v7104_v30  ;;  %8007 = vpow2.f32 %v7118_v37 }
 0x649   : > { %8009 = vpow2.f32 %v7034_v26  ;;  %v7036_v41 = vrot.slane %v9270_v3, 5  ;;  %v7051_v38 = vrot.slane %v9270_v3, 4  ;;  %v7066_v35 = vrot.slane %v9270_v3, 3  ;;  %v9281_v37 = vld [vmem:[#allocation2] sm:$0x7] }
 0x64a   : > { %8011 = vpow2.f32 %v7049_v45  ;;  %v7081_v46 = vrot.slane %v9270_v3, 2  ;;  %v7096_v62 = vrot.slane %v9270_v3, 1  ;;  %v7027_v29 = vsub.f32 %v9081_v15, %v7021_v40  ;;  %5617 = vrot.lane.b32.xlu1 %v9281_v37, %s8158_s23  ;;  %5579 = vrot.lane.b32.xlu0 %v9281_v37, %s8157_s22 }
 0x64b   : > { %8013 = vpow2.f32 %v7064_v63  ;;  %v7042_v47 = vsub.f32 %v9081_v15, %v7036_v41  ;;  %v7057_v26 = vsub.f32 %v9081_v15, %v7051_v38  ;;  %v7072_v30 = vsub.f32 %v9194_v39, %v7066_v35 }
 0x64c   : > { %8015 = vpow2.f32 %v7079_v53  ;;  %v7087_v45 = vsub.f32 %v9194_v39, %v7081_v46  ;;  %v7102_v24 = vsub.f32 %v9194_v39, %v7096_v62  ;;  %v7030_v63 = vmul.f32 1.442695, %v7027_v29 }
 0x64d   : > { %8017 = vpow2.f32 %v7094_v49  ;;  %v7045_v20 = vmul.f32 1.442695, %v7042_v47  ;;  %v7060_v9 = vmul.f32 1.442695, %v7057_v26  ;;  %v9290_v22 = vpop.eup %8001  ;;  %v7075_v53 = vmul.f32 1.442695, %v7072_v30 }
 0x64e   : > { %8019 = vpow2.f32 %v7109_v7  ;;  %v7090_v40 = vmul.f32 1.442695, %v7087_v45  ;;  %v7105_v41 = vmul.f32 1.442695, %v7102_v24  ;;  %v9292_v38 = vpop.eup %8003  ;;  %v7111_v35 = vsub.f32 %v9194_v39, %v9270_v3  ;;  %5693 = vrot.lane.b32.xlu1 %v9281_v37, %s8160_s25  ;;  %5655 = vrot.lane.b32.xlu0 %v9281_v37, %s8159_s24 }
 0x64f   : > { %10778 = vst [vmem:[#allocation60_spill] sm:$0xff] %v9292_v38  ;;  %8021 = vpow2.f32 %v7030_v63  ;;  %v10779_v46 = vrot.slane %v9096_v27, 4  ;;  %v5236_v62 = vsel %vm376_vm3, %v5231_v12, %v5233_v48  ;;  %v9300_v29 = vpop.eup %8005  ;;  %v5237_v7 = vsel %vm376_vm3, %v5233_v48, %v5235_v51 }
 0x650   : > { %10780 = vst [vmem:[#allocation61_spill] sm:$0xff] %v9300_v29  ;;  %8023 = vpow2.f32 %v7045_v20  ;;  %5243 = vst [vmem:[#allocation2 + $0x8] sm:$0x7] %v5236_v62  ;;  %v5320_v39 = vsub.f32 %v8861_v13, %v8919_v36  ;;  %v10781_v12 = vrot.slane %v9226_v17, 5  ;;  %v5332_v26 = vrot.slane %v8919_v36, 7 }
 0x651   : > { %v6959_v49 = vmax.f32 %v9245_v34, %v10779_v46  ;;  %8025 = vpow2.f32 %v7060_v9  ;;  %v7114_v34 = vmul.f32 1.442695, %v7111_v35  ;;  %5245 = vst.msk [vmem:[#allocation2 + $0x10] sm:$0x7] %vm5244_vm4, %v5237_v7  ;;  %v10782_v45 = vrot.slane %v9226_v17, 6 }
 0x652   : > { %8027 = vpow2.f32 %v7075_v53  ;;  %v5325_v30 = vmul.f32 1.442695, %v5320_v39  ;;  %v6983_v48 = vrot.slane %v9226_v17, 7  ;;  %v5338_v63 = vsub.f32 %v8861_v13, %v5332_v26  ;;  %5769 = vrot.lane.b32.xlu1 %v9281_v37, %s8162_s27  ;;  %5731 = vrot.lane.b32.xlu0 %v9281_v37, %s8161_s26 }
 0x653   : > { %v6971_v47 = vmax.f32 %v6959_v49, %v10781_v12  ;;  %8029 = vpow2.f32 %v7090_v40  ;;  %v5934_v46 = vsub.f32 %v8872_v25, %v8989_v0  ;;  %v5946_v49 = vrot.slane %v8989_v0, 7 }
 0x654   : > { %8031 = vpow2.f32 %v7105_v41  ;;  %v5343_v40 = vmul.f32 1.442695, %v5338_v63  ;;  %v9348_v0 = vsub.s32 4, %v8449_v23  ;;  %vm5858_vm3 = vcmask 550912  }
 0x655   : > { %v6980_v24 = vmax.f32 %v6971_v47, %v10782_v45  ;;  %v9323_v51 = vpop.eup %8007  ;;  %8033 = vpow2.f32 %v7114_v34  ;;  %v9339_v34 = vsub.s32 3, %v8449_v23  ;;  %v5939_v47 = vmul.f32 1.442695, %v5934_v46 }
 0x656   : > { %10783 = vst [vmem:[#allocation62_spill] sm:$0xff] %v9323_v51  ;;  %v9326_v41 = vpop.eup %8009  ;;  %8035 = vpow2.f32 %v5325_v30  ;;  %5839 = vrot.lane.b32.xlu1 %v9281_v37, %s8164_s29  ;;  %5807 = vrot.lane.b32.xlu0 %v9281_v37, %s10787_s19  ;;  %v5952_v26 = vsub.f32 %v8872_v25, %v5946_v49 }
 0x657   : > { %v6989_v53 = vmax.f32 %v6980_v24, %v6983_v48  ;;  %10784 = vst [vmem:[#allocation63_spill] sm:$0xff] %v9326_v41  ;;  %v9332_v62 = vpop.eup %8011  ;;  %8037 = vpow2.f32 %v5343_v40  ;;  %v9369_v36 = vld [vmem:[#allocation2 + $0x8] sm:$0x7] }
 0x658   : > { %10785 = vst [vmem:[#allocation64_spill] sm:$0xff] %v9332_v62  ;;  %v9341_v12 = vpop.eup %8013  ;;  %v5957_v46 = vmul.f32 1.442695, %v5952_v26  ;;  %v9371_v20 = vld [vmem:[#allocation2 + $0x10] sm:$0x7]  ;;  %8039 = vpow2.f32 %v5939_v47  ;;  %v6463_v47 = vsub.f32 %v8901_v8, %v9128_v57 }
 0x659   : > { %v9335_v7 = vmax.f32 %v6989_v53, %v9226_v17  ;;  %10786 = vst [vmem:[#allocation65_spill] sm:$0xff] %v9341_v12  ;;  %v9352_v45 = vpop.eup %8015 }
 0x65a   : > { %10788 = vst [vmem:[#allocation66_spill] sm:$0xff] %v9352_v45  ;;  %v9358_v40 = vpop.eup %8017  ;;  %5581 = vrot.lane.b32.xlu1 %v9369_v36, %s8157_s22  ;;  %5583 = vrot.lane.b32.xlu0 %v9371_v20, %s8157_s22  ;;  %8041 = vpow2.f32 %v5957_v46  ;;  %s7881_s22 = smul.u32 48, %s11097_s14 }
 0x65b   : > { %v7037_v24 = vrot.slane %v9335_v7, 5  ;;  %v7067_v48 = vrot.slane %v9335_v7, 3  ;;  %v7082_v63 = vrot.slane %v9335_v7, 2  ;;  %v7097_v53 = vrot.slane %v9335_v7, 1  ;;  %10789 = vst [vmem:[#allocation67_spill] sm:$0xff] %v9358_v40  ;;  %v9364_v35 = vpop.eup %8019 }
 0x65c   : > { %v7112_v39 = vsub.f32 %v9226_v17, %v9335_v7  ;;  %10790 = vst [vmem:[#allocation68_spill] sm:$0xff] %v9364_v35  ;;  %v9373_v6 = vpop.eup %8021 }
 0x65d   : > { %v7043_v13 = vsub.f32 %v9096_v27, %v7037_v24  ;;  %v7073_v30 = vsub.f32 %v9226_v17, %v7067_v48  ;;  %v7088_v9 = vsub.f32 %v9226_v17, %v7082_v63  ;;  %10791 = vst [vmem:[#allocation69_spill] sm:$0xff] %v9373_v6  ;;  %v7103_v26 = vsub.f32 %v9226_v17, %v7097_v53  ;;  %v9381_v48 = vpop.eup %8023 }
 0x65e   : > { %v7116_v25 = vmul.f32 1.442695, %v7112_v39  ;;  %10792 = vst [vmem:[#allocation70_spill] sm:$0xff] %v9381_v48  ;;  %v9385_v6 = vpop.eup %8025  ;;  %5621 = vrot.lane.b32.xlu1 %v9371_v20, %s8158_s23  ;;  %5619 = vrot.lane.b32.xlu0 %v9369_v36, %s8158_s23 }
 0x65f   : > { %v7047_v63 = vmul.f32 1.442695, %v7043_v13  ;;  %v7077_v49 = vmul.f32 1.442695, %v7073_v30  ;;  %v7092_v23 = vmul.f32 1.442695, %v7088_v9  ;;  %v9389_v29 = vpop.eup %8027 }
 0x660   : > { %10793 = vst [vmem:[#allocation71_spill] sm:$0xff] %v9385_v6  ;;  %v7107_v53 = vmul.f32 1.442695, %v7103_v26  ;;  %8043 = vpow2.f32 %v7116_v25  ;;  %10794 = vst [vmem:[#allocation72_spill] sm:$0xff] %v9389_v29  ;;  %v6475_v9 = vrot.slane %v9128_v57, 7  ;;  %v9394_v30 = vpop.eup %8029 }
 0x661   : > { %8045 = vpow2.f32 %v7047_v63  ;;  %10795 = vst [vmem:[#allocation73_spill] sm:$0xff] %v9394_v30  ;;  %v6468_v26 = vmul.f32 1.442695, %v6463_v47  ;;  %v9402_v46 = vpop.eup %8031  ;;  %v5319_v47 = vsub.f32 %v8867_v19, %v8963_v60 }
 0x662   : > { %8047 = vpow2.f32 %v7077_v49  ;;  %10796 = vst [vmem:[#allocation74_spill] sm:$0xff] %v9402_v46  ;;  %v6481_v57 = vsub.f32 %v8901_v8, %v6475_v9  ;;  %v9407_v17 = vpop.eup %8033  ;;  %v7008_v8 = vrot.slane %v9239_v21, 7  ;;  %5657 = vrot.lane.b32.xlu1 %v9369_v36, %s8159_s24  ;;  %5659 = vrot.lane.b32.xlu0 %v9371_v20, %s8159_s24  ;;  %v5330_v49 = vrot.slane %v8933_v50, 7  ;;  %s10504_s24 = scalar_lea.vmem %s10562_s10, %s7881_s22 }
 0x663   : > { %8049 = vpow2.f32 %v7092_v23  ;;  %10797 = vst [vmem:[#allocation75_spill] sm:$0xff] %v9407_v17  ;;  %v9412_v25 = vpop.eup %8035  ;;  %v6996_v23 = vsub.f32 %v9055_v1, %v9239_v21  ;;  %v5346_v46 = vrot.slane %v8963_v60, 6 }
 0x664   : > { %8051 = vpow2.f32 %v7107_v53  ;;  %v6486_v6 = vmul.f32 1.442695, %v6481_v57  ;;  %v9418_v9 = vpop.eup %8037  ;;  %v5318_v57 = vsub.f32 %v8863_v14, %v8933_v50  ;;  %v7014_v63 = vsub.f32 %v9055_v1, %v7008_v8 }
 0x665   : > { %8053 = vpow2.f32 %v6468_v26  ;;  %v5449_v39 = vrot.slane %v9418_v9, 1  ;;  %v7001_v21 = vmul.f32 1.442695, %v6996_v23  ;;  %v5331_v26 = vrot.slane %v8963_v60, 7  ;;  %v9437_v30 = vpop.eup %8039 }
 0x666   : > { %8055 = vpow2.f32 %v6486_v6  ;;  %v5321_v24 = vmul.f32 1.442695, %v5318_v57  ;;  %v7019_v13 = vmul.f32 1.442695, %v7014_v63  ;;  %5697 = vrot.lane.b32.xlu1 %v9371_v20, %s8160_s25  ;;  %5695 = vrot.lane.b32.xlu0 %v9369_v36, %s8160_s25  ;;  %v5323_v1 = vmul.f32 1.442695, %v5319_v47 }
 0x667   : > { %v5455_v53 = vadd.f32 %v9412_v25, %v5449_v39  ;;  %8057 = vpow2.f32 %v7001_v21  ;;  %v5336_v50 = vsub.f32 %v8863_v14, %v5330_v49  ;;  %v5337_v6 = vsub.f32 %v8867_v19, %v5331_v26  ;;  %v9445_v39 = vpop.eup %8041 }
 0x668   : > { %v10798_v63 = vrot.slane %v8986_v10, 2  ;;  %8059 = vpow2.f32 %v7019_v13  ;;  %v5352_v8 = vsub.f32 %v8867_v19, %v5346_v46  ;;  %v5376_v57 = vrot.slane %v8963_v60, 4 }
 0x669   : > { %v6063_v17 = vrot.slane %v9445_v39, 1  ;;  %8061 = vpow2.f32 %v5321_v24  ;;  %v5339_v29 = vmul.f32 1.442695, %v5336_v50  ;;  %v5341_v21 = vmul.f32 1.442695, %v5337_v6 }
 0x66a   : > { %v5467_v23 = vadd.f32 %v10798_v63, %v5455_v53  ;;  %v10800_v14 = vrot.slane %v8993_v11, 3  ;;  %v5356_v26 = vmul.f32 1.442695, %v5352_v8  ;;  %v5382_v48 = vsub.f32 %v8867_v19, %v5376_v57  ;;  %5733 = vrot.lane.b32.xlu1 %v9369_v36, %s8161_s26  ;;  %5735 = vrot.lane.b32.xlu0 %v9371_v20, %s8161_s26 }
 0x66b   : > { %v5406_v53 = vrot.slane %v8963_v60, 2  ;;  %v6069_v24 = vadd.f32 %v9437_v30, %v6063_v17  ;;  %8063 = vpow2.f32 %v5339_v29  ;;  %v5436_v50 = vsub.f32 %v8890_v32, %v8963_v60 }
 0x66c   : > { %v5479_v49 = vadd.f32 %v10800_v14, %v5467_v23  ;;  %v10803_v63 = vrot.slane %v8995_v18, 4  ;;  %8065 = vpow2.f32 %v5341_v21  ;;  %v5386_v8 = vmul.f32 1.442695, %v5382_v48  ;;  %v10811_v21 = vld [vmem:[#allocation23_spill] sm:$0xff] }
 0x66d   : > { %v9452_v47 = vpop.eup %8043  ;;  %v5412_v57 = vsub.f32 %v8867_v19, %v5406_v53  ;;  %8067 = vpow2.f32 %v5356_v26  ;;  %v5440_v29 = vmul.f32 1.442695, %v5436_v50  ;;  %v10807_v60 = vrot.slane %v9003_v31, 5  ;;  %v10814_v48 = vld [vmem:[#allocation19_spill] sm:$0xff] }
 0x66e   : > { %10799 = vst [vmem:[#allocation76_spill] sm:$0xff] %v9452_v47  ;;  %v9458_v13 = vpop.eup %8045  ;;  %v5491_v23 = vadd.f32 %v10803_v63, %v5479_v49  ;;  %v10805_v47 = vrot.slane %v9071_v5, 2  ;;  %8069 = vpow2.f32 %v5323_v1  ;;  %5773 = vrot.lane.b32.xlu1 %v9371_v20, %s8162_s27  ;;  %5771 = vrot.lane.b32.xlu0 %v9369_v36, %s8162_s27  ;;  %v10819_v63 = vld [vmem:[#allocation28_spill] sm:$0xff]  ;;  %v10841_v5 = vrot.slane %v9230_v16, 7 }
 0x66f   : > { %10801 = vst [vmem:[#allocation77_spill] sm:$0xff] %v9458_v13  ;;  %v9468_v6 = vpop.eup %8047  ;;  %v5416_v49 = vmul.f32 1.442695, %v5412_v57  ;;  %8071 = vpow2.f32 %v5386_v8  ;;  %v10810_v57 = vrot.slane %v9087_v44, 4  ;;  %v10818_v8 = vld [vmem:[#allocation7_spill] sm:$0xff]  ;;  %v5945_v31 = vrot.slane %v10819_v63, 7 }
 0x670   : > { %10802 = vst [vmem:[#allocation78_spill] sm:$0xff] %v9468_v6  ;;  %v9473_v14 = vpop.eup %8049  ;;  %v6081_v17 = vadd.f32 %v10805_v47, %v6069_v24  ;;  %v5503_v10 = vadd.f32 %v10807_v60, %v5491_v23  ;;  %v10808_v47 = vrot.slane %v9076_v54, 3  ;;  %v10809_v24 = vrot.slane %v9011_v42, 6 }
 0x671   : > { %10804 = vst [vmem:[#allocation79_spill] sm:$0xff] %v9473_v14  ;;  %v9478_v11 = vpop.eup %8051  ;;  %8073 = vpow2.f32 %v5440_v29  ;;  %v10815_v29 = vld [vmem:[#allocation24_spill] sm:$0xff]  ;;  %v5960_v44 = vrot.slane %v10819_v63, 6  ;;  %v5951_v6 = vsub.f32 %v8890_v32, %v5945_v31 }
 0x672   : > { %10806 = vst [vmem:[#allocation80_spill] sm:$0xff] %v9478_v11  ;;  %v6093_v26 = vadd.f32 %v10808_v47, %v6081_v17  ;;  %v9491_v53 = vpop.eup %8053  ;;  %v5515_v50 = vadd.f32 %v10809_v24, %v5503_v10  ;;  %8075 = vpow2.f32 %v5416_v49  ;;  %v10812_v17 = vld [vmem:[#allocation17_spill] sm:$0xff]  ;;  %v10813_v47 = vrot.slane %v9016_v52, 7  ;;  %5809 = vrot.lane.b32.xlu1 %v9369_v36, %s10787_s19  ;;  %5811 = vrot.lane.b32.xlu0 %v9371_v20, %s10787_s19  ;;  %v10820_v24 = vld [vmem:[#allocation10_spill] sm:$0xff] }
 0x673   : > { %v9497_v23 = vpop.eup %8055  ;;  %v10816_v49 = vrot.slane %v9092_v4, 5 }
 0x674   : > { %v6105_v60 = vadd.f32 %v10810_v57, %v6093_v26  ;;  %v5527_v46 = vadd.f32 %v10813_v47, %v5515_v50  ;;  %v6592_v1 = vrot.slane %v9497_v23, 1  ;;  %v10817_v57 = vld [vmem:[#allocation18_spill] sm:$0xff]  ;;  %v5933_v50 = vsub.f32 %v8890_v32, %v10819_v63  ;;  %v9519_v10 = vpop.eup %8057 }
 0x675   : > { %v5932_v19 = vsub.f32 %v10818_v8, %v10817_v57  ;;  %v5944_v47 = vrot.slane %v10817_v57, 7  ;;  %v9525_v4 = vpop.eup %8059 }
 0x676   : > { %v6117_v26 = vadd.f32 %v10816_v49, %v6105_v60  ;;  %v5530_v52 = vadd.f32 %v10820_v24, %v5527_v46  ;;  %v6598_v42 = vadd.f32 %v9491_v53, %v6592_v1  ;;  %v10821_v60 = vrot.slane %v9098_v43, 6  ;;  %v9530_v57 = vpop.eup %8061  ;;  %5843 = vrot.lane.b32.xlu1 %v9371_v20, %s8164_s29  ;;  %5841 = vrot.lane.b32.xlu0 %v9369_v36, %s8164_s29  ;;  %v10825_v43 = vld [vmem:[#allocation33_spill] sm:$0xff] }
 0x677   : > { %v5935_v18 = vmul.f32 1.442695, %v5932_v19  ;;  %v5937_v11 = vmul.f32 1.442695, %v5933_v50  ;;  %v5950_v14 = vsub.f32 %v10818_v8, %v5944_v47  ;;  %v10822_v46 = vrot.slane %v9204_v2, 2 }
 0x678   : > { %v6129_v49 = vadd.f32 %v10821_v60, %v6117_v26  ;;  %8077 = vrcp.f32 %v5530_v52  ;;  %v7125_v1 = vrot.slane %v9525_v4, 1  ;;  %v10823_v19 = vrot.slane %v9103_v33, 7  ;;  %v9543_v50 = vpop.eup %8063 }
 0x679   : > { %v6610_v24 = vadd.f32 %v10822_v46, %v6598_v42  ;;  %8079 = vpow2.f32 %v5935_v18  ;;  %v5953_v8 = vmul.f32 1.442695, %v5950_v14  ;;  %v5966_v52 = vsub.f32 %v8890_v32, %v5960_v44  ;;  %v9548_v46 = vpop.eup %8065 }
 0x67a   : > { %v6141_v26 = vadd.f32 %v10823_v19, %v6129_v49  ;;  %v10824_v42 = vrot.slane %v9209_v59, 3  ;;  %v7131_v31 = vadd.f32 %v9519_v10, %v7125_v1  ;;  %8081 = vpow2.f32 %v5937_v11  ;;  %v9552_v14 = vpop.eup %8067 }
 0x67b   : > { %v5955_v60 = vmul.f32 1.442695, %v5951_v6  ;;  %v5447_v33 = vrot.slane %v9543_v50, 1  ;;  %8083 = vpow2.f32 %v5953_v8  ;;  %v5970_v18 = vmul.f32 1.442695, %v5966_v52  ;;  %10826 = vst [vmem:[#allocation23_spill] sm:$0xff] %v9552_v14  ;;  %v9559_v11 = vpop.eup %8069 }
 0x67c   : > { %v6622_v47 = vadd.f32 %v10824_v42, %v6610_v24  ;;  %v6144_v54 = vadd.f32 %v10825_v43, %v6141_v26  ;;  %v10827_v44 = vrot.slane %v9214_v28, 4  ;;  %v10828_v19 = vrot.slane %v9326_v41, 2  ;;  %v10829_v26 = vld [vmem:[#allocation20_spill] sm:$0xff]  ;;  %v9564_v52 = vpop.eup %8071 }
 0x67d   : > { %v5448_v1 = vrot.slane %v9548_v46, 1  ;;  %8085 = vpow2.f32 %v5955_v60  ;;  %v5453_v6 = vadd.f32 %v9530_v57, %v5447_v33  ;;  %v5507_v42 = vrot.slane %v10829_v26, 6  ;;  %10830 = vst [vmem:[#allocation18_spill] sm:$0xff] %v9564_v52 }
 0x67e   : > { %v6634_v49 = vadd.f32 %v10827_v44, %v6622_v47  ;;  %v7143_v24 = vadd.f32 %v10828_v19, %v7131_v31  ;;  %8087 = vrcp.f32 %v6144_v54  ;;  %v5990_v8 = vrot.slane %v10819_v63, 4  ;;  %v9572_v28 = vpop.eup %8073 }
 0x67f   : > { %v10831_v43 = vrot.slane %v9219_v56, 5  ;;  %v10832_v44 = vrot.slane %v9332_v62, 3  ;;  %v5454_v19 = vadd.f32 %v9559_v11, %v5448_v1  ;;  %v5460_v60 = vrot.slane %v9552_v14, 2  ;;  %10833 = vst [vmem:[#allocation7_spill] sm:$0xff] %v9572_v28  ;;  %v9578_v41 = vpop.eup %8075  ;;  %v10838_v56 = vld [vmem:[#allocation21_spill] sm:$0xff] }
 0x680   : > { %v10834_v33 = vrot.slane %v9021_v55, 2  ;;  %8089 = vpow2.f32 %v5970_v18  ;;  %v5996_v26 = vsub.f32 %v8890_v32, %v5990_v8  ;;  %v6020_v59 = vrot.slane %v10819_v63, 2  ;;  %10835 = vst [vmem:[#allocation28_spill] sm:$0xff] %v9578_v41  ;;  %v10840_v8 = vld [vmem:[#allocation9_spill] sm:$0xff] }
 0x681   : > { %v6646_v47 = vadd.f32 %v10831_v43, %v6634_v49  ;;  %v7155_v31 = vadd.f32 %v10832_v44, %v7143_v24  ;;  %v10836_v43 = vrot.slane %v9224_v58, 6  ;;  %v10837_v24 = vrot.slane %v9341_v12, 4 }
 0x682   : > { %v5465_v54 = vadd.f32 %v10834_v33, %v5453_v6  ;;  %v5466_v44 = vadd.f32 %v5460_v60, %v5454_v19  ;;  %v5519_v14 = vrot.slane %v10838_v56, 7  ;;  %v10839_v62 = vrot.slane %v9023_v61, 3 }
 0x683   : > { %v6658_v49 = vadd.f32 %v10836_v43, %v6646_v47  ;;  %v7167_v1 = vadd.f32 %v10837_v24, %v7155_v31  ;;  %v6000_v6 = vmul.f32 1.442695, %v5996_v26  ;;  %v6026_v18 = vsub.f32 %v8890_v32, %v6020_v59  ;;  %v10845_v26 = vld [vmem:[#allocation25_spill] sm:$0xff] }
 0x684   : > { %v5477_v2 = vadd.f32 %v10839_v62, %v5465_v54  ;;  %v6050_v33 = vsub.f32 %v10840_v8, %v10819_v63  ;;  %v10842_v47 = vrot.slane %v9352_v45, 5  ;;  %v10843_v31 = vrot.slane %v10811_v21, 3  ;;  %v10846_v59 = vld [vmem:[#allocation45_spill] sm:$0xff] }
 0x685   : > { %v6670_v13 = vadd.f32 %v10841_v5, %v6658_v49  ;;  %v5484_v60 = vrot.slane %v9564_v52, 4  ;;  %v10844_v24 = vrot.slane %v10812_v17, 4  ;;  %v5520_v54 = vrot.slane %v10845_v26, 7  ;;  %v10863_v52 = vld [vmem:[#allocation38_spill] sm:$0xff] }
 0x686   : > { %v7179_v43 = vadd.f32 %v10842_v47, %v7167_v1  ;;  %v5478_v19 = vadd.f32 %v10843_v31, %v5466_v44  ;;  %8091 = vpow2.f32 %v6000_v6  ;;  %v6030_v32 = vmul.f32 1.442695, %v6026_v18  ;;  %v9604_v47 = vpop.eup %8077 }
 0x687   : > { %v5489_v62 = vadd.f32 %v10844_v24, %v5477_v2  ;;  %v6673_v63 = vadd.f32 %v10846_v59, %v6670_v13  ;;  %v10847_v56 = vrot.slane %v9358_v40, 6  ;;  %v5508_v1 = vrot.slane %v9578_v41, 6  ;;  %10848 = vst [vmem:[#allocation9_spill] sm:$0xff] %v9604_v47  ;;  %v10850_v2 = vld [vmem:[#allocation34_spill] sm:$0xff]  ;;  %v9609_v26 = vpop.eup %8079  ;;  %v10855_v40 = vld [vmem:[#allocation4_spill] sm:$0xff] }
 0x688   : > { %v5490_v49 = vadd.f32 %v5484_v60, %v5478_v19  ;;  %v10849_v44 = vrot.slane %v10814_v48, 5  ;;  %8093 = vpow2.f32 %v6030_v32  ;;  %v6054_v16 = vmul.f32 1.442695, %v6050_v33  ;;  %v10853_v33 = vld [vmem:[#allocation35_spill] sm:$0xff] }
 0x689   : > { %v7191_v5 = vadd.f32 %v10847_v56, %v7179_v43  ;;  %v6073_v24 = vrot.slane %v10850_v2, 2  ;;  %v5536_v13 = vmul.f32 %v9604_v47, %v9412_v25  ;;  %v5557_v6 = vrot.slane %v9604_v47, 7  ;;  %v9616_v43 = vpop.eup %8081 }
 0x68a   : > { %v5501_v31 = vadd.f32 %v10849_v44, %v5489_v62  ;;  %8095 = vrcp.f32 %v6673_v63  ;;  %v10851_v56 = vrot.slane %v9364_v35, 7  ;;  %v10852_v19 = vrot.slane %v10815_v29, 5  ;;  %v10854_v44 = vld [vmem:[#allocation42_spill] sm:$0xff]  ;;  %v9622_v41 = vpop.eup %8083 }
 0x68b   : > { %v6085_v32 = vrot.slane %v10853_v33, 3  ;;  %v6086_v59 = vrot.slane %v10854_v44, 3  ;;  %v5548_v25 = vrot.slane %v5536_v13, %v10855_v40  ;;  %v9626_v58 = vmul.f32 %v9418_v9, %v5557_v6  ;;  %v9630_v35 = vpop.eup %8085  ;;  %v10859_v13 = vld [vmem:[#allocation37_spill] sm:$0xff] }
 0x68c   : > { %v7203_v18 = vadd.f32 %v10851_v56, %v7191_v5  ;;  %v5502_v60 = vadd.f32 %v10852_v19, %v5490_v49  ;;  %v5513_v62 = vadd.f32 %v5507_v42, %v5501_v31  ;;  %v10856_v5 = vld [vmem:[#allocation36_spill] sm:$0xff]  ;;  %8097 = vpow2.f32 %v6054_v16  ;;  %v9633_v31 = vpop.eup %8087 }
 0x68d   : > { %v6097_v56 = vrot.slane %v10856_v5, 4  ;;  %v6061_v42 = vrot.slane %v9622_v41, 1  ;;  %10857 = vst [vmem:[#allocation34_spill] sm:$0xff] %v9633_v31  ;;  %v9636_v19 = vmul.f32 %v5548_v25, %v9371_v20  ;;  %v6062_v9 = vrot.slane %v9630_v35, 1  ;;  %v10862_v25 = vld [vmem:[#allocation43_spill] sm:$0xff]  ;;  %v10867_v5 = vld [vmem:[#allocation46_spill] sm:$0xff] }
 0x68e   : > { %v7206_v63 = vadd.f32 %v9323_v51, %v7203_v18  ;;  %v5514_v29 = vadd.f32 %v5508_v1, %v5502_v60  ;;  %v5525_v49 = vadd.f32 %v5519_v14, %v5513_v62  ;;  %v6109_v6 = vrot.slane %v10859_v13, 5  ;;  %v10860_v14 = vld [vmem:[#allocation22_spill] sm:$0xff]  ;;  %v9644_v60 = vpop.eup %8089 }
 0x68f   : > { %10858 = vst [vmem:[#allocation81_spill] sm:$0xff] %v9636_v19  ;;  %v6150_v18 = vmul.f32 %v9633_v31, %v9437_v30  ;;  %v6171_v51 = vrot.slane %v9633_v31, 7  ;;  %10861 = vst [vmem:[#allocation82_spill] sm:$0xff] %v9644_v60  ;;  %v6067_v62 = vadd.f32 %v9609_v26, %v6061_v42  ;;  %v6110_v48 = vrot.slane %v10862_v25, 5  ;;  %v10864_v19 = vld [vmem:[#allocation5_spill] sm:$0xff] }
 0x690   : > { %8099 = vrcp.f32 %v7206_v63  ;;  %v5526_v1 = vadd.f32 %v5520_v54, %v5514_v29  ;;  %v5528_v16 = vadd.f32 %v10860_v14, %v5525_v49  ;;  %v6068_v63 = vadd.f32 %v9616_v43, %v6062_v9  ;;  %v10865_v49 = vld [vmem:[#allocation41_spill] sm:$0xff]  ;;  %v10866_v14 = vld [vmem:[#allocation8_spill] sm:$0xff] }
 0x691   : > { %v6121_v45 = vrot.slane %v10863_v52, 6  ;;  %v6162_v13 = vrot.slane %v6150_v18, %v10864_v19  ;;  %v9652_v12 = vmul.f32 %v9445_v39, %v6171_v51  ;;  %v6074_v29 = vrot.slane %v9644_v60, 2  ;;  %v10869_v18 = vld [vmem:[#allocation39_spill] sm:$0xff] }
 0x692   : > { %v5529_v30 = vadd.f32 %v9572_v28, %v5526_v1  ;;  %8101 = vrcp.f32 %v5528_v16  ;;  %v6079_v54 = vadd.f32 %v6073_v24, %v6067_v62  ;;  %v6461_v42 = vsub.f32 %v10866_v14, %v10865_v49  ;;  %v10871_v28 = vld [vmem:[#allocation44_spill] sm:$0xff] }
 0x693   : > { %v6462_v9 = vsub.f32 %v10840_v8, %v10867_v5  ;;  %v9661_v25 = vmul.f32 %v6162_v13, %v9371_v20  ;;  %v6133_v52 = vrot.slane %v10869_v18, 7  ;;  %v6473_v51 = vrot.slane %v10865_v49, 7  ;;  %v9665_v39 = vpop.eup %8091 }
 0x694   : > { %8103 = vrcp.f32 %v5529_v30  ;;  %10870 = vst [vmem:[#allocation8_spill] sm:$0xff] %v9665_v39  ;;  %v6080_v1 = vadd.f32 %v6074_v29, %v6068_v63  ;;  %v6091_v16 = vadd.f32 %v6085_v32, %v6079_v54  ;;  %v6134_v24 = vrot.slane %v10871_v28, 7  ;;  %v10875_v28 = vld [vmem:[#allocation6_spill] sm:$0xff] }
 0x695   : > { %10868 = vst [vmem:[#allocation41_spill] sm:$0xff] %v9661_v25  ;;  %v6464_v62 = vmul.f32 1.442695, %v6461_v42  ;;  %v6466_v17 = vmul.f32 1.442695, %v6462_v9  ;;  %v6474_v44 = vrot.slane %v10867_v5, 7  ;;  %v6479_v33 = vsub.f32 %v10866_v14, %v6473_v51  ;;  %v9671_v25 = vpop.eup %8093 }
 0x696   : > { %v6489_v13 = vrot.slane %v10867_v5, 6  ;;  %10872 = vst [vmem:[#allocation46_spill] sm:$0xff] %v9671_v25  ;;  %v6092_v30 = vadd.f32 %v6086_v59, %v6080_v1  ;;  %v6098_v18 = vrot.slane %v9665_v39, 4  ;;  %v6103_v49 = vadd.f32 %v6097_v56, %v6091_v16 }
 0x697   : > { %v6519_v60 = vrot.slane %v10867_v5, 4  ;;  %v9675_v63 = vpop.eup %8095  ;;  %v6122_v32 = vrot.slane %v9671_v25, 6  ;;  %8105 = vpow2.f32 %v6464_v62  ;;  %v6480_v29 = vsub.f32 %v10840_v8, %v6474_v44 }
 0x698   : > { %10873 = vst [vmem:[#allocation83_spill] sm:$0xff] %v9675_v63  ;;  %v6482_v54 = vmul.f32 1.442695, %v6479_v33  ;;  %v6679_v14 = vmul.f32 %v9675_v63, %v9491_v53  ;;  %v6700_v42 = vrot.slane %v9675_v63, 7  ;;  %v6104_v9 = vadd.f32 %v6098_v18, %v6092_v30 }
 0x699   : > { %v6115_v59 = vadd.f32 %v6109_v6, %v6103_v49  ;;  %v6484_v51 = vmul.f32 1.442695, %v6480_v29  ;;  %v6495_v56 = vsub.f32 %v10840_v8, %v6489_v13  ;;  %v6525_v1 = vsub.f32 %v10840_v8, %v6519_v60  ;;  %v9684_v16 = vpop.eup %8097 }
 0x69a   : > { %8107 = vpow2.f32 %v6482_v54  ;;  %10874 = vst [vmem:[#allocation84_spill] sm:$0xff] %v9684_v16  ;;  %v6691_v62 = vrot.slane %v6679_v14, %v10875_v28  ;;  %v9688_v44 = vmul.f32 %v9497_v23, %v6700_v42  ;;  %v6116_v33 = vadd.f32 %v6110_v48, %v6104_v9 }
 0x69b   : > { %v6127_v25 = vadd.f32 %v6121_v45, %v6115_v59  ;;  %8109 = vpow2.f32 %v6484_v51  ;;  %v6499_v18 = vmul.f32 1.442695, %v6495_v56  ;;  %v6529_v6 = vmul.f32 1.442695, %v6525_v1 }
 0x69c   : > { %v6549_v30 = vrot.slane %v10867_v5, 2  ;;  %v9697_v60 = vmul.f32 %v6691_v62, %v9371_v20  ;;  %8111 = vpow2.f32 %v6466_v17  ;;  %v6128_v23 = vadd.f32 %v6122_v32, %v6116_v33 }
 0x69d   : > { %v9690_v53 = vpop.eup %8099  ;;  %v6139_v49 = vadd.f32 %v6133_v52, %v6127_v25  ;;  %8113 = vpow2.f32 %v6499_v18  ;;  %v10880_v25 = vld [vmem:[#allocation40_spill] sm:$0xff]  ;;  %v7007_v59 = vrot.slane %v9335_v7, 7 }
 0x69e   : > { %10876 = vst [vmem:[#allocation6_spill] sm:$0xff] %v9690_v53  ;;  %v7212_v13 = vmul.f32 %v9690_v53, %v9519_v10  ;;  %v7233_v8 = vrot.slane %v9690_v53, 7  ;;  %10877 = vst [vmem:[#allocation85_spill] sm:$0xff] %v9697_v60  ;;  %v6555_v45 = vsub.f32 %v9096_v27, %v6549_v30  ;;  %8115 = vpow2.f32 %v6529_v6  ;;  %v10885_v6 = vld [vmem:[#allocation53_spill] sm:$0xff]  ;;  %v10886_v30 = vld [vmem:[#allocation54_spill] sm:$0xff] }
 0x69f   : > { %v9700_v48 = vpop.eup %8101  ;;  %v6579_v10 = vsub.f32 %v9096_v27, %v10867_v5  ;;  %v6140_v52 = vadd.f32 %v6134_v24, %v6128_v23  ;;  %v6142_v32 = vadd.f32 %v10880_v25, %v6139_v49  ;;  %v10895_v60 = vld [vmem:[#allocation69_spill] sm:$0xff] }
 0x6a0   : > { %10878 = vst [vmem:[#allocation86_spill] sm:$0xff] %v9700_v48  ;;  %v7224_v29 = vrot.slane %v7212_v13, %v9339_v34  ;;  %v9704_v54 = vmul.f32 %v9525_v4, %v7233_v8  ;;  %v5534_v14 = vmul.f32 %v9700_v48, %v9530_v57  ;;  %v5555_v17 = vrot.slane %v9700_v48, 7 }
 0x6a1   : > { %v9712_v42 = vpop.eup %8103  ;;  %v6559_v56 = vmul.f32 1.442695, %v6555_v45  ;;  %v6143_v62 = vadd.f32 %v9684_v16, %v6140_v52  ;;  %8117 = vrcp.f32 %v6142_v32  ;;  %v6583_v33 = vmul.f32 1.442695, %v6579_v10  ;;  %v10889_v10 = vld [vmem:[#allocation56_spill] sm:$0xff] }
 0x6a2   : > { %10879 = vst [vmem:[#allocation87_spill] sm:$0xff] %v9704_v54  ;;  %10881 = vst [vmem:[#allocation88_spill] sm:$0xff] %v9712_v42  ;;  %v9721_v5 = vmul.f32 %v7224_v29, %v9371_v20  ;;  %v5535_v57 = vmul.f32 %v9712_v42, %v9559_v11  ;;  %v5556_v24 = vrot.slane %v9712_v42, 7  ;;  %v9727_v51 = vmul.f32 %v9543_v50, %v5555_v17 }
 0x6a3   : > { %v5540_v1 = vrot.slane %v5534_v14, %v10855_v40  ;;  %v6602_v11 = vrot.slane %v10885_v6, 2  ;;  %v6614_v13 = vrot.slane %v10886_v30, 3  ;;  %8119 = vrcp.f32 %v6143_v62 }
 0x6a4   : > { %10882 = vst [vmem:[#allocation89_spill] sm:$0xff] %v9721_v5  ;;  %10883 = vst [vmem:[#allocation90_spill] sm:$0xff] %v9727_v51  ;;  %v9734_v20 = vmul.f32 %v9548_v46, %v5556_v24  ;;  %v9738_v8 = vpop.eup %8105  ;;  %v5544_v50 = vrot.slane %v5535_v57, %v10855_v40  ;;  %8121 = vpow2.f32 %v6559_v56  ;;  %v6615_v45 = vrot.slane %v9290_v22, 3  ;;  %v10888_v46 = vld [vmem:[#allocation55_spill] sm:$0xff] }
 0x6a5   : > { %v9742_v23 = vmul.f32 %v5540_v1, %v9281_v37  ;;  %v6626_v29 = vrot.slane %v10888_v46, 4  ;;  %v6638_v14 = vrot.slane %v10889_v10, 5  ;;  %8123 = vpow2.f32 %v6583_v33 }
 0x6a6   : > { %10884 = vst [vmem:[#allocation91_spill] sm:$0xff] %v9734_v20  ;;  %v9752_v52 = vmul.f32 %v5544_v50, %v9369_v36  ;;  %v6639_v57 = vrot.slane %v9292_v38, 5  ;;  %v6994_v56 = vsub.f32 %v9081_v15, %v9270_v3  ;;  %v6995_v1 = vsub.f32 %v9096_v27, %v9335_v7  ;;  %v10891_v50 = vld [vmem:[#allocation57_spill] sm:$0xff] }
 0x6a7   : > { %10887 = vst [vmem:[#allocation53_spill] sm:$0xff] %v9742_v23  ;;  %v9749_v17 = vpop.eup %8107  ;;  %v7006_v62 = vrot.slane %v9270_v3, 7  ;;  %v6650_v18 = vrot.slane %v10891_v50, 6  ;;  %v7022_v33 = vrot.slane %v9335_v7, 6  ;;  %v7052_v32 = vrot.slane %v9335_v7, 4 }
 0x6a8   : > { %10890 = vst [vmem:[#allocation54_spill] sm:$0xff] %v9752_v52  ;;  %v6590_v24 = vrot.slane %v9749_v17, 1  ;;  %v9763_v49 = vpop.eup %8109  ;;  %v6997_v25 = vmul.f32 1.442695, %v6994_v56  ;;  %v6999_v38 = vmul.f32 1.442695, %v6995_v1  ;;  %v7013_v50 = vsub.f32 %v9096_v27, %v7007_v59 }
 0x6a9   : > { %v9769_v4 = vpop.eup %8111  ;;  %v6591_v9 = vrot.slane %v9763_v49, 1  ;;  %v7012_v3 = vsub.f32 %v9081_v15, %v7006_v62  ;;  %v7028_v39 = vsub.f32 %v9096_v27, %v7022_v33  ;;  %v7058_v40 = vsub.f32 %v9096_v27, %v7052_v32  ;;  %v10894_v27 = vld [vmem:[#allocation61_spill] sm:$0xff] }
 0x6aa   : > { %v6596_v16 = vadd.f32 %v9738_v8, %v6590_v24  ;;  %v9773_v10 = vpop.eup %8113  ;;  %8125 = vpow2.f32 %v6997_v25  ;;  %v10893_v24 = vld [vmem:[#allocation58_spill] sm:$0xff]  ;;  %v7017_v51 = vmul.f32 1.442695, %v7013_v50  ;;  %v6663_v32 = vrot.slane %v10894_v27, 7 }
 0x6ab   : > { %v9779_v52 = vpop.eup %8115  ;;  %v6597_v7 = vadd.f32 %v9769_v4, %v6591_v9  ;;  %v6603_v23 = vrot.slane %v9773_v10, 2  ;;  %v6662_v56 = vrot.slane %v10893_v24, 7  ;;  %8127 = vpow2.f32 %v6999_v38  ;;  %v10917_v9 = vld [vmem:[#allocation48_spill] sm:$0xff] }
 0x6ac   : > { %10892 = vst [vmem:[#allocation55_spill] sm:$0xff] %v9779_v52  ;;  %v6608_v20 = vadd.f32 %v6602_v11, %v6596_v16  ;;  %v7015_v1 = vmul.f32 1.442695, %v7012_v3  ;;  %v7032_v59 = vmul.f32 1.442695, %v7028_v39  ;;  %v6627_v33 = vrot.slane %v9779_v52, 4 }
 0x6ad   : > { %v6609_v15 = vadd.f32 %v6603_v23, %v6597_v7  ;;  %v7062_v5 = vmul.f32 1.442695, %v7058_v40  ;;  %v5596_v38 = vrot.slane %v9700_v48, 6  ;;  %v10897_v40 = vld [vmem:[#allocation70_spill] sm:$0xff]  ;;  %v10919_v24 = vld [vmem:[#allocation64_spill] sm:$0xff]  ;;  %v5634_v52 = vrot.slane %v9700_v48, 5 }
 0x6ae   : > { %v6620_v62 = vadd.f32 %v6614_v13, %v6608_v20  ;;  %8129 = vpow2.f32 %v7015_v1  ;;  %v9787_v54 = vpop.eup %8117  ;;  %v10901_v1 = vld [vmem:[#allocation71_spill] sm:$0xff] }
 0x6af   : > { %10896 = vst [vmem:[#allocation69_spill] sm:$0xff] %v9787_v54  ;;  %v6621_v16 = vadd.f32 %v6615_v45, %v6609_v15  ;;  %8131 = vpow2.f32 %v7017_v51  ;;  %v6148_v11 = vmul.f32 %v9787_v54, %v9609_v26  ;;  %v6169_v39 = vrot.slane %v9787_v54, 7 }
 0x6b0   : > { %v6632_v25 = vadd.f32 %v6626_v29, %v6620_v62  ;;  %8133 = vpow2.f32 %v7032_v59  ;;  %v9794_v13 = vpop.eup %8119  ;;  %v9797_v3 = vmul.f32 %v9021_v55, %v5596_v38  ;;  %v10900_v29 = vld [vmem:[#allocation77_spill] sm:$0xff]  ;;  %v7260_v38 = vrot.slane %v9690_v53, 6 }
 0x6b1   : > { %10898 = vst [vmem:[#allocation92_spill] sm:$0xff] %v9794_v13  ;;  %v6633_v23 = vadd.f32 %v6627_v33, %v6621_v16  ;;  %8135 = vpow2.f32 %v7062_v5  ;;  %v9799_v45 = vpop.eup %8121  ;;  %v6149_v51 = vmul.f32 %v9794_v13, %v9616_v43  ;;  %v6170_v26 = vrot.slane %v9794_v13, 7  ;;  %v10903_v33 = vld [vmem:[#allocation3_spill] sm:$0xff] }
 0x6b2   : > { %v6644_v50 = vadd.f32 %v6638_v14, %v6632_v25  ;;  %10899 = vst [vmem:[#allocation93_spill] sm:$0xff] %v9799_v45  ;;  %v9806_v62 = vpop.eup %8123  ;;  %v6651_v14 = vrot.slane %v9799_v45, 6  ;;  %v9810_v55 = vsub.s32 5, %v10903_v33  ;;  %v6154_v16 = vrot.slane %v6148_v11, %v10864_v19 }
 0x6b3   : > { %10902 = vst [vmem:[#allocation94_spill] sm:$0xff] %v9806_v62  ;;  %v6645_v59 = vadd.f32 %v6639_v57, %v6633_v23  ;;  %v6158_v25 = vrot.slane %v6149_v51, %v10864_v19  ;;  %v9815_v43 = vmul.f32 %v9622_v41, %v6169_v39  ;;  %v6196_v57 = vrot.slane %v9787_v54, 6  ;;  %v10904_v51 = vld [vmem:[#allocation59_spill] sm:$0xff] }
 0x6b4   : > { %v6656_v5 = vadd.f32 %v6650_v18, %v6644_v50  ;;  %v5598_v23 = vrot.slane %v9604_v47, 6  ;;  %v9822_v18 = vmul.f32 %v6154_v16, %v9281_v37  ;;  %v9825_v50 = vmul.f32 %v9630_v35, %v6170_v26  ;;  %v10908_v37 = vld [vmem:[#allocation26_spill] sm:$0xff]  ;;  %v10909_v35 = vld [vmem:[#allocation47_spill] sm:$0xff] }
 0x6b5   : > { %v6657_v15 = vadd.f32 %v6651_v14, %v6645_v59  ;;  %v6198_v11 = vrot.slane %v9633_v31, 6  ;;  %v6727_v41 = vrot.slane %v9675_v63, 6  ;;  %v9831_v59 = vmul.f32 %v10850_v2, %v6196_v57 }
 0x6b6   : > { %v6668_v7 = vadd.f32 %v6662_v56, %v6656_v5  ;;  %v10906_v56 = vld [vmem:[#allocation11_spill] sm:$0xff]  ;;  %v9849_v2 = vmul.f32 %v6158_v25, %v9369_v36 }
 0x6b7   : > { %v6669_v39 = vadd.f32 %v6663_v32, %v6657_v15  ;;  %10905 = vst [vmem:[#allocation3_spill] sm:$0xff] %v9831_v59  ;;  %v9834_v14 = vmul.f32 %v10906_v56, %v5598_v23  ;;  %v9836_v5 = vpop.eup %8125  ;;  %v9839_v16 = vmul.f32 %v10908_v37, %v6198_v11  ;;  %v9842_v26 = vmul.f32 %v10909_v35, %v6727_v41  ;;  %v10910_v41 = vld [vmem:[#allocation63_spill] sm:$0xff]  ;;  %v10911_v37 = vld [vmem:[#allocation12_spill] sm:$0xff] }
 0x6b8   : > { %v6671_v20 = vadd.f32 %v10904_v51, %v6668_v7  ;;  %10907 = vst [vmem:[#allocation11_spill] sm:$0xff] %v9836_v5  ;;  %v5636_v32 = vrot.slane %v9604_v47, 5  ;;  %v9846_v15 = vpop.eup %8127  ;;  %v9859_v56 = vmul.f32 %v10910_v41, %v7260_v38  ;;  %v7287_v41 = vrot.slane %v9690_v53, 5  ;;  %v10916_v25 = vld [vmem:[#allocation27_spill] sm:$0xff] }
 0x6b9   : > { %v6672_v57 = vadd.f32 %v9806_v62, %v6669_v39  ;;  %v6754_v39 = vrot.slane %v9675_v63, 5  ;;  %v5597_v51 = vrot.slane %v9712_v42, 6  ;;  %v10921_v59 = vld [vmem:[#allocation23_spill] sm:$0xff] }
 0x6ba   : > { %8137 = vrcp.f32 %v6671_v20  ;;  %v9862_v35 = vmul.f32 %v10911_v37, %v5636_v32  ;;  %v6225_v20 = vrot.slane %v9633_v31, 5  ;;  %v9892_v32 = vsub.s32 6, %v10903_v33 }
 0x6bb   : > { %v9864_v36 = vpop.eup %8129  ;;  %8139 = vrcp.f32 %v6672_v57  ;;  %v9885_v62 = vmul.f32 %v10917_v9, %v6754_v39  ;;  %v9895_v45 = vmul.f32 %v10919_v24, %v7287_v41  ;;  %v9908_v24 = vmul.f32 %v10921_v59, %v5597_v51 }
 0x6bc   : > { %10912 = vst [vmem:[#allocation26_spill] sm:$0xff] %v9862_v35  ;;  %10913 = vst [vmem:[#allocation47_spill] sm:$0xff] %v9864_v36  ;;  %v9870_v23 = vpop.eup %8131  ;;  %v7123_v11 = vrot.slane %v9864_v36, 1  ;;  %v9882_v7 = vmul.f32 %v10916_v25, %v6225_v20  ;;  %v5635_v41 = vrot.slane %v9712_v42, 5  ;;  %v6223_v9 = vrot.slane %v9787_v54, 5  ;;  %v9924_v59 = vpop.permute.xlu0 %5579  ;;  %v10929_v42 = vld [vmem:[#allocation42_spill] sm:$0xff] }
 0x6bd   : > { %10914 = vst [vmem:[#allocation63_spill] sm:$0xff] %v9870_v23  ;;  %v9878_v57 = vpop.eup %8133  ;;  %v7124_v37 = vrot.slane %v9870_v23, 1  ;;  %v10922_v39 = vrot.slane %v10897_v40, 3  ;;  %v6224_v51 = vrot.slane %v9794_v13, 5 }
 0x6be   : > { %10915 = vst [vmem:[#allocation12_spill] sm:$0xff] %v9878_v57  ;;  %v9888_v27 = vpop.eup %8135  ;;  %v7129_v38 = vadd.f32 %v9836_v5, %v7123_v11  ;;  %v7136_v20 = vrot.slane %v9878_v57, 2  ;;  %v10920_v11 = vrot.slane %v10895_v60, 2  ;;  %v6197_v57 = vrot.slane %v9794_v13, 6 }
 0x6bf   : > { %10918 = vst [vmem:[#allocation27_spill] sm:$0xff] %v9888_v27  ;;  %v7130_v25 = vadd.f32 %v9846_v15, %v7124_v37  ;;  %v7160_v36 = vrot.slane %v9888_v27, 4  ;;  %v9912_v37 = vmul.f32 %v9023_v61, %v5634_v52  ;;  %v10924_v61 = vrot.slane %v10900_v29, 3  ;;  %v10927_v27 = vld [vmem:[#allocation35_spill] sm:$0xff] }
 0x6c0   : > { %v7141_v23 = vadd.f32 %v10920_v11, %v7129_v38  ;;  %v9921_v11 = vmul.f32 %v10811_v21, %v5635_v41  ;;  %v10926_v21 = vrot.slane %v10901_v1, 4  ;;  %v9940_v13 = vmul.f32 %v10927_v27, %v6223_v9 }
 0x6c1   : > { %v7142_v5 = vadd.f32 %v7136_v20, %v7130_v25  ;;  %v9926_v25 = vpop.permute.xlu1 %5617  ;;  %v9943_v40 = vmul.f32 %v10929_v42, %v6224_v51  ;;  %v10933_v51 = vld [vmem:[#allocation17_spill] sm:$0xff] }
 0x6c2   : > { %v7153_v35 = vadd.f32 %v10922_v39, %v7141_v23  ;;  %10923 = vst [vmem:[#allocation48_spill] sm:$0xff] %v9921_v11  ;;  %v10925_v39 = vld [vmem:[#allocation82_spill] sm:$0xff]  ;;  %10928 = vst [vmem:[#allocation64_spill] sm:$0xff] %v9940_v13 }
 0x6c3   : > { %v7154_v52 = vadd.f32 %v10924_v61, %v7142_v5  ;;  %v9935_v38 = vmul.f32 %v10925_v39, %v6197_v57  ;;  %v5672_v5 = vrot.slane %v9700_v48, 4  ;;  %v10935_v48 = vld [vmem:[#allocation78_spill] sm:$0xff] }
 0x6c4   : > { %v7165_v41 = vadd.f32 %v10926_v21, %v7153_v35  ;;  %v10931_v35 = vld [vmem:[#allocation72_spill] sm:$0xff] }
 0x6c5   : > { %v7166_v61 = vadd.f32 %v7160_v36, %v7154_v52  ;;  %v10932_v27 = vrot.slane %v10931_v35, 5  ;;  %v9959_v21 = vmul.f32 %v10933_v51, %v5672_v5  ;;  %v6250_v36 = vrot.slane %v9787_v54, 4  ;;  %v9962_v52 = vpop.permute.xlu0 %5655  ;;  %v9964_v20 = vpop.permute.xlu1 %5693  ;;  %v10938_v5 = vld [vmem:[#allocation73_spill] sm:$0xff]  ;;  %v10943_v54 = vld [vmem:[#allocation74_spill] sm:$0xff] }
 0x6c6   : > { %10934 = vst [vmem:[#allocation82_spill] sm:$0xff] %v9964_v20  ;;  %v10936_v35 = vrot.slane %v10935_v48, 5  ;;  %v10939_v51 = vrot.slane %v10938_v5, 6  ;;  %v10944_v29 = vrot.slane %v10943_v54, 7 }
 0x6c7   : > { %v9952_v39 = vpop.eup %8137  ;;  %v7177_v9 = vadd.f32 %v10932_v27, %v7165_v41 }
 0x6c8   : > { %10930 = vst [vmem:[#allocation23_spill] sm:$0xff] %v9952_v39  ;;  %v6677_v57 = vmul.f32 %v9952_v39, %v9738_v8  ;;  %v6698_v23 = vrot.slane %v9952_v39, 7  ;;  %v7178_v41 = vadd.f32 %v10936_v35, %v7166_v61  ;;  %v6725_v27 = vrot.slane %v9952_v39, 6  ;;  %v9972_v42 = vpop.eup %8139 }
 0x6c9   : > { %10937 = vst [vmem:[#allocation35_spill] sm:$0xff] %v9972_v42  ;;  %v7189_v1 = vadd.f32 %v10939_v51, %v7177_v9  ;;  %v9981_v8 = vsub.s32 7, %v10903_v33  ;;  %v6678_v48 = vmul.f32 %v9972_v42, %v9769_v4  ;;  %v6699_v35 = vrot.slane %v9972_v42, 7  ;;  %v10941_v9 = vld [vmem:[#allocation79_spill] sm:$0xff]  ;;  %v10000_v4 = vpop.permute.xlu1 %5769 }
 0x6ca   : > { %v6683_v61 = vrot.slane %v6677_v57, %v10875_v28  ;;  %v9988_v11 = vmul.f32 %v9749_v17, %v6698_v23  ;;  %v10942_v51 = vrot.slane %v10941_v9, 6  ;;  %v9995_v20 = vmul.f32 %v10885_v6, %v6725_v27  ;;  %10946 = vst [vmem:[#allocation95_spill] sm:$0xff] %v10000_v4  ;;  %v10949_v27 = vld [vmem:[#allocation80_spill] sm:$0xff] }
 0x6cb   : > { %10940 = vst [vmem:[#allocation42_spill] sm:$0xff] %v9981_v8  ;;  %v7201_v13 = vadd.f32 %v10944_v29, %v7189_v1  ;;  %v6726_v33 = vrot.slane %v9972_v42, 6  ;;  %v9998_v8 = vpop.permute.xlu0 %5731  ;;  %v10003_v57 = vmul.f32 %v9763_v49, %v6699_v35  ;;  %v6752_v17 = vrot.slane %v9952_v39, 5  ;;  %v10012_v29 = vld [vmem:[#allocation2] sm:$0x7]  ;;  %v10951_v49 = vld [vmem:[#allocation75_spill] sm:$0xff] }
 0x6cc   : > { %v7190_v5 = vadd.f32 %v10942_v51, %v7178_v41  ;;  %10945 = vst [vmem:[#allocation17_spill] sm:$0xff] %v9998_v8  ;;  %v10947_v41 = vld [vmem:[#allocation36_spill] sm:$0xff]  ;;  %v6687_v6 = vrot.slane %v6678_v48, %v10875_v28  ;;  %v10015_v1 = vmul.f32 %v10012_v29, %v6683_v61  ;;  %v10950_v54 = vrot.slane %v10949_v27, 7 }
 0x6cd   : > { %v10009_v51 = vmul.f32 %v10947_v41, %v6250_v36  ;;  %v7204_v35 = vadd.f32 %v10951_v49, %v7201_v13  ;;  %v6710_v4 = vrot.slane %v9988_v11, %v9339_v34  ;;  %v10025_v36 = vmul.f32 %v9773_v10, %v6726_v33  ;;  %v10028_v41 = vld [vmem:[#allocation2 + $0x8] sm:$0x7]  ;;  %v10952_v13 = vld [vmem:[#allocation76_spill] sm:$0xff]  ;;  %v10038_v49 = vpop.permute.xlu1 %5839 }
 0x6ce   : > { %v7202_v9 = vadd.f32 %v10950_v54, %v7190_v5  ;;  %v6753_v48 = vrot.slane %v9972_v42, 5  ;;  %v10031_v61 = vmul.f32 %v10028_v41, %v6687_v6  ;;  %v6714_v54 = vrot.slane %v10003_v57, %v9339_v34  ;;  %10954 = vst [vmem:[#allocation97_spill] sm:$0xff] %v10038_v49  ;;  %v10958_v49 = vld [vmem:[#allocation29_spill] sm:$0xff] }
 0x6cf   : > { %10948 = vst [vmem:[#allocation36_spill] sm:$0xff] %v10009_v51  ;;  %8141 = vrcp.f32 %v7204_v35  ;;  %v10036_v11 = vpop.permute.xlu0 %5807  ;;  %v10041_v10 = vmul.f32 %v10886_v30, %v6752_v17  ;;  %v6779_v23 = vrot.slane %v9952_v39, 4  ;;  %v5674_v6 = vrot.slane %v9604_v47, 4  ;;  %v10956_v17 = vld [vmem:[#allocation13_spill] sm:$0xff] }
 0x6d0   : > { %v7205_v5 = vadd.f32 %v10952_v13, %v7202_v9  ;;  %10953 = vst [vmem:[#allocation96_spill] sm:$0xff] %v10036_v11  ;;  %v10044_v33 = vmul.f32 %v9290_v22, %v6753_v48  ;;  %v6252_v57 = vrot.slane %v9633_v31, 4  ;;  %v6781_v9 = vrot.slane %v9675_v63, 4  ;;  %v10960_v11 = vld [vmem:[#allocation49_spill] sm:$0xff]  ;;  %v10990_v63 = vld [vmem:[#allocation47_spill] sm:$0xff] }
 0x6d1   : > { %v7314_v35 = vrot.slane %v9690_v53, 4  ;;  %v10054_v30 = vmul.f32 %v10888_v46, %v6779_v23  ;;  %v10057_v22 = vmul.f32 %v10956_v17, %v5674_v6  ;;  %v5712_v48 = vrot.slane %v9604_v47, 3  ;;  %v10962_v39 = vld [vmem:[#allocation65_spill] sm:$0xff]  ;;  %v5582_v46 = vpop.permute.xlu1 %5581  ;;  %v10963_v17 = vld [vmem:[#allocation14_spill] sm:$0xff]  ;;  %v10968_v23 = vld [vmem:[#allocation87_spill] sm:$0xff] }
 0x6d2   : > { %8143 = vrcp.f32 %v7205_v5  ;;  %v10063_v27 = vmul.f32 %v10958_v49, %v6252_v57  ;;  %v10066_v8 = vmul.f32 %v10960_v11, %v6781_v9  ;;  %v10965_v11 = vrot.slane %v9626_v58, %v10864_v19  ;;  %v10972_v49 = vld [vmem:[#allocation85_spill] sm:$0xff] }
 0x6d3   : > { %10955 = vst [vmem:[#allocation98_spill] sm:$0xff] %v10054_v30  ;;  %10957 = vst [vmem:[#allocation13_spill] sm:$0xff] %v10057_v22  ;;  %v10069_v42 = vmul.f32 %v10962_v39, %v7314_v35  ;;  %v5584_v13 = vpop.permute.xlu0 %5583  ;;  %v10076_v47 = vmul.f32 %v10963_v17, %v5712_v48  ;;  %v10966_v39 = vrot.slane %v9652_v12, %v10875_v28  ;;  %v10992_v30 = vld [vmem:[#allocation26_spill] sm:$0xff] }
 0x6d4   : > { %10959 = vst [vmem:[#allocation29_spill] sm:$0xff] %v10063_v27  ;;  %10961 = vst [vmem:[#allocation49_spill] sm:$0xff] %v10066_v8  ;;  %v5592_v57 = vmul.f32 %v5584_v13, %v10965_v11  ;;  %v10967_v35 = vrot.slane %v9688_v44, %v9339_v34  ;;  %v10969_v6 = vrot.slane %v10968_v23, %v9348_v0  ;;  %v10970_v11 = vld [vmem:[#allocation81_spill] sm:$0xff] }
 0x6d5   : > { %10964 = vst [vmem:[#allocation65_spill] sm:$0xff] %v10076_v47  ;;  %v6192_v9 = vmul.f32 %v10966_v39, %v5584_v13  ;;  %v5585_v48 = vsel %vm404_vm6, %v9924_v59, %v5582_v46  ;;  %v10094_v17 = vsel %vm404_vm6, %v5582_v46, %v5584_v13  ;;  %v10971_v44 = vld [vmem:[#allocation41_spill] sm:$0xff]  ;;  %v10974_v47 = vld [vmem:[#allocation90_spill] sm:$0xff]  ;;  %v10978_v12 = vrot.slane %v9815_v43, %v10875_v28 }
 0x6d6   : > { %v6721_v5 = vmul.f32 %v10967_v35, %v5584_v13  ;;  %v7254_v53 = vmul.f32 %v10969_v6, %v5584_v13  ;;  %v5595_v39 = vadd.f32 %v5592_v57, %v10970_v11  ;;  %v10973_v23 = vld [vmem:[#allocation89_spill] sm:$0xff]  ;;  %v10975_v59 = vrot.slane %v10974_v47, %v10864_v19  ;;  %v10976_v13 = vld [vmem:[#allocation91_spill] sm:$0xff] }
 0x6d7   : > { %v6195_v35 = vadd.f32 %v6192_v9, %v10971_v44  ;;  %v10977_v46 = vrot.slane %v10976_v13, %v10864_v19  ;;  %v6190_v22 = vmul.f32 %v10978_v12, %v5585_v48  ;;  %v10979_v57 = vrot.slane %v9825_v50, %v10875_v28  ;;  %v10981_v13 = vld [vmem:[#allocation54_spill] sm:$0xff] }
 0x6d8   : > { %v6724_v31 = vadd.f32 %v6721_v5, %v10972_v49  ;;  %v7257_v6 = vadd.f32 %v7254_v53, %v10973_v23  ;;  %v5590_v51 = vmul.f32 %v5585_v48, %v10975_v59  ;;  %v5620_v49 = vpop.permute.xlu0 %5619  ;;  %v5622_v53 = vpop.permute.xlu1 %5621  ;;  %v6719_v9 = vmul.f32 %v6710_v4, %v5585_v48  ;;  %v10980_v23 = vld [vmem:[#allocation53_spill] sm:$0xff] }
 0x6d9   : > { %v5591_v58 = vmul.f32 %v10094_v17, %v10977_v46  ;;  %v6191_v5 = vmul.f32 %v10979_v57, %v10094_v17  ;;  %v5623_v47 = vsel %vm746_vm7, %v9926_v25, %v5620_v49  ;;  %v6720_v43 = vmul.f32 %v6714_v54, %v10094_v17 }
 0x6da   : > { %v5593_v59 = vadd.f32 %v5590_v51, %v10980_v23  ;;  %v10126_v12 = vsel %vm746_vm7, %v5620_v49, %v5622_v53  ;;  %v6193_v46 = vadd.f32 %v6190_v22, %v9822_v18  ;;  %v10982_v57 = vrot.slane %v9797_v3, %v10875_v28  ;;  %v10986_v22 = vld [vmem:[#allocation11_spill] sm:$0xff] }
 0x6db   : > { %v5594_v4 = vadd.f32 %v5591_v58, %v10981_v13  ;;  %v10133_v25 = vadd.f32 %v6191_v5, %v9849_v2  ;;  %v6722_v54 = vadd.f32 %v6719_v9, %v10015_v1  ;;  %v10983_v49 = vrot.slane %v9834_v14, %v10875_v28  ;;  %v10987_v1 = vld [vmem:[#allocation3_spill] sm:$0xff] }
 0x6dc   : > { %v5628_v44 = vmul.f32 %v5623_v47, %v10982_v57  ;;  %v10138_v51 = vpop.eup %8141  ;;  %v10984_v58 = vrot.slane %v9839_v16, %v9339_v34  ;;  %v10985_v18 = vrot.slane %v9842_v26, %v9348_v0  ;;  %v10988_v9 = vrot.slane %v10987_v1, %v9339_v34 }
 0x6dd   : > { %v5630_v23 = vmul.f32 %v5622_v53, %v10983_v49  ;;  %v7210_v3 = vmul.f32 %v10138_v51, %v10986_v22  ;;  %v7231_v5 = vrot.slane %v10138_v51, 7  ;;  %v7258_v57 = vrot.slane %v10138_v51, 6  ;;  %v5660_v49 = vpop.permute.xlu0 %5659 }
 0x6de   : > { %v6219_v13 = vmul.f32 %v10984_v58, %v5622_v53  ;;  %v6748_v2 = vmul.f32 %v10985_v18, %v5622_v53  ;;  %v6217_v14 = vmul.f32 %v10988_v9, %v5623_v47  ;;  %v6723_v16 = vadd.f32 %v6720_v43, %v10031_v61 }
 0x6df   : > { %v10157_v50 = vpop.eup %8143  ;;  %v10989_v26 = vrot.slane %v9995_v20, %v9348_v0  ;;  %v5633_v18 = vadd.f32 %v5630_v23, %v5595_v39  ;;  %v7237_v8 = vmul.f32 %v10990_v63, %v7231_v5  ;;  %v5631_v1 = vadd.f32 %v5628_v44, %v5593_v59  ;;  %v10994_v23 = vld [vmem:[#allocation63_spill] sm:$0xff] }
 0x6e0   : > { %v6222_v11 = vadd.f32 %v6219_v13, %v6195_v35  ;;  %v7211_v22 = vmul.f32 %v10157_v50, %v9846_v15  ;;  %v7232_v19 = vrot.slane %v10157_v50, 7  ;;  %v7264_v9 = vmul.f32 %v10895_v60, %v7258_v57 }
 0x6e1   : > { %v6746_v58 = vmul.f32 %v10989_v26, %v5623_v47  ;;  %v6751_v27 = vadd.f32 %v6748_v2, %v6724_v31  ;;  %v10991_v61 = vrot.slane %v9859_v56, %v9810_v55  ;;  %v10993_v20 = vrot.slane %v10992_v30, %v9339_v34 }
 0x6e2   : > { %v7216_v35 = vrot.slane %v7210_v3, %v9339_v34  ;;  %v7238_v15 = vmul.f32 %v10994_v23, %v7232_v19  ;;  %v7243_v13 = vrot.slane %v7237_v8, %v9348_v0  ;;  %v6220_v26 = vadd.f32 %v6217_v14, %v6193_v46  ;;  %v5658_v14 = vpop.permute.xlu1 %5657 }
 0x6e3   : > { %v7281_v43 = vmul.f32 %v10991_v61, %v5622_v53  ;;  %v5668_v39 = vmul.f32 %v5660_v49, %v10993_v20  ;;  %v7220_v63 = vrot.slane %v7211_v22, %v9339_v34  ;;  %v10995_v31 = vrot.slane %v9882_v7, %v9348_v0  ;;  %v11002_v20 = vld [vmem:[#allocation70_spill] sm:$0xff] }
 0x6e4   : > { %v7225_v53 = vmul.f32 %v10012_v29, %v7216_v35  ;;  %v7247_v30 = vrot.slane %v7238_v15, %v9348_v0  ;;  %v7252_v59 = vmul.f32 %v7243_v13, %v5585_v48  ;;  %v10996_v19 = vrot.slane %v9885_v62, %v9810_v55 }
 0x6e5   : > { %v7284_v44 = vadd.f32 %v7281_v43, %v7257_v6  ;;  %v10178_v60 = vadd.f32 %v5668_v39, %v5633_v18  ;;  %v6246_v56 = vmul.f32 %v10995_v31, %v5660_v49  ;;  %v7270_v8 = vrot.slane %v7264_v9, %v9810_v55  ;;  %v11006_v31 = vld [vmem:[#allocation77_spill] sm:$0xff] }
 0x6e6   : > { %v6775_v2 = vmul.f32 %v10996_v19, %v5660_v49  ;;  %v10997_v6 = vrot.slane %v9895_v45, %v9892_v32  ;;  %v10998_v7 = vrot.slane %v9908_v24, %v10875_v28  ;;  %v7226_v5 = vmul.f32 %v10028_v41, %v7220_v63 }
 0x6e7   : > { %v10189_v46 = vadd.f32 %v6246_v56, %v6222_v11  ;;  %v7253_v48 = vmul.f32 %v7247_v30, %v10094_v17  ;;  %v6749_v57 = vadd.f32 %v6746_v58, %v6722_v54  ;;  %v7255_v18 = vadd.f32 %v7252_v59, %v7225_v53  ;;  %v11001_v54 = vld [vmem:[#allocation12_spill] sm:$0xff] }
 0x6e8   : > { %v7308_v3 = vmul.f32 %v10997_v6, %v5660_v49  ;;  %v5629_v29 = vmul.f32 %v10126_v12, %v10998_v7  ;;  %v6778_v62 = vadd.f32 %v6775_v2, %v6751_v27  ;;  %v7279_v22 = vmul.f32 %v7270_v8, %v5623_v47  ;;  %v11007_v53 = vld [vmem:[#allocation48_spill] sm:$0xff]  ;;  %v5696_v6 = vpop.permute.xlu0 %5695 }
 0x6e9   : > { %v7259_v9 = vrot.slane %v10157_v50, 6  ;;  %v10999_v45 = vrot.slane %v9935_v38, %v9339_v34  ;;  %v11000_v41 = vrot.slane %v10025_v36, %v9348_v0  ;;  %v7285_v17 = vrot.slane %v10138_v51, 5  ;;  %v11004_v36 = vld [vmem:[#allocation64_spill] sm:$0xff] }
 0x6ea   : > { %v7311_v11 = vadd.f32 %v7308_v3, %v7284_v44  ;;  %v5632_v61 = vadd.f32 %v5629_v29, %v5594_v4  ;;  %v7256_v27 = vadd.f32 %v7253_v48, %v7226_v5  ;;  %v7286_v47 = vrot.slane %v10157_v50, 5 }
 0x6eb   : > { %v6218_v24 = vmul.f32 %v10999_v45, %v10126_v12  ;;  %v6747_v43 = vmul.f32 %v11000_v41, %v10126_v12  ;;  %v7265_v58 = vmul.f32 %v11001_v54, %v7259_v9  ;;  %v5661_v4 = vsel %vm928_vm8, %v9962_v52, %v5658_v14  ;;  %v11012_v45 = vld [vmem:[#allocation82_spill] sm:$0xff] }
 0x6ec   : > { %v7291_v39 = vmul.f32 %v11002_v20, %v7285_v17  ;;  %v5662_v38 = vsel %vm928_vm8, %v5658_v14, %v5660_v49  ;;  %v11003_v35 = vrot.slane %v9912_v37, %v9339_v34  ;;  %v11005_v15 = vrot.slane %v11004_v36, %v9348_v0  ;;  %v11022_v36 = vld [vmem:[#allocation29_spill] sm:$0xff] }
 0x6ed   : > { %v7282_v63 = vadd.f32 %v7279_v22, %v7255_v18  ;;  %v7274_v44 = vrot.slane %v7265_v58, %v9810_v55  ;;  %v7292_v56 = vmul.f32 %v11006_v31, %v7286_v47  ;;  %v11008_v52 = vrot.slane %v11007_v53, %v9339_v34  ;;  %v11016_v47 = vld [vmem:[#allocation36_spill] sm:$0xff] }
 0x6ee   : > { %v5666_v23 = vmul.f32 %v5661_v4, %v11003_v35  ;;  %v6244_v13 = vmul.f32 %v11005_v15, %v5661_v4  ;;  %v6221_v59 = vadd.f32 %v6218_v24, %v10133_v25  ;;  %v7297_v49 = vrot.slane %v7291_v39, %v9892_v32  ;;  %v5698_v24 = vpop.permute.xlu1 %5697  ;;  %v11018_v39 = vld [vmem:[#allocation98_spill] sm:$0xff]  ;;  %v11020_v35 = vld [vmem:[#allocation13_spill] sm:$0xff] }
 0x6ef   : > { %v5667_v30 = vmul.f32 %v5662_v38, %v11008_v52  ;;  %v11009_v37 = vrot.slane %v9943_v40, %v9348_v0  ;;  %v11010_v2 = vrot.slane %v10041_v10, %v9810_v55  ;;  %v6750_v3 = vadd.f32 %v6747_v43, %v6723_v16  ;;  %v5736_v52 = vpop.permute.xlu0 %5735 }
 0x6f0   : > { %v7280_v7 = vmul.f32 %v7274_v44, %v10126_v12  ;;  %v7301_v29 = vrot.slane %v7292_v56, %v9892_v32  ;;  %v5669_v5 = vadd.f32 %v5666_v23, %v5631_v1  ;;  %v6247_v48 = vadd.f32 %v6244_v13, %v6220_v26  ;;  %v11013_v1 = vld [vmem:[#allocation71_spill] sm:$0xff]  ;;  %v11024_v44 = vld [vmem:[#allocation49_spill] sm:$0xff] }
 0x6f1   : > { %v6245_v19 = vmul.f32 %v11009_v37, %v5662_v38  ;;  %v6773_v8 = vmul.f32 %v11010_v2, %v5661_v4  ;;  %v11011_v25 = vrot.slane %v10044_v33, %v9810_v55  ;;  %v7306_v18 = vmul.f32 %v7297_v49, %v5661_v4  ;;  %v11026_v37 = vld [vmem:[#allocation65_spill] sm:$0xff] }
 0x6f2   : > { %v7312_v40 = vrot.slane %v10138_v51, 4  ;;  %v7283_v22 = vadd.f32 %v7280_v7, %v7256_v27  ;;  %v10241_v9 = vadd.f32 %v5667_v30, %v5632_v61  ;;  %v7307_v10 = vmul.f32 %v7301_v29, %v5662_v38  ;;  %v11015_v61 = vld [vmem:[#allocation42_spill] sm:$0xff] }
 0x6f3   : > { %v6774_v14 = vmul.f32 %v11011_v25, %v5662_v38  ;;  %v5699_v16 = vsel %vm1110_vm9, %v11012_v45, %v5696_v6  ;;  %v10245_v12 = vadd.f32 %v6245_v19, %v6221_v59  ;;  %v6776_v41 = vadd.f32 %v6773_v8, %v6749_v57  ;;  %v11029_v7 = vld [vmem:[#allocation30_spill] sm:$0xff]  ;;  %v11030_v25 = vld [vmem:[#allocation83_spill] sm:$0xff]  ;;  %v11034_v45 = vld [vmem:[#allocation88_spill] sm:$0xff] }
 0x6f4   : > { %v7318_v26 = vmul.f32 %v11013_v1, %v7312_v40  ;;  %v11014_v33 = vrot.slane %v9959_v21, %v9348_v0  ;;  %v7309_v54 = vadd.f32 %v7306_v18, %v7282_v63  ;;  %v10253_v27 = vadd.f32 %v7307_v10, %v7283_v22  ;;  %v11032_v18 = vld [vmem:[#allocation50_spill] sm:$0xff] }
 0x6f5   : > { %v10251_v17 = vadd.f32 %v6774_v14, %v6750_v3  ;;  %v7332_v58 = vrot.slane %v10069_v42, %v11015_v61  ;;  %v11017_v4 = vrot.slane %v11016_v47, %v9810_v55  ;;  %v11019_v57 = vrot.slane %v11018_v39, %v9892_v32  ;;  %v11027_v3 = vld [vmem:[#allocation34_spill] sm:$0xff] }
 0x6f6   : > { %v5704_v43 = vmul.f32 %v5699_v16, %v11014_v33  ;;  %v11021_v21 = vrot.slane %v11020_v35, %v9348_v0  ;;  %v11023_v15 = vrot.slane %v11022_v36, %v9810_v55  ;;  %v7324_v63 = vrot.slane %v7318_v26, %v11015_v61  ;;  %v11036_v33 = vld [vmem:[#allocation66_spill] sm:$0xff]  ;;  %v11040_v36 = vld [vmem:[#allocation4_spill] sm:$0xff] }
 0x6f7   : > { %v6271_v20 = vmul.f32 %v11017_v4, %v5699_v16  ;;  %v6800_v38 = vmul.f32 %v11019_v57, %v5699_v16  ;;  %v10271_v42 = vsel %vm1110_vm9, %v5696_v6, %v5698_v24  ;;  %v11025_v31 = vrot.slane %v11024_v44, %v9892_v32  ;;  %v11037_v47 = vld [vmem:[#allocation18_spill] sm:$0xff]  ;;  %v11038_v4 = vld [vmem:[#allocation92_spill] sm:$0xff] }
 0x6f8   : > { %v5706_v23 = vmul.f32 %v5698_v24, %v11021_v21  ;;  %v6273_v13 = vmul.f32 %v11023_v15, %v5698_v24  ;;  %v7335_v53 = vmul.f32 %v7332_v58, %v5698_v24  ;;  %v10276_v30 = vadd.f32 %v5704_v43, %v5669_v5  ;;  %v11033_v5 = vld [vmem:[#allocation6_spill] sm:$0xff]  ;;  %v11039_v21 = vld [vmem:[#allocation19_spill] sm:$0xff]  ;;  %v11041_v44 = vld [vmem:[#allocation8_spill] sm:$0xff] }
 0x6f9   : > { %v6802_v56 = vmul.f32 %v11025_v31, %v5698_v24  ;;  %v5730_v19 = vrot.slane %v11026_v37, %v9810_v55  ;;  %v11028_v6 = vrot.slane %v11027_v3, 3  ;;  %v11031_v14 = vrot.slane %v11030_v25, 3 }
 0x6fa   : > { %v5709_v59 = vadd.f32 %v5706_v23, %v10178_v60  ;;  %v6276_v49 = vadd.f32 %v6273_v13, %v10189_v46  ;;  %v7338_v8 = vadd.f32 %v7335_v53, %v7311_v11  ;;  %v10288_v22 = vadd.f32 %v6271_v20, %v6247_v48  ;;  %v11035_v11 = vld [vmem:[#allocation86_spill] sm:$0xff] }
 0x6fb   : > { %v6805_v2 = vadd.f32 %v6802_v56, %v6778_v62  ;;  %v6285_v29 = vmul.f32 %v11029_v7, %v11028_v6  ;;  %v6814_v40 = vmul.f32 %v11032_v18, %v11031_v14  ;;  %v7341_v10 = vrot.slane %v11033_v5, 3  ;;  %v11042_v56 = vld [vmem:[#allocation69_spill] sm:$0xff]  ;;  %v11043_v6 = vld [vmem:[#allocation24_spill] sm:$0xff] }
 0x6fc   : > { %v5744_v60 = vmul.f32 %v5736_v52, %v5730_v19  ;;  %v5673_v46 = vrot.slane %v11034_v45, 4  ;;  %v5710_v1 = vrot.slane %v11035_v11, 3  ;;  %v5711_v26 = vrot.slane %v11034_v45, 3  ;;  %v11044_v18 = vld [vmem:[#allocation37_spill] sm:$0xff] }
 0x6fd   : > { %v6297_v24 = vrot.slane %v6285_v29, %v9892_v32  ;;  %v6826_v62 = vrot.slane %v6814_v40, %v11015_v61  ;;  %v7347_v43 = vmul.f32 %v11036_v33, %v7341_v10  ;;  %v6251_v20 = vrot.slane %v11038_v4, 4  ;;  %v11045_v40 = vld [vmem:[#allocation35_spill] sm:$0xff] }
 0x6fe   : > { %v10297_v58 = vadd.f32 %v5744_v60, %v5709_v59  ;;  %v5679_v48 = vmul.f32 %v11037_v47, %v5673_v46  ;;  %v7333_v39 = vmul.f32 %v7324_v63, %v5699_v16  ;;  %v5716_v23 = vmul.f32 %v11039_v21, %v5710_v1  ;;  %v11046_v60 = vld [vmem:[#allocation23_spill] sm:$0xff] }
 0x6ff   : > { %v6300_v57 = vmul.f32 %v6297_v24, %v5736_v52  ;;  %v6829_v35 = vmul.f32 %v6826_v62, %v5736_v52  ;;  %v7359_v15 = vrot.slane %v7347_v43, %v11040_v36  ;;  %v6257_v31 = vmul.f32 %v11041_v44, %v6251_v20  ;;  %v11047_v24 = vld [vmem:[#allocation43_spill] sm:$0xff]  ;;  %v11052_v44 = vld [vmem:[#allocation72_spill] sm:$0xff] }
 0x700   : > { %v5688_v13 = vrot.slane %v5679_v48, %v9348_v0  ;;  %v6277_v53 = vrot.slane %v11042_v56, 3  ;;  %v6803_v37 = vadd.f32 %v6800_v38, %v6776_v41  ;;  %v5717_v7 = vmul.f32 %v11043_v6, %v5711_v26  ;;  %v11048_v43 = vld [vmem:[#allocation55_spill] sm:$0xff]  ;;  %v5734_v48 = vpop.permute.xlu1 %5733 }
 0x701   : > { %v10306_v59 = vadd.f32 %v6300_v57, %v6276_v49  ;;  %v10308_v19 = vadd.f32 %v6829_v35, %v6805_v2  ;;  %v7362_v16 = vmul.f32 %v7359_v15, %v5736_v52  ;;  %v6266_v29 = vrot.slane %v6257_v31, %v9810_v55  ;;  %v11049_v57 = vld [vmem:[#allocation56_spill] sm:$0xff]  ;;  %v11051_v15 = vld [vmem:[#allocation27_spill] sm:$0xff] }
 0x702   : > { %v5705_v63 = vmul.f32 %v10271_v42, %v5688_v13  ;;  %v6278_v14 = vrot.slane %v11038_v4, 3  ;;  %v6283_v0 = vmul.f32 %v11044_v18, %v6277_v53  ;;  %v6780_v10 = vrot.slane %v11045_v40, 4  ;;  %v11053_v53 = vld [vmem:[#allocation17_spill] sm:$0xff] }
 0x703   : > { %v6806_v46 = vrot.slane %v11046_v60, 3  ;;  %v6807_v41 = vrot.slane %v11045_v40, 3  ;;  %v7336_v38 = vadd.f32 %v7333_v39, %v7309_v54  ;;  %v10318_v49 = vadd.f32 %v7362_v16, %v7338_v8 }
 0x704   : > { %v5722_v2 = vrot.slane %v5716_v23, %v9810_v55  ;;  %v6284_v62 = vmul.f32 %v11047_v24, %v6278_v14  ;;  %v5708_v1 = vadd.f32 %v5705_v63, %v10241_v9  ;;  %v5726_v26 = vrot.slane %v5717_v7, %v9810_v55  ;;  %v11050_v9 = vld [vmem:[#allocation60_spill] sm:$0xff]  ;;  %v11054_v63 = vld [vmem:[#allocation78_spill] sm:$0xff] }
 0x705   : > { %v6272_v33 = vmul.f32 %v6266_v29, %v10271_v42  ;;  %v6786_v47 = vmul.f32 %v11048_v43, %v6780_v10  ;;  %v6289_v20 = vrot.slane %v6283_v0, %v9892_v32  ;;  %v6812_v35 = vmul.f32 %v11049_v57, %v6806_v46 }
 0x706   : > { %v7313_v54 = vrot.slane %v10157_v50, 4  ;;  %v7339_v8 = vrot.slane %v10138_v51, 3  ;;  %v6293_v39 = vrot.slane %v6284_v62, %v9892_v32  ;;  %v6813_v23 = vmul.f32 %v11050_v9, %v6807_v41 }
 0x707   : > { %v6795_v21 = vrot.slane %v6786_v47, %v9892_v32  ;;  %v7340_v55 = vrot.slane %v10157_v50, 3  ;;  %v5737_v6 = vsel %vm1292_vm10, %v11053_v53, %v5734_v48  ;;  %v5738_v7 = vsel %vm1292_vm10, %v5734_v48, %v5736_v52 }
 0x708   : > { %v7319_v13 = vmul.f32 %v11051_v15, %v7313_v54  ;;  %v7345_v31 = vmul.f32 %v11052_v44, %v7339_v8  ;;  %v5742_v14 = vmul.f32 %v5737_v6, %v5722_v2  ;;  %v5743_v18 = vmul.f32 %v5738_v7, %v5726_v26  ;;  %v11057_v15 = vld [vmem:[#allocation57_spill] sm:$0xff]  ;;  %v11058_v44 = vld [vmem:[#allocation95_spill] sm:$0xff] }
 0x709   : > { %v6801_v16 = vmul.f32 %v6795_v21, %v10271_v42  ;;  %v7346_v29 = vmul.f32 %v11054_v63, %v7340_v55  ;;  %v6818_v0 = vrot.slane %v6812_v35, %v11015_v61  ;;  %v6298_v46 = vmul.f32 %v6289_v20, %v5737_v6  ;;  %v11055_v21 = vld [vmem:[#allocation20_spill] sm:$0xff]  ;;  %v11060_v63 = vld [vmem:[#allocation9_spill] sm:$0xff] }
 0x70a   : > { %v7328_v10 = vrot.slane %v7319_v13, %v11015_v61  ;;  %v6299_v41 = vmul.f32 %v6293_v39, %v5738_v7  ;;  %v6275_v24 = vadd.f32 %v6272_v33, %v10245_v12  ;;  %v6822_v43 = vrot.slane %v6813_v23, %v11015_v61  ;;  %v11056_v23 = vld [vmem:[#allocation38_spill] sm:$0xff] }
 0x70b   : > { %v6804_v62 = vadd.f32 %v6801_v16, %v10251_v17  ;;  %v7351_v52 = vrot.slane %v7345_v31, %v11040_v36  ;;  %v7355_v48 = vrot.slane %v7346_v29, %v11040_v36  ;;  %v5745_v2 = vadd.f32 %v5742_v14, %v10276_v30  ;;  %v10356_v17 = vpop.permute.xlu0 %5771 }
 0x70c   : > { %v7334_v47 = vmul.f32 %v7328_v10, %v10271_v42  ;;  %v6827_v26 = vmul.f32 %v6818_v0, %v5737_v6  ;;  %v10350_v57 = vadd.f32 %v5743_v18, %v5708_v1  ;;  %v6301_v20 = vadd.f32 %v6298_v46, %v10288_v22  ;;  %v11061_v46 = vld [vmem:[#allocation15_spill] sm:$0xff] }
 0x70d   : > { %v10353_v35 = vadd.f32 %v6299_v41, %v6275_v24  ;;  %v5748_v12 = vrot.slane %v11035_v11, 2  ;;  %v6828_v33 = vmul.f32 %v6822_v43, %v5738_v7  ;;  %v7360_v54 = vmul.f32 %v7351_v52, %v5737_v6  ;;  %v11059_v6 = vld [vmem:[#allocation73_spill] sm:$0xff]  ;;  %v11062_v24 = vld [vmem:[#allocation31_spill] sm:$0xff] }
 0x70e   : > { %v6304_v8 = vrot.slane %v11042_v56, 2  ;;  %v6833_v42 = vrot.slane %v11046_v60, 2  ;;  %v7337_v39 = vadd.f32 %v7334_v47, %v10253_v27  ;;  %v7361_v30 = vmul.f32 %v7355_v48, %v5738_v7  ;;  %v11063_v48 = vld [vmem:[#allocation51_spill] sm:$0xff] }
 0x70f   : > { %v5754_v1 = vmul.f32 %v11055_v21, %v5748_v12  ;;  %v7366_v9 = vrot.slane %v10138_v51, 2  ;;  %v6830_v22 = vadd.f32 %v6827_v26, %v6803_v37  ;;  %v5775_v31 = vsel %vm1474_vm11, %v11058_v44, %v10356_v17  ;;  %v11064_v12 = vld [vmem:[#allocation67_spill] sm:$0xff] }
 0x710   : > { %v6310_v55 = vmul.f32 %v11056_v23, %v6304_v8  ;;  %v6839_v13 = vmul.f32 %v11057_v15, %v6833_v42  ;;  %v5750_v27 = vrot.slane %v11060_v63, 2  ;;  %v6306_v7 = vrot.slane %v11027_v3, 2  ;;  %v11065_v42 = vld [vmem:[#allocation5_spill] sm:$0xff] }
 0x711   : > { %v5760_v53 = vrot.slane %v5754_v1, %v9892_v32  ;;  %v7372_v16 = vmul.f32 %v11059_v6, %v7366_v9  ;;  %v10372_v29 = vadd.f32 %v6828_v33, %v6804_v62  ;;  %v6835_v14 = vrot.slane %v11030_v25, 2  ;;  %v5774_v33 = vpop.permute.xlu1 %5773 }
 0x712   : > { %v6316_v37 = vrot.slane %v6310_v55, %v11015_v61  ;;  %v7368_v18 = vrot.slane %v11033_v5, 2  ;;  %v7363_v0 = vadd.f32 %v7360_v54, %v7336_v38  ;;  %v5756_v41 = vmul.f32 %v11061_v46, %v5750_v27 }
 0x713   : > { %v5780_v10 = vmul.f32 %v5775_v31, %v5760_v53  ;;  %v6312_v43 = vmul.f32 %v11062_v24, %v6306_v7  ;;  %v6845_v52 = vrot.slane %v6839_v13, %v11040_v36  ;;  %v6841_v26 = vmul.f32 %v11063_v48, %v6835_v14  ;;  %v11066_v14 = vld [vmem:[#allocation16_spill] sm:$0xff] }
 0x714   : > { %v6325_v47 = vmul.f32 %v6316_v37, %v5775_v31  ;;  %v7374_v62 = vmul.f32 %v11064_v12, %v7368_v18  ;;  %v10382_v8 = vadd.f32 %v7361_v30, %v7337_v39  ;;  %v7378_v21 = vrot.slane %v7372_v16, %v11065_v42  ;;  %v11069_v24 = vld [vmem:[#allocation68_spill] sm:$0xff] }
 0x715   : > { %v5768_v1 = vrot.slane %v5756_v41, %v9892_v32  ;;  %v6324_v38 = vrot.slane %v6312_v43, %v11015_v61  ;;  %v10387_v54 = vadd.f32 %v5780_v10, %v5745_v2  ;;  %v6854_v9 = vmul.f32 %v6845_v52, %v5775_v31  ;;  %v11067_v10 = vld [vmem:[#allocation32_spill] sm:$0xff] }
 0x716   : > { %v6853_v23 = vrot.slane %v6841_v26, %v11040_v36  ;;  %v7386_v55 = vrot.slane %v7374_v62, %v11065_v42  ;;  %v10391_v15 = vadd.f32 %v6325_v47, %v6301_v20  ;;  %v7387_v13 = vmul.f32 %v7378_v21, %v5775_v31  ;;  %v11068_v41 = vld [vmem:[#allocation52_spill] sm:$0xff] }
 0x717   : > { %v5782_v44 = vmul.f32 %v5774_v33, %v5768_v1  ;;  %v6327_v53 = vmul.f32 %v6324_v38, %v5774_v33  ;;  %v5788_v6 = vrot.slane %v11060_v63, 1  ;;  %v6333_v16 = vrot.slane %v11027_v3, 1  ;;  %v11070_v1 = vld [vmem:[#allocation28_spill] sm:$0xff] }
 0x718   : > { %v6856_v39 = vmul.f32 %v6853_v23, %v5774_v33  ;;  %v7389_v30 = vmul.f32 %v7386_v55, %v5774_v33  ;;  %v6862_v7 = vrot.slane %v11030_v25, 1  ;;  %v7395_v20 = vrot.slane %v11033_v5, 1  ;;  %v11072_v55 = vld [vmem:[#allocation46_spill] sm:$0xff] }
 0x719   : > { %v10396_v27 = vadd.f32 %v5782_v44, %v10297_v58  ;;  %v10399_v2 = vadd.f32 %v6327_v53, %v10306_v59  ;;  %v5794_v18 = vmul.f32 %v11066_v14, %v5788_v6  ;;  %v6339_v46 = vmul.f32 %v11067_v10, %v6333_v16 }
 0x71a   : > { %v10404_v31 = vadd.f32 %v6856_v39, %v10308_v19  ;;  %v10407_v37 = vadd.f32 %v7389_v30, %v10318_v49  ;;  %v6868_v58 = vmul.f32 %v11068_v41, %v6862_v7  ;;  %v7401_v43 = vmul.f32 %v11069_v24, %v7395_v20  ;;  %v5812_v19 = vpop.permute.xlu0 %5811 }
 0x71b   : > { %v5749_v59 = vrot.slane %v11034_v45, 2  ;;  %v5786_v52 = vrot.slane %v11035_v11, 1  ;;  %v10415_v47 = vadd.f32 %v6854_v9, %v6830_v22  ;;  %v10417_v48 = vadd.f32 %v7387_v13, %v7363_v0  ;;  %v11071_v0 = vld [vmem:[#allocation21_spill] sm:$0xff] }
 0x71c   : > { %v5787_v49 = vrot.slane %v11034_v45, 1  ;;  %v6305_v26 = vrot.slane %v11038_v4, 2  ;;  %v5776_v12 = vsel %vm1474_vm11, %v10356_v17, %v5774_v33  ;;  %v5806_v62 = vrot.slane %v5794_v18, %v11015_v61  ;;  %v11073_v33 = vld [vmem:[#allocation25_spill] sm:$0xff] }
 0x71d   : > { %v6351_v21 = vrot.slane %v6339_v46, %v11040_v36  ;;  %v5755_v38 = vmul.f32 %v11070_v1, %v5749_v59  ;;  %v6880_v23 = vrot.slane %v6868_v58, %v11065_v42  ;;  %v7413_v22 = vrot.slane %v7401_v43, %v10875_v28  ;;  %v11075_v58 = vld [vmem:[#allocation44_spill] sm:$0xff] }
 0x71e   : > { %v5792_v9 = vmul.f32 %v11071_v0, %v5786_v52  ;;  %v6311_v13 = vmul.f32 %v11072_v55, %v6305_v26  ;;  %v10430_v44 = vmul.f32 %v5812_v19, %v5806_v62  ;;  %v5793_v39 = vmul.f32 %v11073_v33, %v5787_v49  ;;  %v11076_v26 = vld [vmem:[#allocation93_spill] sm:$0xff]  ;;  %v11079_v55 = vld [vmem:[#allocation79_spill] sm:$0xff] }
 0x71f   : > { %v10432_v53 = vmul.f32 %v6351_v21, %v5812_v19  ;;  %v5764_v17 = vrot.slane %v5755_v38, %v9892_v32  ;;  %v10436_v30 = vmul.f32 %v6880_v23, %v5812_v19  ;;  %v6331_v16 = vrot.slane %v11042_v56, 1  ;;  %v11074_v32 = vld [vmem:[#allocation39_spill] sm:$0xff]  ;;  %v5810_v21 = vpop.permute.xlu1 %5809  ;;  %v11077_v38 = vld [vmem:[#allocation58_spill] sm:$0xff] }
 0x720   : > { %v6320_v6 = vrot.slane %v6311_v13, %v11015_v61  ;;  %v6332_v7 = vrot.slane %v11038_v4, 1  ;;  %v6834_v14 = vrot.slane %v11045_v40, 2  ;;  %v6860_v18 = vrot.slane %v11046_v60, 1 }
 0x721   : > { %v5781_v20 = vmul.f32 %v5776_v12, %v5764_v17  ;;  %v6861_v10 = vrot.slane %v11045_v40, 1  ;;  %v10444_v46 = vmul.f32 %v7413_v22, %v5812_v19  ;;  %v6337_v41 = vmul.f32 %v11074_v32, %v6331_v16  ;;  %v11078_v22 = vld [vmem:[#allocation61_spill] sm:$0xff]  ;;  %v11080_v16 = vld [vmem:[#allocation96_spill] sm:$0xff] }
 0x722   : > { %v6338_v24 = vmul.f32 %v11075_v58, %v6332_v7  ;;  %v7367_v43 = vrot.slane %v10157_v50, 2  ;;  %v5798_v59 = vrot.slane %v5792_v9, %v11015_v61  ;;  %v5802_v52 = vrot.slane %v5793_v39, %v11015_v61 }
 0x723   : > { %v6326_v49 = vmul.f32 %v6320_v6, %v5776_v12  ;;  %v6840_v62 = vmul.f32 %v11076_v26, %v6834_v14  ;;  %v5784_v1 = vadd.f32 %v5781_v20, %v10350_v57  ;;  %v6866_v23 = vmul.f32 %v11077_v38, %v6860_v18  ;;  %v11081_v14 = vld [vmem:[#allocation74_spill] sm:$0xff] }
 0x724   : > { %v6867_v0 = vmul.f32 %v11078_v22, %v6861_v10  ;;  %v7373_v13 = vmul.f32 %v11079_v55, %v7367_v43  ;;  %v6343_v17 = vrot.slane %v6337_v41, %v11040_v36  ;;  %v6347_v33 = vrot.slane %v6338_v24, %v11040_v36  ;;  %v11082_v24 = vld [vmem:[#allocation80_spill] sm:$0xff] }
 0x725   : > { %v6849_v9 = vrot.slane %v6840_v62, %v11040_v36  ;;  %v7393_v61 = vrot.slane %v10138_v51, 1  ;;  %v7394_v6 = vrot.slane %v10157_v50, 1  ;;  %v5813_v57 = vsel %vm1656_vm12, %v11080_v16, %v5810_v21 }
 0x726   : > { %v7382_v39 = vrot.slane %v7373_v13, %v11065_v42  ;;  %v5814_v7 = vsel %vm1656_vm12, %v5810_v21, %v5812_v19  ;;  %v5818_v10 = vmul.f32 %v5813_v57, %v5798_v59  ;;  %v6329_v41 = vadd.f32 %v6326_v49, %v10353_v35  ;;  %v11083_v13 = vld [vmem:[#allocation22_spill] sm:$0xff] }
 0x727   : > { %v6855_v20 = vmul.f32 %v6849_v9, %v5776_v12  ;;  %v7399_v18 = vmul.f32 %v11081_v14, %v7393_v61  ;;  %v5819_v32 = vmul.f32 %v5814_v7, %v5802_v52  ;;  %v7400_v43 = vmul.f32 %v11082_v24, %v7394_v6  ;;  %v11085_v9 = vld [vmem:[#allocation59_spill] sm:$0xff] }
 0x728   : > { %v7388_v58 = vmul.f32 %v7382_v39, %v5776_v12  ;;  %v6352_v26 = vmul.f32 %v6343_v17, %v5813_v57  ;;  %v6872_v62 = vrot.slane %v6866_v23, %v11065_v42  ;;  %v6876_v38 = vrot.slane %v6867_v0, %v11065_v42  ;;  %v11084_v17 = vld [vmem:[#allocation40_spill] sm:$0xff]  ;;  %v11088_v14 = vld [vmem:[#allocation7_spill] sm:$0xff] }
 0x729   : > { %v7405_v22 = vrot.slane %v7399_v18, %v10875_v28  ;;  %v6353_v55 = vmul.f32 %v6347_v33, %v5814_v7  ;;  %v6858_v19 = vadd.f32 %v6855_v20, %v10372_v29  ;;  %v5821_v59 = vadd.f32 %v5818_v10, %v10387_v54 }
 0x72a   : > { %v7391_v21 = vadd.f32 %v7388_v58, %v10382_v8  ;;  %v10474_v52 = vadd.f32 %v5819_v32, %v5784_v1  ;;  %v7409_v35 = vrot.slane %v7400_v43, %v10875_v28  ;;  %v6881_v12 = vmul.f32 %v6872_v62, %v5813_v57  ;;  %v11086_v8 = vld [vmem:[#allocation75_spill] sm:$0xff]  ;;  %v5842_v1 = vpop.permute.xlu0 %5841 }
 0x72b   : > { %v7414_v49 = vmul.f32 %v7405_v22, %v5813_v57  ;;  %v5824_v23 = vmul.f32 %v11035_v11, %v11083_v13  ;;  %v6355_v0 = vadd.f32 %v6352_v26, %v10391_v15  ;;  %v6358_v33 = vmul.f32 %v11042_v56, %v11084_v17  ;;  %v11090_v22 = vld [vmem:[#allocation84_spill] sm:$0xff] }
 0x72c   : > { %v6887_v29 = vmul.f32 %v11046_v60, %v11085_v9  ;;  %v7420_v54 = vmul.f32 %v10138_v51, %v11086_v8  ;;  %v6882_v61 = vmul.f32 %v6876_v38, %v5814_v7  ;;  %v6884_v39 = vadd.f32 %v6881_v12, %v10415_v47  ;;  %v11087_v60 = vld [vmem:[#allocation97_spill] sm:$0xff] }
 0x72d   : > { %v7415_v6 = vmul.f32 %v7409_v35, %v5814_v7  ;;  %v7417_v16 = vadd.f32 %v7414_v49, %v10417_v48  ;;  %v5830_v11 = vrot.slane %v5824_v23, %v11040_v36  ;;  %v6364_v15 = vrot.slane %v6358_v33, %v11065_v42  ;;  %v11089_v7 = vld [vmem:[#allocation10_spill] sm:$0xff]  ;;  %v11091_v12 = vld [vmem:[#allocation33_spill] sm:$0xff]  ;;  %v5844_v49 = vpop.permute.xlu1 %5843 }
 0x72e   : > { %v6893_v56 = vrot.slane %v6887_v29, %v10875_v28  ;;  %v7426_v57 = vrot.slane %v7420_v54, %v9339_v34  ;;  %v5845_v20 = vsel %vm1838_vm13, %v11087_v60, %v5842_v1  ;;  %v5823_v51 = vadd.f32 %v10430_v44, %v10396_v27  ;;  %v11093_v23 = vld [vmem:[#allocation45_spill] sm:$0xff]  ;;  %v11095_v33 = vld [vmem:[#allocation62_spill] sm:$0xff] }
 0x72f   : > { %v5825_v47 = vmul.f32 %v11034_v45, %v11088_v14  ;;  %v5826_v48 = vmul.f32 %v11060_v63, %v11089_v7  ;;  %v5850_v18 = vmul.f32 %v5845_v20, %v5830_v11  ;;  %v6373_v10 = vmul.f32 %v6364_v15, %v5845_v20 }
 0x730   : > { %v6902_v32 = vmul.f32 %v6893_v56, %v5845_v20  ;;  %v7435_v58 = vmul.f32 %v7426_v57, %v5845_v20  ;;  %v6356_v24 = vadd.f32 %v6353_v55, %v6329_v41  ;;  %v6885_v43 = vadd.f32 %v6882_v61, %v6858_v19 }
 0x731   : > { %v7418_v26 = vadd.f32 %v7415_v6, %v7391_v21  ;;  %v6357_v27 = vadd.f32 %v10432_v53, %v10399_v2  ;;  %v5853_v45 = vadd.f32 %v5850_v18, %v5821_v59  ;;  %v6376_v44 = vadd.f32 %v6373_v10, %v6355_v0  ;;  %v11092_v21 = vld [vmem:[#allocation94_spill] sm:$0xff]  ;;  %v11094_v0 = vld [vmem:[#allocation76_spill] sm:$0xff] }
 0x732   : > { %v6905_v62 = vadd.f32 %v6902_v32, %v6884_v39  ;;  %v7438_v63 = vadd.f32 %v7435_v58, %v7417_v16  ;;  %v5834_v38 = vrot.slane %v5825_v47, %v11040_v36  ;;  %v6359_v35 = vmul.f32 %v11038_v4, %v11090_v22 }
 0x733   : > { %v6360_v41 = vmul.f32 %v11027_v3, %v11091_v12  ;;  %v6886_v55 = vadd.f32 %v10436_v30, %v10404_v31  ;;  %5856 = vst [vmem:[%s10504_s24] sm:$0x7] %v5853_v45  ;;  %v6382_v2 = vrot.slane %v6376_v44, 5  ;;  %v6888_v59 = vmul.f32 %v11045_v40, %v11092_v21 }
 0x734   : > { %v6911_v53 = vrot.slane %v6905_v62, 2  ;;  %v7444_v19 = vrot.slane %v7438_v63, 7  ;;  %v5838_v13 = vrot.slane %v5826_v48, %v11040_v36  ;;  %v6889_v4 = vmul.f32 %v11030_v25, %v11093_v23 }
 0x735   : > { %6388 = vst [vmem:[%s10504_s24] sm:$0x38] %v6382_v2  ;;  %v6368_v3 = vrot.slane %v6359_v35, %v11065_v42  ;;  %v6372_v31 = vrot.slane %v6360_v41, %v11065_v42  ;;  %v7419_v30 = vadd.f32 %v10444_v46, %v10407_v37  ;;  %v7421_v40 = vmul.f32 %v10157_v50, %v11094_v0 }
 0x736   : > { %6917 = vst [vmem:[%s10504_s24 + $0x18] ss:$-20 sps:$4 sm:$0xc1] %v6911_v53   ;;  %7450 = vst [vmem:[%s10504_s24 + $0x18] sm:$0xe] %v7444_v19  ;;  %v6897_v36 = vrot.slane %v6888_v59, %v10875_v28  ;;  %v6901_v17 = vrot.slane %v6889_v4, %v10875_v28  ;;  %v7422_v25 = vmul.f32 %v11033_v5, %v11095_v33  ;;  %vm6919_vm6 = vcmask 556038  }
 0x737   : > { %v5846_v9 = vsel %vm1838_vm13, %v5842_v1, %v5844_v49  ;;  %v7430_v29 = vrot.slane %v7421_v40, %v9339_v34  ;;  %v5852_v54 = vmul.f32 %v5844_v49, %v5838_v13  ;;  %v6375_v46 = vmul.f32 %v6372_v31, %v5844_v49 }
 0x738   : > { %v5851_v8 = vmul.f32 %v5846_v9, %v5834_v38  ;;  %v6374_v42 = vmul.f32 %v6368_v3, %v5846_v9  ;;  %v7434_v37 = vrot.slane %v7422_v25, %v9339_v34  ;;  %v6903_v50 = vmul.f32 %v6897_v36, %v5846_v9 }
 0x739   : > { %v6904_v61 = vmul.f32 %v6901_v17, %v5844_v49  ;;  %v5855_v28 = vadd.f32 %v5852_v54, %v5823_v51  ;;  %v7436_v16 = vmul.f32 %v7430_v29, %v5846_v9  ;;  %v6378_v5 = vadd.f32 %v6375_v46, %v6357_v27 }
 0x73a   : > { %v5854_v39 = vadd.f32 %v5851_v8, %v10474_v52  ;;  %v6377_v6 = vadd.f32 %v6374_v42, %v6356_v24  ;;  %v6906_v1 = vadd.f32 %v6903_v50, %v6885_v43  ;;  %v7437_v15 = vmul.f32 %v7434_v37, %v5844_v49 }
 0x73b   : > { %v6907_v11 = vadd.f32 %v6904_v61, %v6886_v55  ;;  %vm6923_vm7 = vcmask 548864   ;;  %5859 = vst.msk [vmem:[%s10504_s24 + $0x10] sm:$0x7] %vm5858_vm3, %v5855_v28  ;;  %v7439_v52 = vadd.f32 %v7436_v16, %v7418_v26  ;;  %v6384_v56 = vrot.slane %v6378_v5, 5 }
 0x73c   : > { %5857 = vst [vmem:[%s10504_s24 + $0x8] sm:$0x7] %v5854_v39  ;;  %v6383_v34 = vrot.slane %v6377_v6, 5  ;;  %v6912_v57 = vrot.slane %v6906_v1, 2  ;;  %v7440_v20 = vadd.f32 %v7437_v15, %v7419_v30  ;;  %vm7452_vm8 = vcmask 551937  }
 0x73d   : > { %v6913_v60 = vrot.slane %v6907_v11, 2  ;;  %v7445_v51 = vrot.slane %v7439_v52, 7  ;;  %6391 = vst.msk [vmem:[%s10504_s24 + $0x10] sm:$0x38] %vm6390_vm5, %v6384_v56 }
 0x73e   : > { %6389 = vst [vmem:[%s10504_s24 + $0x8] sm:$0x38] %v6383_v34  ;;  %6918 = vst [vmem:[%s10504_s24 + $0x20] ss:$-20 sps:$4 sm:$0xc1] %v6912_v57   ;;  %v7446_v14 = vrot.slane %v7440_v20, 7 }
 0x73f   : > { %6920 = vst.msk [vmem:[%s10504_s24 + $0x10] sm:$0xc0] %vm6919_vm6, %v6913_v60  ;;  %7451 = vst [vmem:[%s10504_s24 + $0x20] sm:$0xe] %v7445_v51 }
 0x740   : > { %6924 = vst.msk [vmem:[%s10504_s24 + $0x28] sm:$0x1] %vm6923_vm7, %v6913_v60 }
 0x741   : > { %7453 = vst.msk [vmem:[%s10504_s24 + $0x28] sm:$0xe] %vm7452_vm8, %v7446_v14 }
 0x742 PF: > { %s20_s13 = sadd.s32 1, %s8153_s13  }
 0x743   : > { %p17_p4 = scmp.ge.s32.totalorder %s20_s13, 4  }
 0x745   :  { %19 = sbr.rel (!%p17_p4) target bundleno = 1 (0x1), region = 114 }

</bundles_post_ra>
